<compile_context>
chip_gen: v6e
topology: v6e:2x2x1
jax: 0.10.0
libtpu: 0.0.40
codegen_flags: <defaults>
</compile_context>

<pallas_src>
import functools
import math

import jax
import jax.numpy as jnp
import numpy as np
from jax.experimental import pallas as pl
from jax.experimental.pallas import tpu as pltpu

VMEM_FULL = pl.BlockSpec(memory_space=pltpu.MemorySpace.VMEM)


# ----------------------------------------------------------------------------
# Fused forward kernel
# ----------------------------------------------------------------------------
def _critic_kernel(x_ref, band1_ref, b1_ref, a1_ref,
                   band2_ref, b2_ref, a2_ref,
                   l1_ref, l2_ref, g_ref,
                   wq_ref, bq_ref, wk_ref, bk_ref, wv_ref, bv_ref, wo_ref, bo_ref,
                   wfc_ref, bfc_ref, a3_ref, wvh_ref, bvh_ref,
                   o_ref,
                   x2_ref, attn_ref,
                   *, batch, num_heads, w1, w2, w3, c):
    head_dim = c // num_heads
    scale = 1.0 / math.sqrt(head_dim)
    seq_len = w3 * w3

    def prelu(v, a_r):
        a = a_r[...]                           # (1, 1) scalar alpha (torch default)
        return jnp.where(v >= 0.0, v, a * v)

    def mm(a, b):
        return jnp.dot(a, b, preferred_element_type=jnp.float32)

    vals = []
    for b in range(batch):                     # B is tiny -> static unroll
        # ---- conv1 (3x3, pad=1) as 3 band matmuls; lanes = w*Cout + cout ----
        h1 = mm(x_ref[b, 0:w1, :], band1_ref[0])
        h1 = h1 + mm(x_ref[b, 1:w1 + 1, :], band1_ref[1])
        h1 = h1 + mm(x_ref[b, 2:w1 + 2, :], band1_ref[2])
        h1 = prelu(h1 + b1_ref[...], a1_ref)                       # (w1, w1*c)

        # ---- 2x2 max-pool fused with the zero-pad ring for conv2 ----
        # rows: even/odd selection matmuls (zero top/bottom rows already folded in)
        t = jnp.maximum(mm(l1_ref[0], h1), mm(l1_ref[1], h1))      # (w2+2, w1*c)
        # lanes: max of adjacent c-wide groups, re-emitted with zero edge groups
        zedge = jnp.zeros((w2 + 2, c), jnp.float32)
        parts = [zedge]
        for w in range(w2):
            parts.append(jnp.maximum(t[:, (2 * w) * c:(2 * w + 1) * c],
                                     t[:, (2 * w + 1) * c:(2 * w + 2) * c]))
        parts.append(zedge)
        x2_ref[...] = jnp.concatenate(parts, axis=-1)              # (w2+2, (w2+2)*c)

        # ---- conv2 (3x3, pad=1) + PReLU ----
        h2 = mm(x2_ref[0:w2, :], band2_ref[0])
        h2 = h2 + mm(x2_ref[1:w2 + 1, :], band2_ref[1])
        h2 = h2 + mm(x2_ref[2:w2 + 2, :], band2_ref[2])
        h2 = prelu(h2 + b2_ref[...], a2_ref)                       # (w2, w2*c)

        # ---- 2x2 max-pool + scatter into the (S, C) token matrix (torch order) ----
        t2 = jnp.maximum(mm(l2_ref[0], h2), mm(l2_ref[1], h2))     # (w3, w2*c)
        seq = jnp.zeros((seq_len, c), jnp.float32)
        for w in range(w3):
            blk = jnp.maximum(t2[:, (2 * w) * c:(2 * w + 1) * c],
                              t2[:, (2 * w + 1) * c:(2 * w + 2) * c])   # (w3, c)
            seq = seq + mm(g_ref[w], blk)       # rows h*w3 + w  (row-major tokens)

        # ---- multi-head self-attention (head-split weights, no activation slicing) ----
        attn = jnp.zeros((seq_len, c), jnp.float32) + bo_ref[...]
        for h in range(num_heads):
            qh = mm(seq, wq_ref[h]) + bq_ref[h]                    # (S, hd)
            kh = mm(seq, wk_ref[h]) + bk_ref[h]
            vh = mm(seq, wv_ref[h]) + bv_ref[h]
            s = jax.lax.dot_general(qh, kh, (((1,), (1,)), ((), ())),
                                    preferred_element_type=jnp.float32) * scale
            s = s - jnp.max(s, axis=-1, keepdims=True)
            pexp = jnp.exp(s)
            pexp = pexp * pl.reciprocal(jnp.sum(pexp, axis=-1, keepdims=True),
                                        approx=True)
            attn = attn + mm(mm(pexp, vh), wo_ref[h])              # += head_h @ Wo_h
        attn_ref[...] = attn                                       # (S, c)

        # ---- flatten (s-major, channel-minor, exactly torch .view(B, -1)) ----
        flat = jnp.concatenate([attn_ref[si:si + 1, :] for si in range(seq_len)],
                               axis=-1)                            # (1, S*c)

        # ---- fc + PReLU + value head ----
        hid = prelu(mm(flat, wfc_ref[...]) + bfc_ref[...], a3_ref)  # (1, 128)
        vals.append(mm(hid, wvh_ref[...]) + bvh_ref[...])           # (1, 1)

    o_ref[...] = jnp.concatenate(vals, axis=-1).astype(o_ref.dtype)  # (1, batch)


# ----------------------------------------------------------------------------
# Wrapper-side weight repacking (tiny, fused ahead of the single pallas_call)
# ----------------------------------------------------------------------------
def _conv_bands(w_oihw, w_out):
    """3x3/pad=1 conv -> 3 band matrices (one per kernel row).

    band[dh][(w+dw)*Cin + ci, w*Cout + co] = w_oihw[co, ci, dh, dw]
    so that  out_row(h) = sum_dh padded_row(h+dh) @ band[dh].
    """
    cout, cin, kh, kw = w_oihw.shape
    wp = w_out + 2
    bands = []
    for dh in range(kh):
        m = jnp.zeros((wp, cin, w_out, cout), jnp.float32)
        idx = jnp.arange(w_out)
        for dw in range(kw):
            tap = jnp.transpose(w_oihw[:, :, dh, dw])    # (cin, cout)
            m = m.at[idx + dw, :, idx, :].add(tap)
        bands.append(m.reshape(wp * cin, w_out * cout))
    return jnp.stack(bands)                              # (3, wp*cin, w_out*cout)


def _select(n_rows, n_cols, rows, cols):
    return jnp.zeros((n_rows, n_cols), jnp.float32).at[rows, cols].set(1.0)


@functools.partial(jax.jit, static_argnames=("num_heads",))
def critic_forward(x_nchw, params, *, num_heads):
    p = params
    B, cin, H, W = x_nchw.shape
    assert H == W, "module assumes a square grid"
    cout = p["conv1_w"].shape[0]
    w1, w2, w3 = W, W // 2, W // 4
    hd = cout // num_heads
    assert p["fc_w"].shape[0] == w3 * w3 * cout

    # input: NCHW -> padded NHWC row slab (B, H+2, (W+2)*Cin)
    x = jnp.transpose(x_nchw, (0, 2, 3, 1)).astype(jnp.float32)
    xslab = jnp.pad(x, ((0, 0), (1, 1), (1, 1), (0, 0))).reshape(B, w1 + 2, (w1 + 2) * cin)

    # conv weights as band matrices, biases tiled to the lane layout (w*Cout+co)
    band1 = _conv_bands(p["conv1_w"], w1)
    band2 = _conv_bands(p["conv2_w"], w2)
    b1row = jnp.tile(p["conv1_b"], w1).reshape(1, w1 * cout)
    b2row = jnp.tile(p["conv2_b"], w2).reshape(1, w2 * cout)

    # pooling row-selection matrices (l1 also folds conv2's zero row padding)
    l1 = jnp.stack([_select(w2 + 2, w1, jnp.arange(w2) + 1, 2 * jnp.arange(w2)),
                    _select(w2 + 2, w1, jnp.arange(w2) + 1, 2 * jnp.arange(w2) + 1)])
    l2 = jnp.stack([_select(w3, w2, jnp.arange(w3), 2 * jnp.arange(w3)),
                    _select(w3, w2, jnp.arange(w3), 2 * jnp.arange(w3) + 1)])
    # token-scatter matrices: row h -> token h*w3 + w  (torch row-major flatten)
    g = jnp.stack([_select(w3 * w3, w3, jnp.arange(w3) * w3 + w, jnp.arange(w3))
                   for w in range(w3)])

    # pre-split attention weights per head
    def split_in(wmat, bvec):
        return (wmat.reshape(cout, num_heads, hd).transpose(1, 0, 2),
                bvec.reshape(num_heads, 1, hd))

    wq, bq = split_in(p["wq"], p["bq"])
    wk, bk = split_in(p["wk"], p["bk"])
    wv, bv = split_in(p["wv"], p["bv"])
    wo = p["wo"].reshape(num_heads, hd, cout)
    bo = p["bo"].reshape(1, cout)

    kern = functools.partial(_critic_kernel, batch=B, num_heads=num_heads,
                             w1=w1, w2=w2, w3=w3, c=cout)
    out = pl.pallas_call(
        kern,
        out_shape=jax.ShapeDtypeStruct((1, B), jnp.float32),
        in_specs=[VMEM_FULL] * 23,
        out_specs=VMEM_FULL,
        scratch_shapes=[pltpu.VMEM((w2 + 2, (w2 + 2) * cout), jnp.float32),
                        pltpu.VMEM((w3 * w3, cout), jnp.float32)],
    )(xslab,
      band1, b1row, p["prelu1_a"].reshape(1, 1),
      band2, b2row, p["prelu2_a"].reshape(1, 1),
      l1, l2, g,
      wq, bq, wk, bk, wv, bv, wo, bo,
      p["fc_w"], p["fc_b"].reshape(1, -1), p["prelu3_a"].reshape(1, 1),
      p["value_w"], p["value_b"].reshape(1, 1))
    return out.reshape(B, 1)


# ----------------------------------------------------------------------------
# Pure-JAX reference (mirrors the PyTorch module) for a structural check
# ----------------------------------------------------------------------------
def critic_reference(x_nchw, p, num_heads):
    x = x_nchw.astype(jnp.float32)

    def conv(v, w, b):
        y = jax.lax.conv_general_dilated(v, w, (1, 1), ((1, 1), (1, 1)),
                                         dimension_numbers=("NCHW", "OIHW", "NCHW"))
        return y + b[None, :, None, None]

    def prelu(v, a):
        return jnp.where(v >= 0.0, v, a * v)

    def pool(v):
        return jax.lax.reduce_window(v, -jnp.inf, jax.lax.max,
                                     (1, 1, 2, 2), (1, 1, 2, 2), "VALID")

    y = pool(prelu(conv(x, p["conv1_w"], p["conv1_b"]), p["prelu1_a"]))
    y = pool(prelu(conv(y, p["conv2_w"], p["conv2_b"]), p["prelu2_a"]))
    B, C, H, W = y.shape
    seq = y.reshape(B, C, H * W).transpose(0, 2, 1)                 # (B, S, C)
    S, hd = H * W, C // num_heads

    q = (seq @ p["wq"] + p["bq"]).reshape(B, S, num_heads, hd).transpose(0, 2, 1, 3)
    k = (seq @ p["wk"] + p["bk"]).reshape(B, S, num_heads, hd).transpose(0, 2, 1, 3)
    v = (seq @ p["wv"] + p["bv"]).reshape(B, S, num_heads, hd).transpose(0, 2, 1, 3)
    att = jax.nn.softmax(q @ k.transpose(0, 1, 3, 2) / math.sqrt(hd), axis=-1)
    ws = (att @ v).transpose(0, 2, 1, 3).reshape(B, S, C)
    attn = ws @ p["wo"] + p["bo"]

    flat = attn.reshape(B, -1)
    hid = prelu(flat @ p["fc_w"] + p["fc_b"], p["prelu3_a"])
    return hid @ p["value_w"] + p["value_b"]


# ----------------------------------------------------------------------------
# Deterministic parameter init (shapes from Critic.__init__); linear weights
# are stored pre-transposed as (in, out) so the kernel computes x @ W directly.
# ----------------------------------------------------------------------------
def init_params(key, input_channels, conv_out, grid_number, hidden=128):
    keys = jax.random.split(key, 16)

    def nrm(k, shape, scale=0.1):
        return scale * jax.random.normal(k, shape, dtype=jnp.float32)

    D = conv_out
    fc_in = (grid_number // 4) ** 2 * conv_out
    return dict(
        conv1_w=nrm(keys[0], (conv_out, input_channels, 3, 3)),
        conv1_b=nrm(keys[1], (conv_out,)),
        prelu1_a=jnp.full((1,), 0.25, jnp.float32),
        conv2_w=nrm(keys[2], (conv_out, conv_out, 3, 3)),
        conv2_b=nrm(keys[3], (conv_out,)),
        prelu2_a=jnp.full((1,), 0.25, jnp.float32),
        wq=nrm(keys[4], (D, D)), bq=nrm(keys[5], (D,)),
        wk=nrm(keys[6], (D, D)), bk=nrm(keys[7], (D,)),
        wv=nrm(keys[8], (D, D)), bv=nrm(keys[9], (D,)),
        wo=nrm(keys[10], (D, D)), bo=nrm(keys[11], (D,)),
        prelu3_a=jnp.full((1,), 0.25, jnp.float32),
        fc_w=nrm(keys[12], (fc_in, hidden)),
        fc_b=nrm(keys[13], (hidden,)),
        value_w=nrm(keys[14], (hidden, 1)),
        value_b=nrm(keys[15], (1,)),
    )


if __name__ == "__main__":
    key = jax.random.PRNGKey(0)
    kx, kp = jax.random.split(key)

    # Critic(input_channels=4, conv_out_channels=16, kernel_size=3,
    #        grid_number=16, num_heads=2)
    B, Cin, G = 2, 4, 16
    Cout, heads = 16, 2

    x = jax.random.normal(kx, (B, Cin, G, G), dtype=jnp.float32)   # NCHW like PyTorch
    params = init_params(kp, Cin, Cout, G)

    value = critic_forward(x, params, num_heads=heads)
    value = jax.block_until_ready(value)
    assert value.shape == (B, 1) and value.dtype == jnp.float32

    ref = critic_reference(x, params, heads)
    np.testing.assert_allclose(np.asarray(value), np.asarray(ref),
                               rtol=5e-2, atol=5e-2)
    print("KERNEL_OK")
</pallas_src>

<mosaic_0001>
module attributes {stable_mosaic.version = 11 : i64} {
  func.func @_critic_kernel(%arg0: memref<2x18x72xf32, #tpu.memory_space<vmem>>, %arg1: memref<3x72x256xf32, #tpu.memory_space<vmem>>, %arg2: memref<1x256xf32, #tpu.memory_space<vmem>>, %arg3: memref<1x1xf32, #tpu.memory_space<vmem>>, %arg4: memref<3x160x128xf32, #tpu.memory_space<vmem>>, %arg5: memref<1x128xf32, #tpu.memory_space<vmem>>, %arg6: memref<1x1xf32, #tpu.memory_space<vmem>>, %arg7: memref<2x10x16xf32, #tpu.memory_space<vmem>>, %arg8: memref<2x4x8xf32, #tpu.memory_space<vmem>>, %arg9: memref<4x16x4xf32, #tpu.memory_space<vmem>>, %arg10: memref<2x16x8xf32, #tpu.memory_space<vmem>>, %arg11: memref<2x1x8xf32, #tpu.memory_space<vmem>>, %arg12: memref<2x16x8xf32, #tpu.memory_space<vmem>>, %arg13: memref<2x1x8xf32, #tpu.memory_space<vmem>>, %arg14: memref<2x16x8xf32, #tpu.memory_space<vmem>>, %arg15: memref<2x1x8xf32, #tpu.memory_space<vmem>>, %arg16: memref<2x8x16xf32, #tpu.memory_space<vmem>>, %arg17: memref<1x16xf32, #tpu.memory_space<vmem>>, %arg18: memref<256x128xf32, #tpu.memory_space<vmem>>, %arg19: memref<1x128xf32, #tpu.memory_space<vmem>>, %arg20: memref<1x1xf32, #tpu.memory_space<vmem>>, %arg21: memref<128x1xf32, #tpu.memory_space<vmem>>, %arg22: memref<1x1xf32, #tpu.memory_space<vmem>>, %arg23: memref<1x2xf32, #tpu.memory_space<vmem>>, %arg24: memref<10x160xf32, #tpu.memory_space<vmem>>, %arg25: memref<16x16xf32, #tpu.memory_space<vmem>>) attributes {dimension_semantics = [], scalar_prefetch = 0 : i64, scratch_operands = 2 : i64, tpu.core_type = #tpu.core_type<tc>} {
    %c0 = arith.constant 0 : index
    %c0_0 = arith.constant 0 : index
    %c0_1 = arith.constant 0 : index
    %0 = vector.load %arg0[%c0, %c0_0, %c0_1] : memref<2x18x72xf32, #tpu.memory_space<vmem>>, vector<1x16x72xf32>
    %1 = vector.shape_cast %0 : vector<1x16x72xf32> to vector<16x72xf32>
    %c0_2 = arith.constant 0 : index
    %c0_3 = arith.constant 0 : index
    %c0_4 = arith.constant 0 : index
    %2 = vector.load %arg1[%c0_2, %c0_3, %c0_4] : memref<3x72x256xf32, #tpu.memory_space<vmem>>, vector<1x72x256xf32>
    %3 = vector.shape_cast %2 : vector<1x72x256xf32> to vector<72x256xf32>
    %cst = arith.constant dense<0.000000e+00> : vector<16x256xf32>
    %4 = tpu.matmul %1, %3, %cst {dimension_numbers = #tpu.dot_dimension_numbers<[1], [0], [0], [1], [0, 0, 1, 1], [], []>} : vector<16x72xf32>, vector<72x256xf32>, vector<16x256xf32> -> vector<16x256xf32>
    %c0_5 = arith.constant 0 : index
    %c1 = arith.constant 1 : index
    %c0_6 = arith.constant 0 : index
    %5 = vector.load %arg0[%c0_5, %c1, %c0_6] : memref<2x18x72xf32, #tpu.memory_space<vmem>>, vector<1x16x72xf32>
    %6 = vector.shape_cast %5 : vector<1x16x72xf32> to vector<16x72xf32>
    %c1_7 = arith.constant 1 : index
    %c0_8 = arith.constant 0 : index
    %c0_9 = arith.constant 0 : index
    %7 = vector.load %arg1[%c1_7, %c0_8, %c0_9] : memref<3x72x256xf32, #tpu.memory_space<vmem>>, vector<1x72x256xf32>
    %8 = vector.shape_cast %7 : vector<1x72x256xf32> to vector<72x256xf32>
    %cst_10 = arith.constant dense<0.000000e+00> : vector<16x256xf32>
    %9 = tpu.matmul %6, %8, %cst_10 {dimension_numbers = #tpu.dot_dimension_numbers<[1], [0], [0], [1], [0, 0, 1, 1], [], []>} : vector<16x72xf32>, vector<72x256xf32>, vector<16x256xf32> -> vector<16x256xf32>
    %10 = arith.addf %4, %9 : vector<16x256xf32>
    %c0_11 = arith.constant 0 : index
    %c2 = arith.constant 2 : index
    %c0_12 = arith.constant 0 : index
    %11 = vector.load %arg0[%c0_11, %c2, %c0_12] : memref<2x18x72xf32, #tpu.memory_space<vmem>>, vector<1x16x72xf32>
    %12 = vector.shape_cast %11 : vector<1x16x72xf32> to vector<16x72xf32>
    %c2_13 = arith.constant 2 : index
    %c0_14 = arith.constant 0 : index
    %c0_15 = arith.constant 0 : index
    %13 = vector.load %arg1[%c2_13, %c0_14, %c0_15] : memref<3x72x256xf32, #tpu.memory_space<vmem>>, vector<1x72x256xf32>
    %14 = vector.shape_cast %13 : vector<1x72x256xf32> to vector<72x256xf32>
    %cst_16 = arith.constant dense<0.000000e+00> : vector<16x256xf32>
    %15 = tpu.matmul %12, %14, %cst_16 {dimension_numbers = #tpu.dot_dimension_numbers<[1], [0], [0], [1], [0, 0, 1, 1], [], []>} : vector<16x72xf32>, vector<72x256xf32>, vector<16x256xf32> -> vector<16x256xf32>
    %16 = arith.addf %10, %15 : vector<16x256xf32>
    %c0_17 = arith.constant 0 : index
    %c0_18 = arith.constant 0 : index
    %17 = vector.load %arg2[%c0_17, %c0_18] : memref<1x256xf32, #tpu.memory_space<vmem>>, vector<1x256xf32>
    %18 = vector.broadcast %17 : vector<1x256xf32> to vector<16x256xf32>
    %19 = arith.addf %16, %18 : vector<16x256xf32>
    %c0_19 = arith.constant 0 : index
    %c0_20 = arith.constant 0 : index
    %20 = vector.load %arg3[%c0_19, %c0_20] : memref<1x1xf32, #tpu.memory_space<vmem>>, vector<1x1xf32>
    %cst_21 = arith.constant 0.000000e+00 : f32
    %21 = vector.broadcast %cst_21 : f32 to vector<16x256xf32>
    %22 = arith.cmpf oge, %19, %21 : vector<16x256xf32>
    %23 = vector.broadcast %20 : vector<1x1xf32> to vector<16x256xf32>
    %24 = arith.mulf %23, %19 : vector<16x256xf32>
    %25 = arith.select %22, %19, %24 : vector<16x256xi1>, vector<16x256xf32>
    %c0_22 = arith.constant 0 : index
    %c0_23 = arith.constant 0 : index
    %c0_24 = arith.constant 0 : index
    %26 = vector.load %arg7[%c0_22, %c0_23, %c0_24] : memref<2x10x16xf32, #tpu.memory_space<vmem>>, vector<1x10x16xf32>
    %27 = vector.shape_cast %26 : vector<1x10x16xf32> to vector<10x16xf32>
    %cst_25 = arith.constant dense<0.000000e+00> : vector<10x256xf32>
    %28 = tpu.matmul %27, %25, %cst_25 {dimension_numbers = #tpu.dot_dimension_numbers<[1], [0], [0], [1], [0, 0, 1, 1], [], []>} : vector<10x16xf32>, vector<16x256xf32>, vector<10x256xf32> -> vector<10x256xf32>
    %c1_26 = arith.constant 1 : index
    %c0_27 = arith.constant 0 : index
    %c0_28 = arith.constant 0 : index
    %29 = vector.load %arg7[%c1_26, %c0_27, %c0_28] : memref<2x10x16xf32, #tpu.memory_space<vmem>>, vector<1x10x16xf32>
    %30 = vector.shape_cast %29 : vector<1x10x16xf32> to vector<10x16xf32>
    %cst_29 = arith.constant dense<0.000000e+00> : vector<10x256xf32>
    %31 = tpu.matmul %30, %25, %cst_29 {dimension_numbers = #tpu.dot_dimension_numbers<[1], [0], [0], [1], [0, 0, 1, 1], [], []>} : vector<10x16xf32>, vector<16x256xf32>, vector<10x256xf32> -> vector<10x256xf32>
    %32 = arith.maximumf %28, %31 : vector<10x256xf32>
    %cst_30 = arith.constant 0.000000e+00 : f32
    %33 = vector.broadcast %cst_30 : f32 to vector<10x16xf32>
    %34 = vector.extract_strided_slice %32 {offsets = [0, 0], sizes = [10, 16], strides = [1, 1]} : vector<10x256xf32> to vector<10x16xf32>
    %35 = vector.extract_strided_slice %32 {offsets = [0, 16], sizes = [10, 16], strides = [1, 1]} : vector<10x256xf32> to vector<10x16xf32>
    %36 = arith.maximumf %34, %35 : vector<10x16xf32>
    %37 = vector.extract_strided_slice %32 {offsets = [0, 32], sizes = [10, 16], strides = [1, 1]} : vector<10x256xf32> to vector<10x16xf32>
    %38 = vector.extract_strided_slice %32 {offsets = [0, 48], sizes = [10, 16], strides = [1, 1]} : vector<10x256xf32> to vector<10x16xf32>
    %39 = arith.maximumf %37, %38 : vector<10x16xf32>
    %40 = vector.extract_strided_slice %32 {offsets = [0, 64], sizes = [10, 16], strides = [1, 1]} : vector<10x256xf32> to vector<10x16xf32>
    %41 = vector.extract_strided_slice %32 {offsets = [0, 80], sizes = [10, 16], strides = [1, 1]} : vector<10x256xf32> to vector<10x16xf32>
    %42 = arith.maximumf %40, %41 : vector<10x16xf32>
    %43 = vector.extract_strided_slice %32 {offsets = [0, 96], sizes = [10, 16], strides = [1, 1]} : vector<10x256xf32> to vector<10x16xf32>
    %44 = vector.extract_strided_slice %32 {offsets = [0, 112], sizes = [10, 16], strides = [1, 1]} : vector<10x256xf32> to vector<10x16xf32>
    %45 = arith.maximumf %43, %44 : vector<10x16xf32>
    %46 = vector.extract_strided_slice %32 {offsets = [0, 128], sizes = [10, 16], strides = [1, 1]} : vector<10x256xf32> to vector<10x16xf32>
    %47 = vector.extract_strided_slice %32 {offsets = [0, 144], sizes = [10, 16], strides = [1, 1]} : vector<10x256xf32> to vector<10x16xf32>
    %48 = arith.maximumf %46, %47 : vector<10x16xf32>
    %49 = vector.extract_strided_slice %32 {offsets = [0, 160], sizes = [10, 16], strides = [1, 1]} : vector<10x256xf32> to vector<10x16xf32>
    %50 = vector.extract_strided_slice %32 {offsets = [0, 176], sizes = [10, 16], strides = [1, 1]} : vector<10x256xf32> to vector<10x16xf32>
    %51 = arith.maximumf %49, %50 : vector<10x16xf32>
    %52 = vector.extract_strided_slice %32 {offsets = [0, 192], sizes = [10, 16], strides = [1, 1]} : vector<10x256xf32> to vector<10x16xf32>
    %53 = vector.extract_strided_slice %32 {offsets = [0, 208], sizes = [10, 16], strides = [1, 1]} : vector<10x256xf32> to vector<10x16xf32>
    %54 = arith.maximumf %52, %53 : vector<10x16xf32>
    %55 = vector.extract_strided_slice %32 {offsets = [0, 224], sizes = [10, 16], strides = [1, 1]} : vector<10x256xf32> to vector<10x16xf32>
    %56 = vector.extract_strided_slice %32 {offsets = [0, 240], sizes = [10, 16], strides = [1, 1]} : vector<10x256xf32> to vector<10x16xf32>
    %57 = arith.maximumf %55, %56 : vector<10x16xf32>
    %58 = tpu.concatenate %33, %36, %39, %42, %45, %48, %51, %54, %57, %33 in 1 : vector<10x16xf32>, vector<10x16xf32>, vector<10x16xf32>, vector<10x16xf32>, vector<10x16xf32>, vector<10x16xf32>, vector<10x16xf32>, vector<10x16xf32>, vector<10x16xf32>, vector<10x16xf32> -> vector<10x160xf32>
    %c0_31 = arith.constant 0 : index
    %c0_32 = arith.constant 0 : index
    %59 = vector.load %arg24[%c0_31, %c0_32] : memref<10x160xf32, #tpu.memory_space<vmem>>, vector<10x160xf32>
    tpu.vector_store %arg24[%c0_31, %c0_32], %58 {strides = array<i32>} : memref<10x160xf32, #tpu.memory_space<vmem>>, vector<10x160xf32>,
    %c0_33 = arith.constant 0 : index
    %c0_34 = arith.constant 0 : index
    %60 = vector.load %arg24[%c0_33, %c0_34] : memref<10x160xf32, #tpu.memory_space<vmem>>, vector<8x160xf32>
    %c0_35 = arith.constant 0 : index
    %c0_36 = arith.constant 0 : index
    %c0_37 = arith.constant 0 : index
    %61 = vector.load %arg4[%c0_35, %c0_36, %c0_37] : memref<3x160x128xf32, #tpu.memory_space<vmem>>, vector<1x160x128xf32>
    %62 = vector.shape_cast %61 : vector<1x160x128xf32> to vector<160x128xf32>
    %cst_38 = arith.constant dense<0.000000e+00> : vector<8x128xf32>
    %63 = tpu.matmul %60, %62, %cst_38 {dimension_numbers = #tpu.dot_dimension_numbers<[1], [0], [0], [1], [0, 0, 1, 1], [], []>} : vector<8x160xf32>, vector<160x128xf32>, vector<8x128xf32> -> vector<8x128xf32>
    %c1_39 = arith.constant 1 : index
    %c0_40 = arith.constant 0 : index
    %64 = vector.load %arg24[%c1_39, %c0_40] : memref<10x160xf32, #tpu.memory_space<vmem>>, vector<8x160xf32>
    %c1_41 = arith.constant 1 : index
    %c0_42 = arith.constant 0 : index
    %c0_43 = arith.constant 0 : index
    %65 = vector.load %arg4[%c1_41, %c0_42, %c0_43] : memref<3x160x128xf32, #tpu.memory_space<vmem>>, vector<1x160x128xf32>
    %66 = vector.shape_cast %65 : vector<1x160x128xf32> to vector<160x128xf32>
    %cst_44 = arith.constant dense<0.000000e+00> : vector<8x128xf32>
    %67 = tpu.matmul %64, %66, %cst_44 {dimension_numbers = #tpu.dot_dimension_numbers<[1], [0], [0], [1], [0, 0, 1, 1], [], []>} : vector<8x160xf32>, vector<160x128xf32>, vector<8x128xf32> -> vector<8x128xf32>
    %68 = arith.addf %63, %67 : vector<8x128xf32>
    %c2_45 = arith.constant 2 : index
    %c0_46 = arith.constant 0 : index
    %69 = vector.load %arg24[%c2_45, %c0_46] : memref<10x160xf32, #tpu.memory_space<vmem>>, vector<8x160xf32>
    %c2_47 = arith.constant 2 : index
    %c0_48 = arith.constant 0 : index
    %c0_49 = arith.constant 0 : index
    %70 = vector.load %arg4[%c2_47, %c0_48, %c0_49] : memref<3x160x128xf32, #tpu.memory_space<vmem>>, vector<1x160x128xf32>
    %71 = vector.shape_cast %70 : vector<1x160x128xf32> to vector<160x128xf32>
    %cst_50 = arith.constant dense<0.000000e+00> : vector<8x128xf32>
    %72 = tpu.matmul %69, %71, %cst_50 {dimension_numbers = #tpu.dot_dimension_numbers<[1], [0], [0], [1], [0, 0, 1, 1], [], []>} : vector<8x160xf32>, vector<160x128xf32>, vector<8x128xf32> -> vector<8x128xf32>
    %73 = arith.addf %68, %72 : vector<8x128xf32>
    %c0_51 = arith.constant 0 : index
    %c0_52 = arith.constant 0 : index
    %74 = vector.load %arg5[%c0_51, %c0_52] : memref<1x128xf32, #tpu.memory_space<vmem>>, vector<1x128xf32>
    %75 = vector.broadcast %74 : vector<1x128xf32> to vector<8x128xf32>
    %76 = arith.addf %73, %75 : vector<8x128xf32>
    %c0_53 = arith.constant 0 : index
    %c0_54 = arith.constant 0 : index
    %77 = vector.load %arg6[%c0_53, %c0_54] : memref<1x1xf32, #tpu.memory_space<vmem>>, vector<1x1xf32>
    %cst_55 = arith.constant 0.000000e+00 : f32
    %78 = vector.broadcast %cst_55 : f32 to vector<8x128xf32>
    %79 = arith.cmpf oge, %76, %78 : vector<8x128xf32>
    %80 = vector.broadcast %77 : vector<1x1xf32> to vector<8x128xf32>
    %81 = arith.mulf %80, %76 : vector<8x128xf32>
    %82 = arith.select %79, %76, %81 : vector<8x128xi1>, vector<8x128xf32>
    %c0_56 = arith.constant 0 : index
    %c0_57 = arith.constant 0 : index
    %c0_58 = arith.constant 0 : index
    %83 = vector.load %arg8[%c0_56, %c0_57, %c0_58] : memref<2x4x8xf32, #tpu.memory_space<vmem>>, vector<1x4x8xf32>
    %84 = vector.shape_cast %83 : vector<1x4x8xf32> to vector<4x8xf32>
    %cst_59 = arith.constant dense<0.000000e+00> : vector<4x128xf32>
    %85 = tpu.matmul %84, %82, %cst_59 {dimension_numbers = #tpu.dot_dimension_numbers<[1], [0], [0], [1], [0, 0, 1, 1], [], []>} : vector<4x8xf32>, vector<8x128xf32>, vector<4x128xf32> -> vector<4x128xf32>
    %c1_60 = arith.constant 1 : index
    %c0_61 = arith.constant 0 : index
    %c0_62 = arith.constant 0 : index
    %86 = vector.load %arg8[%c1_60, %c0_61, %c0_62] : memref<2x4x8xf32, #tpu.memory_space<vmem>>, vector<1x4x8xf32>
    %87 = vector.shape_cast %86 : vector<1x4x8xf32> to vector<4x8xf32>
    %cst_63 = arith.constant dense<0.000000e+00> : vector<4x128xf32>
    %88 = tpu.matmul %87, %82, %cst_63 {dimension_numbers = #tpu.dot_dimension_numbers<[1], [0], [0], [1], [0, 0, 1, 1], [], []>} : vector<4x8xf32>, vector<8x128xf32>, vector<4x128xf32> -> vector<4x128xf32>
    %89 = arith.maximumf %85, %88 : vector<4x128xf32>
    %cst_64 = arith.constant 0.000000e+00 : f32
    %90 = vector.broadcast %cst_64 : f32 to vector<16x16xf32>
    %91 = vector.extract_strided_slice %89 {offsets = [0, 0], sizes = [4, 16], strides = [1, 1]} : vector<4x128xf32> to vector<4x16xf32>
    %92 = vector.extract_strided_slice %89 {offsets = [0, 16], sizes = [4, 16], strides = [1, 1]} : vector<4x128xf32> to vector<4x16xf32>
    %93 = arith.maximumf %91, %92 : vector<4x16xf32>
    %c0_65 = arith.constant 0 : index
    %c0_66 = arith.constant 0 : index
    %c0_67 = arith.constant 0 : index
    %94 = vector.load %arg9[%c0_65, %c0_66, %c0_67] : memref<4x16x4xf32, #tpu.memory_space<vmem>>, vector<1x16x4xf32>
    %95 = vector.shape_cast %94 : vector<1x16x4xf32> to vector<16x4xf32>
    %cst_68 = arith.constant dense<0.000000e+00> : vector<16x16xf32>
    %96 = tpu.matmul %95, %93, %cst_68 {dimension_numbers = #tpu.dot_dimension_numbers<[1], [0], [0], [1], [0, 0, 1, 1], [], []>} : vector<16x4xf32>, vector<4x16xf32>, vector<16x16xf32> -> vector<16x16xf32>
    %97 = arith.addf %90, %96 : vector<16x16xf32>
    %98 = vector.extract_strided_slice %89 {offsets = [0, 32], sizes = [4, 16], strides = [1, 1]} : vector<4x128xf32> to vector<4x16xf32>
    %99 = vector.extract_strided_slice %89 {offsets = [0, 48], sizes = [4, 16], strides = [1, 1]} : vector<4x128xf32> to vector<4x16xf32>
    %100 = arith.maximumf %98, %99 : vector<4x16xf32>
    %c1_69 = arith.constant 1 : index
    %c0_70 = arith.constant 0 : index
    %c0_71 = arith.constant 0 : index
    %101 = vector.load %arg9[%c1_69, %c0_70, %c0_71] : memref<4x16x4xf32, #tpu.memory_space<vmem>>, vector<1x16x4xf32>
    %102 = vector.shape_cast %101 : vector<1x16x4xf32> to vector<16x4xf32>
    %cst_72 = arith.constant dense<0.000000e+00> : vector<16x16xf32>
    %103 = tpu.matmul %102, %100, %cst_72 {dimension_numbers = #tpu.dot_dimension_numbers<[1], [0], [0], [1], [0, 0, 1, 1], [], []>} : vector<16x4xf32>, vector<4x16xf32>, vector<16x16xf32> -> vector<16x16xf32>
    %104 = arith.addf %97, %103 : vector<16x16xf32>
    %105 = vector.extract_strided_slice %89 {offsets = [0, 64], sizes = [4, 16], strides = [1, 1]} : vector<4x128xf32> to vector<4x16xf32>
    %106 = vector.extract_strided_slice %89 {offsets = [0, 80], sizes = [4, 16], strides = [1, 1]} : vector<4x128xf32> to vector<4x16xf32>
    %107 = arith.maximumf %105, %106 : vector<4x16xf32>
    %c2_73 = arith.constant 2 : index
    %c0_74 = arith.constant 0 : index
    %c0_75 = arith.constant 0 : index
    %108 = vector.load %arg9[%c2_73, %c0_74, %c0_75] : memref<4x16x4xf32, #tpu.memory_space<vmem>>, vector<1x16x4xf32>
    %109 = vector.shape_cast %108 : vector<1x16x4xf32> to vector<16x4xf32>
    %cst_76 = arith.constant dense<0.000000e+00> : vector<16x16xf32>
    %110 = tpu.matmul %109, %107, %cst_76 {dimension_numbers = #tpu.dot_dimension_numbers<[1], [0], [0], [1], [0, 0, 1, 1], [], []>} : vector<16x4xf32>, vector<4x16xf32>, vector<16x16xf32> -> vector<16x16xf32>
    %111 = arith.addf %104, %110 : vector<16x16xf32>
    %112 = vector.extract_strided_slice %89 {offsets = [0, 96], sizes = [4, 16], strides = [1, 1]} : vector<4x128xf32> to vector<4x16xf32>
    %113 = vector.extract_strided_slice %89 {offsets = [0, 112], sizes = [4, 16], strides = [1, 1]} : vector<4x128xf32> to vector<4x16xf32>
    %114 = arith.maximumf %112, %113 : vector<4x16xf32>
    %c3 = arith.constant 3 : index
    %c0_77 = arith.constant 0 : index
    %c0_78 = arith.constant 0 : index
    %115 = vector.load %arg9[%c3, %c0_77, %c0_78] : memref<4x16x4xf32, #tpu.memory_space<vmem>>, vector<1x16x4xf32>
    %116 = vector.shape_cast %115 : vector<1x16x4xf32> to vector<16x4xf32>
    %cst_79 = arith.constant dense<0.000000e+00> : vector<16x16xf32>
    %117 = tpu.matmul %116, %114, %cst_79 {dimension_numbers = #tpu.dot_dimension_numbers<[1], [0], [0], [1], [0, 0, 1, 1], [], []>} : vector<16x4xf32>, vector<4x16xf32>, vector<16x16xf32> -> vector<16x16xf32>
    %118 = arith.addf %111, %117 : vector<16x16xf32>
    %cst_80 = arith.constant 0.000000e+00 : f32
    %119 = vector.broadcast %cst_80 : f32 to vector<16x16xf32>
    %c0_81 = arith.constant 0 : index
    %c0_82 = arith.constant 0 : index
    %120 = vector.load %arg17[%c0_81, %c0_82] : memref<1x16xf32, #tpu.memory_space<vmem>>, vector<1x16xf32>
    %121 = vector.broadcast %120 : vector<1x16xf32> to vector<16x16xf32>
    %122 = arith.addf %119, %121 : vector<16x16xf32>
    %c0_83 = arith.constant 0 : index
    %c0_84 = arith.constant 0 : index
    %c0_85 = arith.constant 0 : index
    %123 = vector.load %arg10[%c0_83, %c0_84, %c0_85] : memref<2x16x8xf32, #tpu.memory_space<vmem>>, vector<1x16x8xf32>
    %124 = vector.shape_cast %123 : vector<1x16x8xf32> to vector<16x8xf32>
    %cst_86 = arith.constant dense<0.000000e+00> : vector<16x8xf32>
    %125 = tpu.matmul %118, %124, %cst_86 {dimension_numbers = #tpu.dot_dimension_numbers<[1], [0], [0], [1], [0, 0, 1, 1], [], []>} : vector<16x16xf32>, vector<16x8xf32>, vector<16x8xf32> -> vector<16x8xf32>
    %c0_87 = arith.constant 0 : index
    %c0_88 = arith.constant 0 : index
    %c0_89 = arith.constant 0 : index
    %126 = vector.load %arg11[%c0_87, %c0_88, %c0_89] : memref<2x1x8xf32, #tpu.memory_space<vmem>>, vector<1x1x8xf32>
    %127 = vector.shape_cast %126 : vector<1x1x8xf32> to vector<1x8xf32>
    %128 = vector.broadcast %127 : vector<1x8xf32> to vector<16x8xf32>
    %129 = arith.addf %125, %128 : vector<16x8xf32>
    %c0_90 = arith.constant 0 : index
    %c0_91 = arith.constant 0 : index
    %c0_92 = arith.constant 0 : index
    %130 = vector.load %arg12[%c0_90, %c0_91, %c0_92] : memref<2x16x8xf32, #tpu.memory_space<vmem>>, vector<1x16x8xf32>
    %131 = vector.shape_cast %130 : vector<1x16x8xf32> to vector<16x8xf32>
    %cst_93 = arith.constant dense<0.000000e+00> : vector<16x8xf32>
    %132 = tpu.matmul %118, %131, %cst_93 {dimension_numbers = #tpu.dot_dimension_numbers<[1], [0], [0], [1], [0, 0, 1, 1], [], []>} : vector<16x16xf32>, vector<16x8xf32>, vector<16x8xf32> -> vector<16x8xf32>
    %c0_94 = arith.constant 0 : index
    %c0_95 = arith.constant 0 : index
    %c0_96 = arith.constant 0 : index
    %133 = vector.load %arg13[%c0_94, %c0_95, %c0_96] : memref<2x1x8xf32, #tpu.memory_space<vmem>>, vector<1x1x8xf32>
    %134 = vector.shape_cast %133 : vector<1x1x8xf32> to vector<1x8xf32>
    %135 = vector.broadcast %134 : vector<1x8xf32> to vector<16x8xf32>
    %136 = arith.addf %132, %135 : vector<16x8xf32>
    %c0_97 = arith.constant 0 : index
    %c0_98 = arith.constant 0 : index
    %c0_99 = arith.constant 0 : index
    %137 = vector.load %arg14[%c0_97, %c0_98, %c0_99] : memref<2x16x8xf32, #tpu.memory_space<vmem>>, vector<1x16x8xf32>
    %138 = vector.shape_cast %137 : vector<1x16x8xf32> to vector<16x8xf32>
    %cst_100 = arith.constant dense<0.000000e+00> : vector<16x8xf32>
    %139 = tpu.matmul %118, %138, %cst_100 {dimension_numbers = #tpu.dot_dimension_numbers<[1], [0], [0], [1], [0, 0, 1, 1], [], []>} : vector<16x16xf32>, vector<16x8xf32>, vector<16x8xf32> -> vector<16x8xf32>
    %c0_101 = arith.constant 0 : index
    %c0_102 = arith.constant 0 : index
    %c0_103 = arith.constant 0 : index
    %140 = vector.load %arg15[%c0_101, %c0_102, %c0_103] : memref<2x1x8xf32, #tpu.memory_space<vmem>>, vector<1x1x8xf32>
    %141 = vector.shape_cast %140 : vector<1x1x8xf32> to vector<1x8xf32>
    %142 = vector.broadcast %141 : vector<1x8xf32> to vector<16x8xf32>
    %143 = arith.addf %139, %142 : vector<16x8xf32>
    %cst_104 = arith.constant dense<0.000000e+00> : vector<16x16xf32>
    %144 = tpu.matmul %129, %136, %cst_104 {dimension_numbers = #tpu.dot_dimension_numbers<[1], [1], [0], [0], [0, 0, 1, 0], [], []>} : vector<16x8xf32>, vector<16x8xf32>, vector<16x16xf32> -> vector<16x16xf32>
    %cst_105 = arith.constant 0.353553385 : f32
    %145 = vector.broadcast %cst_105 : f32 to vector<16x16xf32>
    %146 = arith.mulf %144, %145 : vector<16x16xf32>
    %cst_106 = arith.constant dense<0xFF800000> : vector<16xf32>
    %147 = vector.multi_reduction <maximumf>, %146, %cst_106 [1] : vector<16x16xf32> to vector<16xf32>
    %148 = vector.shape_cast %147 : vector<16xf32> to vector<16x1xf32>
    %149 = vector.broadcast %148 : vector<16x1xf32> to vector<16x16xf32>
    %150 = arith.subf %146, %149 : vector<16x16xf32>
    %151 = math.exp %150 : vector<16x16xf32>
    %cst_107 = arith.constant dense<0.000000e+00> : vector<16xf32>
    %152 = vector.multi_reduction <add>, %151, %cst_107 [1] : vector<16x16xf32> to vector<16xf32>
    %153 = vector.shape_cast %152 : vector<16xf32> to vector<16x1xf32>
    %154 = tpu.reciprocal %153 {approx = true} : vector<16x1xf32> -> vector<16x1xf32>
    %155 = vector.broadcast %154 : vector<16x1xf32> to vector<16x16xf32>
    %156 = arith.mulf %151, %155 : vector<16x16xf32>
    %cst_108 = arith.constant dense<0.000000e+00> : vector<16x8xf32>
    %157 = tpu.matmul %156, %143, %cst_108 {dimension_numbers = #tpu.dot_dimension_numbers<[1], [0], [0], [1], [0, 0, 1, 1], [], []>} : vector<16x16xf32>, vector<16x8xf32>, vector<16x8xf32> -> vector<16x8xf32>
    %c0_109 = arith.constant 0 : index
    %c0_110 = arith.constant 0 : index
    %c0_111 = arith.constant 0 : index
    %158 = vector.load %arg16[%c0_109, %c0_110, %c0_111] : memref<2x8x16xf32, #tpu.memory_space<vmem>>, vector<1x8x16xf32>
    %159 = vector.shape_cast %158 : vector<1x8x16xf32> to vector<8x16xf32>
    %cst_112 = arith.constant dense<0.000000e+00> : vector<16x16xf32>
    %160 = tpu.matmul %157, %159, %cst_112 {dimension_numbers = #tpu.dot_dimension_numbers<[1], [0], [0], [1], [0, 0, 1, 1], [], []>} : vector<16x8xf32>, vector<8x16xf32>, vector<16x16xf32> -> vector<16x16xf32>
    %161 = arith.addf %122, %160 : vector<16x16xf32>
    %c1_113 = arith.constant 1 : index
    %c0_114 = arith.constant 0 : index
    %c0_115 = arith.constant 0 : index
    %162 = vector.load %arg10[%c1_113, %c0_114, %c0_115] : memref<2x16x8xf32, #tpu.memory_space<vmem>>, vector<1x16x8xf32>
    %163 = vector.shape_cast %162 : vector<1x16x8xf32> to vector<16x8xf32>
    %cst_116 = arith.constant dense<0.000000e+00> : vector<16x8xf32>
    %164 = tpu.matmul %118, %163, %cst_116 {dimension_numbers = #tpu.dot_dimension_numbers<[1], [0], [0], [1], [0, 0, 1, 1], [], []>} : vector<16x16xf32>, vector<16x8xf32>, vector<16x8xf32> -> vector<16x8xf32>
    %c1_117 = arith.constant 1 : index
    %c0_118 = arith.constant 0 : index
    %c0_119 = arith.constant 0 : index
    %165 = vector.load %arg11[%c1_117, %c0_118, %c0_119] : memref<2x1x8xf32, #tpu.memory_space<vmem>>, vector<1x1x8xf32>
    %166 = vector.shape_cast %165 : vector<1x1x8xf32> to vector<1x8xf32>
    %167 = vector.broadcast %166 : vector<1x8xf32> to vector<16x8xf32>
    %168 = arith.addf %164, %167 : vector<16x8xf32>
    %c1_120 = arith.constant 1 : index
    %c0_121 = arith.constant 0 : index
    %c0_122 = arith.constant 0 : index
    %169 = vector.load %arg12[%c1_120, %c0_121, %c0_122] : memref<2x16x8xf32, #tpu.memory_space<vmem>>, vector<1x16x8xf32>
    %170 = vector.shape_cast %169 : vector<1x16x8xf32> to vector<16x8xf32>
    %cst_123 = arith.constant dense<0.000000e+00> : vector<16x8xf32>
    %171 = tpu.matmul %118, %170, %cst_123 {dimension_numbers = #tpu.dot_dimension_numbers<[1], [0], [0], [1], [0, 0, 1, 1], [], []>} : vector<16x16xf32>, vector<16x8xf32>, vector<16x8xf32> -> vector<16x8xf32>
    %c1_124 = arith.constant 1 : index
    %c0_125 = arith.constant 0 : index
    %c0_126 = arith.constant 0 : index
    %172 = vector.load %arg13[%c1_124, %c0_125, %c0_126] : memref<2x1x8xf32, #tpu.memory_space<vmem>>, vector<1x1x8xf32>
    %173 = vector.shape_cast %172 : vector<1x1x8xf32> to vector<1x8xf32>
    %174 = vector.broadcast %173 : vector<1x8xf32> to vector<16x8xf32>
    %175 = arith.addf %171, %174 : vector<16x8xf32>
    %c1_127 = arith.constant 1 : index
    %c0_128 = arith.constant 0 : index
    %c0_129 = arith.constant 0 : index
    %176 = vector.load %arg14[%c1_127, %c0_128, %c0_129] : memref<2x16x8xf32, #tpu.memory_space<vmem>>, vector<1x16x8xf32>
    %177 = vector.shape_cast %176 : vector<1x16x8xf32> to vector<16x8xf32>
    %cst_130 = arith.constant dense<0.000000e+00> : vector<16x8xf32>
    %178 = tpu.matmul %118, %177, %cst_130 {dimension_numbers = #tpu.dot_dimension_numbers<[1], [0], [0], [1], [0, 0, 1, 1], [], []>} : vector<16x16xf32>, vector<16x8xf32>, vector<16x8xf32> -> vector<16x8xf32>
    %c1_131 = arith.constant 1 : index
    %c0_132 = arith.constant 0 : index
    %c0_133 = arith.constant 0 : index
    %179 = vector.load %arg15[%c1_131, %c0_132, %c0_133] : memref<2x1x8xf32, #tpu.memory_space<vmem>>, vector<1x1x8xf32>
    %180 = vector.shape_cast %179 : vector<1x1x8xf32> to vector<1x8xf32>
    %181 = vector.broadcast %180 : vector<1x8xf32> to vector<16x8xf32>
    %182 = arith.addf %178, %181 : vector<16x8xf32>
    %cst_134 = arith.constant dense<0.000000e+00> : vector<16x16xf32>
    %183 = tpu.matmul %168, %175, %cst_134 {dimension_numbers = #tpu.dot_dimension_numbers<[1], [1], [0], [0], [0, 0, 1, 0], [], []>} : vector<16x8xf32>, vector<16x8xf32>, vector<16x16xf32> -> vector<16x16xf32>
    %cst_135 = arith.constant 0.353553385 : f32
    %184 = vector.broadcast %cst_135 : f32 to vector<16x16xf32>
    %185 = arith.mulf %183, %184 : vector<16x16xf32>
    %cst_136 = arith.constant dense<0xFF800000> : vector<16xf32>
    %186 = vector.multi_reduction <maximumf>, %185, %cst_136 [1] : vector<16x16xf32> to vector<16xf32>
    %187 = vector.shape_cast %186 : vector<16xf32> to vector<16x1xf32>
    %188 = vector.broadcast %187 : vector<16x1xf32> to vector<16x16xf32>
    %189 = arith.subf %185, %188 : vector<16x16xf32>
    %190 = math.exp %189 : vector<16x16xf32>
    %cst_137 = arith.constant dense<0.000000e+00> : vector<16xf32>
    %191 = vector.multi_reduction <add>, %190, %cst_137 [1] : vector<16x16xf32> to vector<16xf32>
    %192 = vector.shape_cast %191 : vector<16xf32> to vector<16x1xf32>
    %193 = tpu.reciprocal %192 {approx = true} : vector<16x1xf32> -> vector<16x1xf32>
    %194 = vector.broadcast %193 : vector<16x1xf32> to vector<16x16xf32>
    %195 = arith.mulf %190, %194 : vector<16x16xf32>
    %cst_138 = arith.constant dense<0.000000e+00> : vector<16x8xf32>
    %196 = tpu.matmul %195, %182, %cst_138 {dimension_numbers = #tpu.dot_dimension_numbers<[1], [0], [0], [1], [0, 0, 1, 1], [], []>} : vector<16x16xf32>, vector<16x8xf32>, vector<16x8xf32> -> vector<16x8xf32>
    %c1_139 = arith.constant 1 : index
    %c0_140 = arith.constant 0 : index
    %c0_141 = arith.constant 0 : index
    %197 = vector.load %arg16[%c1_139, %c0_140, %c0_141] : memref<2x8x16xf32, #tpu.memory_space<vmem>>, vector<1x8x16xf32>
    %198 = vector.shape_cast %197 : vector<1x8x16xf32> to vector<8x16xf32>
    %cst_142 = arith.constant dense<0.000000e+00> : vector<16x16xf32>
    %199 = tpu.matmul %196, %198, %cst_142 {dimension_numbers = #tpu.dot_dimension_numbers<[1], [0], [0], [1], [0, 0, 1, 1], [], []>} : vector<16x8xf32>, vector<8x16xf32>, vector<16x16xf32> -> vector<16x16xf32>
    %200 = arith.addf %161, %199 : vector<16x16xf32>
    %c0_143 = arith.constant 0 : index
    %c0_144 = arith.constant 0 : index
    %201 = vector.load %arg25[%c0_143, %c0_144] : memref<16x16xf32, #tpu.memory_space<vmem>>, vector<16x16xf32>
    tpu.vector_store %arg25[%c0_143, %c0_144], %200 {strides = array<i32>} : memref<16x16xf32, #tpu.memory_space<vmem>>, vector<16x16xf32>,
    %c0_145 = arith.constant 0 : index
    %c0_146 = arith.constant 0 : index
    %202 = vector.load %arg25[%c0_145, %c0_146] : memref<16x16xf32, #tpu.memory_space<vmem>>, vector<1x16xf32>
    %c1_147 = arith.constant 1 : index
    %c0_148 = arith.constant 0 : index
    %203 = vector.load %arg25[%c1_147, %c0_148] : memref<16x16xf32, #tpu.memory_space<vmem>>, vector<1x16xf32>
    %c2_149 = arith.constant 2 : index
    %c0_150 = arith.constant 0 : index
    %204 = vector.load %arg25[%c2_149, %c0_150] : memref<16x16xf32, #tpu.memory_space<vmem>>, vector<1x16xf32>
    %c3_151 = arith.constant 3 : index
    %c0_152 = arith.constant 0 : index
    %205 = vector.load %arg25[%c3_151, %c0_152] : memref<16x16xf32, #tpu.memory_space<vmem>>, vector<1x16xf32>
    %c4 = arith.constant 4 : index
    %c0_153 = arith.constant 0 : index
    %206 = vector.load %arg25[%c4, %c0_153] : memref<16x16xf32, #tpu.memory_space<vmem>>, vector<1x16xf32>
    %c5 = arith.constant 5 : index
    %c0_154 = arith.constant 0 : index
    %207 = vector.load %arg25[%c5, %c0_154] : memref<16x16xf32, #tpu.memory_space<vmem>>, vector<1x16xf32>
    %c6 = arith.constant 6 : index
    %c0_155 = arith.constant 0 : index
    %208 = vector.load %arg25[%c6, %c0_155] : memref<16x16xf32, #tpu.memory_space<vmem>>, vector<1x16xf32>
    %c7 = arith.constant 7 : index
    %c0_156 = arith.constant 0 : index
    %209 = vector.load %arg25[%c7, %c0_156] : memref<16x16xf32, #tpu.memory_space<vmem>>, vector<1x16xf32>
    %c8 = arith.constant 8 : index
    %c0_157 = arith.constant 0 : index
    %210 = vector.load %arg25[%c8, %c0_157] : memref<16x16xf32, #tpu.memory_space<vmem>>, vector<1x16xf32>
    %c9 = arith.constant 9 : index
    %c0_158 = arith.constant 0 : index
    %211 = vector.load %arg25[%c9, %c0_158] : memref<16x16xf32, #tpu.memory_space<vmem>>, vector<1x16xf32>
    %c10 = arith.constant 10 : index
    %c0_159 = arith.constant 0 : index
    %212 = vector.load %arg25[%c10, %c0_159] : memref<16x16xf32, #tpu.memory_space<vmem>>, vector<1x16xf32>
    %c11 = arith.constant 11 : index
    %c0_160 = arith.constant 0 : index
    %213 = vector.load %arg25[%c11, %c0_160] : memref<16x16xf32, #tpu.memory_space<vmem>>, vector<1x16xf32>
    %c12 = arith.constant 12 : index
    %c0_161 = arith.constant 0 : index
    %214 = vector.load %arg25[%c12, %c0_161] : memref<16x16xf32, #tpu.memory_space<vmem>>, vector<1x16xf32>
    %c13 = arith.constant 13 : index
    %c0_162 = arith.constant 0 : index
    %215 = vector.load %arg25[%c13, %c0_162] : memref<16x16xf32, #tpu.memory_space<vmem>>, vector<1x16xf32>
    %c14 = arith.constant 14 : index
    %c0_163 = arith.constant 0 : index
    %216 = vector.load %arg25[%c14, %c0_163] : memref<16x16xf32, #tpu.memory_space<vmem>>, vector<1x16xf32>
    %c15 = arith.constant 15 : index
    %c0_164 = arith.constant 0 : index
    %217 = vector.load %arg25[%c15, %c0_164] : memref<16x16xf32, #tpu.memory_space<vmem>>, vector<1x16xf32>
    %218 = tpu.concatenate %202, %203, %204, %205, %206, %207, %208, %209, %210, %211, %212, %213, %214, %215, %216, %217 in 1 : vector<1x16xf32>, vector<1x16xf32>, vector<1x16xf32>, vector<1x16xf32>, vector<1x16xf32>, vector<1x16xf32>, vector<1x16xf32>, vector<1x16xf32>, vector<1x16xf32>, vector<1x16xf32>, vector<1x16xf32>, vector<1x16xf32>, vector<1x16xf32>, vector<1x16xf32>, vector<1x16xf32>, vector<1x16xf32> -> vector<1x256xf32>
    %c0_165 = arith.constant 0 : index
    %c0_166 = arith.constant 0 : index
    %219 = vector.load %arg18[%c0_165, %c0_166] : memref<256x128xf32, #tpu.memory_space<vmem>>, vector<256x128xf32>
    %cst_167 = arith.constant dense<0.000000e+00> : vector<1x128xf32>
    %220 = tpu.matmul %218, %219, %cst_167 {dimension_numbers = #tpu.dot_dimension_numbers<[1], [0], [0], [1], [0, 0, 1, 1], [], []>} : vector<1x256xf32>, vector<256x128xf32>, vector<1x128xf32> -> vector<1x128xf32>
    %c0_168 = arith.constant 0 : index
    %c0_169 = arith.constant 0 : index
    %221 = vector.load %arg19[%c0_168, %c0_169] : memref<1x128xf32, #tpu.memory_space<vmem>>, vector<1x128xf32>
    %222 = arith.addf %220, %221 : vector<1x128xf32>
    %c0_170 = arith.constant 0 : index
    %c0_171 = arith.constant 0 : index
    %223 = vector.load %arg20[%c0_170, %c0_171] : memref<1x1xf32, #tpu.memory_space<vmem>>, vector<1x1xf32>
    %cst_172 = arith.constant 0.000000e+00 : f32
    %224 = vector.broadcast %cst_172 : f32 to vector<1x128xf32>
    %225 = arith.cmpf oge, %222, %224 : vector<1x128xf32>
    %226 = vector.broadcast %223 : vector<1x1xf32> to vector<1x128xf32>
    %227 = arith.mulf %226, %222 : vector<1x128xf32>
    %228 = arith.select %225, %222, %227 : vector<1x128xi1>, vector<1x128xf32>
    %c0_173 = arith.constant 0 : index
    %c0_174 = arith.constant 0 : index
    %229 = vector.load %arg21[%c0_173, %c0_174] : memref<128x1xf32, #tpu.memory_space<vmem>>, vector<128x1xf32>
    %cst_175 = arith.constant dense<0.000000e+00> : vector<1x1xf32>
    %230 = tpu.matmul %228, %229, %cst_175 {dimension_numbers = #tpu.dot_dimension_numbers<[1], [0], [0], [1], [0, 0, 1, 1], [], []>} : vector<1x128xf32>, vector<128x1xf32>, vector<1x1xf32> -> vector<1x1xf32>
    %c0_176 = arith.constant 0 : index
    %c0_177 = arith.constant 0 : index
    %231 = vector.load %arg22[%c0_176, %c0_177] : memref<1x1xf32, #tpu.memory_space<vmem>>, vector<1x1xf32>
    %232 = arith.addf %230, %231 : vector<1x1xf32>
    %c1_178 = arith.constant 1 : index
    %c0_179 = arith.constant 0 : index
    %c0_180 = arith.constant 0 : index
    %233 = vector.load %arg0[%c1_178, %c0_179, %c0_180] : memref<2x18x72xf32, #tpu.memory_space<vmem>>, vector<1x16x72xf32>
    %234 = vector.shape_cast %233 : vector<1x16x72xf32> to vector<16x72xf32>
    %c0_181 = arith.constant 0 : index
    %c0_182 = arith.constant 0 : index
    %c0_183 = arith.constant 0 : index
    %235 = vector.load %arg1[%c0_181, %c0_182, %c0_183] : memref<3x72x256xf32, #tpu.memory_space<vmem>>, vector<1x72x256xf32>
    %236 = vector.shape_cast %235 : vector<1x72x256xf32> to vector<72x256xf32>
    %cst_184 = arith.constant dense<0.000000e+00> : vector<16x256xf32>
    %237 = tpu.matmul %234, %236, %cst_184 {dimension_numbers = #tpu.dot_dimension_numbers<[1], [0], [0], [1], [0, 0, 1, 1], [], []>} : vector<16x72xf32>, vector<72x256xf32>, vector<16x256xf32> -> vector<16x256xf32>
    %c1_185 = arith.constant 1 : index
    %c1_186 = arith.constant 1 : index
    %c0_187 = arith.constant 0 : index
    %238 = vector.load %arg0[%c1_185, %c1_186, %c0_187] : memref<2x18x72xf32, #tpu.memory_space<vmem>>, vector<1x16x72xf32>
    %239 = vector.shape_cast %238 : vector<1x16x72xf32> to vector<16x72xf32>
    %c1_188 = arith.constant 1 : index
    %c0_189 = arith.constant 0 : index
    %c0_190 = arith.constant 0 : index
    %240 = vector.load %arg1[%c1_188, %c0_189, %c0_190] : memref<3x72x256xf32, #tpu.memory_space<vmem>>, vector<1x72x256xf32>
    %241 = vector.shape_cast %240 : vector<1x72x256xf32> to vector<72x256xf32>
    %cst_191 = arith.constant dense<0.000000e+00> : vector<16x256xf32>
    %242 = tpu.matmul %239, %241, %cst_191 {dimension_numbers = #tpu.dot_dimension_numbers<[1], [0], [0], [1], [0, 0, 1, 1], [], []>} : vector<16x72xf32>, vector<72x256xf32>, vector<16x256xf32> -> vector<16x256xf32>
    %243 = arith.addf %237, %242 : vector<16x256xf32>
    %c1_192 = arith.constant 1 : index
    %c2_193 = arith.constant 2 : index
    %c0_194 = arith.constant 0 : index
    %244 = vector.load %arg0[%c1_192, %c2_193, %c0_194] : memref<2x18x72xf32, #tpu.memory_space<vmem>>, vector<1x16x72xf32>
    %245 = vector.shape_cast %244 : vector<1x16x72xf32> to vector<16x72xf32>
    %c2_195 = arith.constant 2 : index
    %c0_196 = arith.constant 0 : index
    %c0_197 = arith.constant 0 : index
    %246 = vector.load %arg1[%c2_195, %c0_196, %c0_197] : memref<3x72x256xf32, #tpu.memory_space<vmem>>, vector<1x72x256xf32>
    %247 = vector.shape_cast %246 : vector<1x72x256xf32> to vector<72x256xf32>
    %cst_198 = arith.constant dense<0.000000e+00> : vector<16x256xf32>
    %248 = tpu.matmul %245, %247, %cst_198 {dimension_numbers = #tpu.dot_dimension_numbers<[1], [0], [0], [1], [0, 0, 1, 1], [], []>} : vector<16x72xf32>, vector<72x256xf32>, vector<16x256xf32> -> vector<16x256xf32>
    %249 = arith.addf %243, %248 : vector<16x256xf32>
    %c0_199 = arith.constant 0 : index
    %c0_200 = arith.constant 0 : index
    %250 = vector.load %arg2[%c0_199, %c0_200] : memref<1x256xf32, #tpu.memory_space<vmem>>, vector<1x256xf32>
    %251 = vector.broadcast %250 : vector<1x256xf32> to vector<16x256xf32>
    %252 = arith.addf %249, %251 : vector<16x256xf32>
    %c0_201 = arith.constant 0 : index
    %c0_202 = arith.constant 0 : index
    %253 = vector.load %arg3[%c0_201, %c0_202] : memref<1x1xf32, #tpu.memory_space<vmem>>, vector<1x1xf32>
    %cst_203 = arith.constant 0.000000e+00 : f32
    %254 = vector.broadcast %cst_203 : f32 to vector<16x256xf32>
    %255 = arith.cmpf oge, %252, %254 : vector<16x256xf32>
    %256 = vector.broadcast %253 : vector<1x1xf32> to vector<16x256xf32>
    %257 = arith.mulf %256, %252 : vector<16x256xf32>
    %258 = arith.select %255, %252, %257 : vector<16x256xi1>, vector<16x256xf32>
    %c0_204 = arith.constant 0 : index
    %c0_205 = arith.constant 0 : index
    %c0_206 = arith.constant 0 : index
    %259 = vector.load %arg7[%c0_204, %c0_205, %c0_206] : memref<2x10x16xf32, #tpu.memory_space<vmem>>, vector<1x10x16xf32>
    %260 = vector.shape_cast %259 : vector<1x10x16xf32> to vector<10x16xf32>
    %cst_207 = arith.constant dense<0.000000e+00> : vector<10x256xf32>
    %261 = tpu.matmul %260, %258, %cst_207 {dimension_numbers = #tpu.dot_dimension_numbers<[1], [0], [0], [1], [0, 0, 1, 1], [], []>} : vector<10x16xf32>, vector<16x256xf32>, vector<10x256xf32> -> vector<10x256xf32>
    %c1_208 = arith.constant 1 : index
    %c0_209 = arith.constant 0 : index
    %c0_210 = arith.constant 0 : index
    %262 = vector.load %arg7[%c1_208, %c0_209, %c0_210] : memref<2x10x16xf32, #tpu.memory_space<vmem>>, vector<1x10x16xf32>
    %263 = vector.shape_cast %262 : vector<1x10x16xf32> to vector<10x16xf32>
    %cst_211 = arith.constant dense<0.000000e+00> : vector<10x256xf32>
    %264 = tpu.matmul %263, %258, %cst_211 {dimension_numbers = #tpu.dot_dimension_numbers<[1], [0], [0], [1], [0, 0, 1, 1], [], []>} : vector<10x16xf32>, vector<16x256xf32>, vector<10x256xf32> -> vector<10x256xf32>
    %265 = arith.maximumf %261, %264 : vector<10x256xf32>
    %cst_212 = arith.constant 0.000000e+00 : f32
    %266 = vector.broadcast %cst_212 : f32 to vector<10x16xf32>
    %267 = vector.extract_strided_slice %265 {offsets = [0, 0], sizes = [10, 16], strides = [1, 1]} : vector<10x256xf32> to vector<10x16xf32>
    %268 = vector.extract_strided_slice %265 {offsets = [0, 16], sizes = [10, 16], strides = [1, 1]} : vector<10x256xf32> to vector<10x16xf32>
    %269 = arith.maximumf %267, %268 : vector<10x16xf32>
    %270 = vector.extract_strided_slice %265 {offsets = [0, 32], sizes = [10, 16], strides = [1, 1]} : vector<10x256xf32> to vector<10x16xf32>
    %271 = vector.extract_strided_slice %265 {offsets = [0, 48], sizes = [10, 16], strides = [1, 1]} : vector<10x256xf32> to vector<10x16xf32>
    %272 = arith.maximumf %270, %271 : vector<10x16xf32>
    %273 = vector.extract_strided_slice %265 {offsets = [0, 64], sizes = [10, 16], strides = [1, 1]} : vector<10x256xf32> to vector<10x16xf32>
    %274 = vector.extract_strided_slice %265 {offsets = [0, 80], sizes = [10, 16], strides = [1, 1]} : vector<10x256xf32> to vector<10x16xf32>
    %275 = arith.maximumf %273, %274 : vector<10x16xf32>
    %276 = vector.extract_strided_slice %265 {offsets = [0, 96], sizes = [10, 16], strides = [1, 1]} : vector<10x256xf32> to vector<10x16xf32>
    %277 = vector.extract_strided_slice %265 {offsets = [0, 112], sizes = [10, 16], strides = [1, 1]} : vector<10x256xf32> to vector<10x16xf32>
    %278 = arith.maximumf %276, %277 : vector<10x16xf32>
    %279 = vector.extract_strided_slice %265 {offsets = [0, 128], sizes = [10, 16], strides = [1, 1]} : vector<10x256xf32> to vector<10x16xf32>
    %280 = vector.extract_strided_slice %265 {offsets = [0, 144], sizes = [10, 16], strides = [1, 1]} : vector<10x256xf32> to vector<10x16xf32>
    %281 = arith.maximumf %279, %280 : vector<10x16xf32>
    %282 = vector.extract_strided_slice %265 {offsets = [0, 160], sizes = [10, 16], strides = [1, 1]} : vector<10x256xf32> to vector<10x16xf32>
    %283 = vector.extract_strided_slice %265 {offsets = [0, 176], sizes = [10, 16], strides = [1, 1]} : vector<10x256xf32> to vector<10x16xf32>
    %284 = arith.maximumf %282, %283 : vector<10x16xf32>
    %285 = vector.extract_strided_slice %265 {offsets = [0, 192], sizes = [10, 16], strides = [1, 1]} : vector<10x256xf32> to vector<10x16xf32>
    %286 = vector.extract_strided_slice %265 {offsets = [0, 208], sizes = [10, 16], strides = [1, 1]} : vector<10x256xf32> to vector<10x16xf32>
    %287 = arith.maximumf %285, %286 : vector<10x16xf32>
    %288 = vector.extract_strided_slice %265 {offsets = [0, 224], sizes = [10, 16], strides = [1, 1]} : vector<10x256xf32> to vector<10x16xf32>
    %289 = vector.extract_strided_slice %265 {offsets = [0, 240], sizes = [10, 16], strides = [1, 1]} : vector<10x256xf32> to vector<10x16xf32>
    %290 = arith.maximumf %288, %289 : vector<10x16xf32>
    %291 = tpu.concatenate %266, %269, %272, %275, %278, %281, %284, %287, %290, %266 in 1 : vector<10x16xf32>, vector<10x16xf32>, vector<10x16xf32>, vector<10x16xf32>, vector<10x16xf32>, vector<10x16xf32>, vector<10x16xf32>, vector<10x16xf32>, vector<10x16xf32>, vector<10x16xf32> -> vector<10x160xf32>
    %c0_213 = arith.constant 0 : index
    %c0_214 = arith.constant 0 : index
    %292 = vector.load %arg24[%c0_213, %c0_214] : memref<10x160xf32, #tpu.memory_space<vmem>>, vector<10x160xf32>
    tpu.vector_store %arg24[%c0_213, %c0_214], %291 {strides = array<i32>} : memref<10x160xf32, #tpu.memory_space<vmem>>, vector<10x160xf32>,
    %c0_215 = arith.constant 0 : index
    %c0_216 = arith.constant 0 : index
    %293 = vector.load %arg24[%c0_215, %c0_216] : memref<10x160xf32, #tpu.memory_space<vmem>>, vector<8x160xf32>
    %c0_217 = arith.constant 0 : index
    %c0_218 = arith.constant 0 : index
    %c0_219 = arith.constant 0 : index
    %294 = vector.load %arg4[%c0_217, %c0_218, %c0_219] : memref<3x160x128xf32, #tpu.memory_space<vmem>>, vector<1x160x128xf32>
    %295 = vector.shape_cast %294 : vector<1x160x128xf32> to vector<160x128xf32>
    %cst_220 = arith.constant dense<0.000000e+00> : vector<8x128xf32>
    %296 = tpu.matmul %293, %295, %cst_220 {dimension_numbers = #tpu.dot_dimension_numbers<[1], [0], [0], [1], [0, 0, 1, 1], [], []>} : vector<8x160xf32>, vector<160x128xf32>, vector<8x128xf32> -> vector<8x128xf32>
    %c1_221 = arith.constant 1 : index
    %c0_222 = arith.constant 0 : index
    %297 = vector.load %arg24[%c1_221, %c0_222] : memref<10x160xf32, #tpu.memory_space<vmem>>, vector<8x160xf32>
    %c1_223 = arith.constant 1 : index
    %c0_224 = arith.constant 0 : index
    %c0_225 = arith.constant 0 : index
    %298 = vector.load %arg4[%c1_223, %c0_224, %c0_225] : memref<3x160x128xf32, #tpu.memory_space<vmem>>, vector<1x160x128xf32>
    %299 = vector.shape_cast %298 : vector<1x160x128xf32> to vector<160x128xf32>
    %cst_226 = arith.constant dense<0.000000e+00> : vector<8x128xf32>
    %300 = tpu.matmul %297, %299, %cst_226 {dimension_numbers = #tpu.dot_dimension_numbers<[1], [0], [0], [1], [0, 0, 1, 1], [], []>} : vector<8x160xf32>, vector<160x128xf32>, vector<8x128xf32> -> vector<8x128xf32>
    %301 = arith.addf %296, %300 : vector<8x128xf32>
    %c2_227 = arith.constant 2 : index
    %c0_228 = arith.constant 0 : index
    %302 = vector.load %arg24[%c2_227, %c0_228] : memref<10x160xf32, #tpu.memory_space<vmem>>, vector<8x160xf32>
    %c2_229 = arith.constant 2 : index
    %c0_230 = arith.constant 0 : index
    %c0_231 = arith.constant 0 : index
    %303 = vector.load %arg4[%c2_229, %c0_230, %c0_231] : memref<3x160x128xf32, #tpu.memory_space<vmem>>, vector<1x160x128xf32>
    %304 = vector.shape_cast %303 : vector<1x160x128xf32> to vector<160x128xf32>
    %cst_232 = arith.constant dense<0.000000e+00> : vector<8x128xf32>
    %305 = tpu.matmul %302, %304, %cst_232 {dimension_numbers = #tpu.dot_dimension_numbers<[1], [0], [0], [1], [0, 0, 1, 1], [], []>} : vector<8x160xf32>, vector<160x128xf32>, vector<8x128xf32> -> vector<8x128xf32>
    %306 = arith.addf %301, %305 : vector<8x128xf32>
    %c0_233 = arith.constant 0 : index
    %c0_234 = arith.constant 0 : index
    %307 = vector.load %arg5[%c0_233, %c0_234] : memref<1x128xf32, #tpu.memory_space<vmem>>, vector<1x128xf32>
    %308 = vector.broadcast %307 : vector<1x128xf32> to vector<8x128xf32>
    %309 = arith.addf %306, %308 : vector<8x128xf32>
    %c0_235 = arith.constant 0 : index
    %c0_236 = arith.constant 0 : index
    %310 = vector.load %arg6[%c0_235, %c0_236] : memref<1x1xf32, #tpu.memory_space<vmem>>, vector<1x1xf32>
    %cst_237 = arith.constant 0.000000e+00 : f32
    %311 = vector.broadcast %cst_237 : f32 to vector<8x128xf32>
    %312 = arith.cmpf oge, %309, %311 : vector<8x128xf32>
    %313 = vector.broadcast %310 : vector<1x1xf32> to vector<8x128xf32>
    %314 = arith.mulf %313, %309 : vector<8x128xf32>
    %315 = arith.select %312, %309, %314 : vector<8x128xi1>, vector<8x128xf32>
    %c0_238 = arith.constant 0 : index
    %c0_239 = arith.constant 0 : index
    %c0_240 = arith.constant 0 : index
    %316 = vector.load %arg8[%c0_238, %c0_239, %c0_240] : memref<2x4x8xf32, #tpu.memory_space<vmem>>, vector<1x4x8xf32>
    %317 = vector.shape_cast %316 : vector<1x4x8xf32> to vector<4x8xf32>
    %cst_241 = arith.constant dense<0.000000e+00> : vector<4x128xf32>
    %318 = tpu.matmul %317, %315, %cst_241 {dimension_numbers = #tpu.dot_dimension_numbers<[1], [0], [0], [1], [0, 0, 1, 1], [], []>} : vector<4x8xf32>, vector<8x128xf32>, vector<4x128xf32> -> vector<4x128xf32>
    %c1_242 = arith.constant 1 : index
    %c0_243 = arith.constant 0 : index
    %c0_244 = arith.constant 0 : index
    %319 = vector.load %arg8[%c1_242, %c0_243, %c0_244] : memref<2x4x8xf32, #tpu.memory_space<vmem>>, vector<1x4x8xf32>
    %320 = vector.shape_cast %319 : vector<1x4x8xf32> to vector<4x8xf32>
    %cst_245 = arith.constant dense<0.000000e+00> : vector<4x128xf32>
    %321 = tpu.matmul %320, %315, %cst_245 {dimension_numbers = #tpu.dot_dimension_numbers<[1], [0], [0], [1], [0, 0, 1, 1], [], []>} : vector<4x8xf32>, vector<8x128xf32>, vector<4x128xf32> -> vector<4x128xf32>
    %322 = arith.maximumf %318, %321 : vector<4x128xf32>
    %cst_246 = arith.constant 0.000000e+00 : f32
    %323 = vector.broadcast %cst_246 : f32 to vector<16x16xf32>
    %324 = vector.extract_strided_slice %322 {offsets = [0, 0], sizes = [4, 16], strides = [1, 1]} : vector<4x128xf32> to vector<4x16xf32>
    %325 = vector.extract_strided_slice %322 {offsets = [0, 16], sizes = [4, 16], strides = [1, 1]} : vector<4x128xf32> to vector<4x16xf32>
    %326 = arith.maximumf %324, %325 : vector<4x16xf32>
    %c0_247 = arith.constant 0 : index
    %c0_248 = arith.constant 0 : index
    %c0_249 = arith.constant 0 : index
    %327 = vector.load %arg9[%c0_247, %c0_248, %c0_249] : memref<4x16x4xf32, #tpu.memory_space<vmem>>, vector<1x16x4xf32>
    %328 = vector.shape_cast %327 : vector<1x16x4xf32> to vector<16x4xf32>
    %cst_250 = arith.constant dense<0.000000e+00> : vector<16x16xf32>
    %329 = tpu.matmul %328, %326, %cst_250 {dimension_numbers = #tpu.dot_dimension_numbers<[1], [0], [0], [1], [0, 0, 1, 1], [], []>} : vector<16x4xf32>, vector<4x16xf32>, vector<16x16xf32> -> vector<16x16xf32>
    %330 = arith.addf %323, %329 : vector<16x16xf32>
    %331 = vector.extract_strided_slice %322 {offsets = [0, 32], sizes = [4, 16], strides = [1, 1]} : vector<4x128xf32> to vector<4x16xf32>
    %332 = vector.extract_strided_slice %322 {offsets = [0, 48], sizes = [4, 16], strides = [1, 1]} : vector<4x128xf32> to vector<4x16xf32>
    %333 = arith.maximumf %331, %332 : vector<4x16xf32>
    %c1_251 = arith.constant 1 : index
    %c0_252 = arith.constant 0 : index
    %c0_253 = arith.constant 0 : index
    %334 = vector.load %arg9[%c1_251, %c0_252, %c0_253] : memref<4x16x4xf32, #tpu.memory_space<vmem>>, vector<1x16x4xf32>
    %335 = vector.shape_cast %334 : vector<1x16x4xf32> to vector<16x4xf32>
    %cst_254 = arith.constant dense<0.000000e+00> : vector<16x16xf32>
    %336 = tpu.matmul %335, %333, %cst_254 {dimension_numbers = #tpu.dot_dimension_numbers<[1], [0], [0], [1], [0, 0, 1, 1], [], []>} : vector<16x4xf32>, vector<4x16xf32>, vector<16x16xf32> -> vector<16x16xf32>
    %337 = arith.addf %330, %336 : vector<16x16xf32>
    %338 = vector.extract_strided_slice %322 {offsets = [0, 64], sizes = [4, 16], strides = [1, 1]} : vector<4x128xf32> to vector<4x16xf32>
    %339 = vector.extract_strided_slice %322 {offsets = [0, 80], sizes = [4, 16], strides = [1, 1]} : vector<4x128xf32> to vector<4x16xf32>
    %340 = arith.maximumf %338, %339 : vector<4x16xf32>
    %c2_255 = arith.constant 2 : index
    %c0_256 = arith.constant 0 : index
    %c0_257 = arith.constant 0 : index
    %341 = vector.load %arg9[%c2_255, %c0_256, %c0_257] : memref<4x16x4xf32, #tpu.memory_space<vmem>>, vector<1x16x4xf32>
    %342 = vector.shape_cast %341 : vector<1x16x4xf32> to vector<16x4xf32>
    %cst_258 = arith.constant dense<0.000000e+00> : vector<16x16xf32>
    %343 = tpu.matmul %342, %340, %cst_258 {dimension_numbers = #tpu.dot_dimension_numbers<[1], [0], [0], [1], [0, 0, 1, 1], [], []>} : vector<16x4xf32>, vector<4x16xf32>, vector<16x16xf32> -> vector<16x16xf32>
    %344 = arith.addf %337, %343 : vector<16x16xf32>
    %345 = vector.extract_strided_slice %322 {offsets = [0, 96], sizes = [4, 16], strides = [1, 1]} : vector<4x128xf32> to vector<4x16xf32>
    %346 = vector.extract_strided_slice %322 {offsets = [0, 112], sizes = [4, 16], strides = [1, 1]} : vector<4x128xf32> to vector<4x16xf32>
    %347 = arith.maximumf %345, %346 : vector<4x16xf32>
    %c3_259 = arith.constant 3 : index
    %c0_260 = arith.constant 0 : index
    %c0_261 = arith.constant 0 : index
    %348 = vector.load %arg9[%c3_259, %c0_260, %c0_261] : memref<4x16x4xf32, #tpu.memory_space<vmem>>, vector<1x16x4xf32>
    %349 = vector.shape_cast %348 : vector<1x16x4xf32> to vector<16x4xf32>
    %cst_262 = arith.constant dense<0.000000e+00> : vector<16x16xf32>
    %350 = tpu.matmul %349, %347, %cst_262 {dimension_numbers = #tpu.dot_dimension_numbers<[1], [0], [0], [1], [0, 0, 1, 1], [], []>} : vector<16x4xf32>, vector<4x16xf32>, vector<16x16xf32> -> vector<16x16xf32>
    %351 = arith.addf %344, %350 : vector<16x16xf32>
    %cst_263 = arith.constant 0.000000e+00 : f32
    %352 = vector.broadcast %cst_263 : f32 to vector<16x16xf32>
    %c0_264 = arith.constant 0 : index
    %c0_265 = arith.constant 0 : index
    %353 = vector.load %arg17[%c0_264, %c0_265] : memref<1x16xf32, #tpu.memory_space<vmem>>, vector<1x16xf32>
    %354 = vector.broadcast %353 : vector<1x16xf32> to vector<16x16xf32>
    %355 = arith.addf %352, %354 : vector<16x16xf32>
    %c0_266 = arith.constant 0 : index
    %c0_267 = arith.constant 0 : index
    %c0_268 = arith.constant 0 : index
    %356 = vector.load %arg10[%c0_266, %c0_267, %c0_268] : memref<2x16x8xf32, #tpu.memory_space<vmem>>, vector<1x16x8xf32>
    %357 = vector.shape_cast %356 : vector<1x16x8xf32> to vector<16x8xf32>
    %cst_269 = arith.constant dense<0.000000e+00> : vector<16x8xf32>
    %358 = tpu.matmul %351, %357, %cst_269 {dimension_numbers = #tpu.dot_dimension_numbers<[1], [0], [0], [1], [0, 0, 1, 1], [], []>} : vector<16x16xf32>, vector<16x8xf32>, vector<16x8xf32> -> vector<16x8xf32>
    %c0_270 = arith.constant 0 : index
    %c0_271 = arith.constant 0 : index
    %c0_272 = arith.constant 0 : index
    %359 = vector.load %arg11[%c0_270, %c0_271, %c0_272] : memref<2x1x8xf32, #tpu.memory_space<vmem>>, vector<1x1x8xf32>
    %360 = vector.shape_cast %359 : vector<1x1x8xf32> to vector<1x8xf32>
    %361 = vector.broadcast %360 : vector<1x8xf32> to vector<16x8xf32>
    %362 = arith.addf %358, %361 : vector<16x8xf32>
    %c0_273 = arith.constant 0 : index
    %c0_274 = arith.constant 0 : index
    %c0_275 = arith.constant 0 : index
    %363 = vector.load %arg12[%c0_273, %c0_274, %c0_275] : memref<2x16x8xf32, #tpu.memory_space<vmem>>, vector<1x16x8xf32>
    %364 = vector.shape_cast %363 : vector<1x16x8xf32> to vector<16x8xf32>
    %cst_276 = arith.constant dense<0.000000e+00> : vector<16x8xf32>
    %365 = tpu.matmul %351, %364, %cst_276 {dimension_numbers = #tpu.dot_dimension_numbers<[1], [0], [0], [1], [0, 0, 1, 1], [], []>} : vector<16x16xf32>, vector<16x8xf32>, vector<16x8xf32> -> vector<16x8xf32>
    %c0_277 = arith.constant 0 : index
    %c0_278 = arith.constant 0 : index
    %c0_279 = arith.constant 0 : index
    %366 = vector.load %arg13[%c0_277, %c0_278, %c0_279] : memref<2x1x8xf32, #tpu.memory_space<vmem>>, vector<1x1x8xf32>
    %367 = vector.shape_cast %366 : vector<1x1x8xf32> to vector<1x8xf32>
    %368 = vector.broadcast %367 : vector<1x8xf32> to vector<16x8xf32>
    %369 = arith.addf %365, %368 : vector<16x8xf32>
    %c0_280 = arith.constant 0 : index
    %c0_281 = arith.constant 0 : index
    %c0_282 = arith.constant 0 : index
    %370 = vector.load %arg14[%c0_280, %c0_281, %c0_282] : memref<2x16x8xf32, #tpu.memory_space<vmem>>, vector<1x16x8xf32>
    %371 = vector.shape_cast %370 : vector<1x16x8xf32> to vector<16x8xf32>
    %cst_283 = arith.constant dense<0.000000e+00> : vector<16x8xf32>
    %372 = tpu.matmul %351, %371, %cst_283 {dimension_numbers = #tpu.dot_dimension_numbers<[1], [0], [0], [1], [0, 0, 1, 1], [], []>} : vector<16x16xf32>, vector<16x8xf32>, vector<16x8xf32> -> vector<16x8xf32>
    %c0_284 = arith.constant 0 : index
    %c0_285 = arith.constant 0 : index
    %c0_286 = arith.constant 0 : index
    %373 = vector.load %arg15[%c0_284, %c0_285, %c0_286] : memref<2x1x8xf32, #tpu.memory_space<vmem>>, vector<1x1x8xf32>
    %374 = vector.shape_cast %373 : vector<1x1x8xf32> to vector<1x8xf32>
    %375 = vector.broadcast %374 : vector<1x8xf32> to vector<16x8xf32>
    %376 = arith.addf %372, %375 : vector<16x8xf32>
    %cst_287 = arith.constant dense<0.000000e+00> : vector<16x16xf32>
    %377 = tpu.matmul %362, %369, %cst_287 {dimension_numbers = #tpu.dot_dimension_numbers<[1], [1], [0], [0], [0, 0, 1, 0], [], []>} : vector<16x8xf32>, vector<16x8xf32>, vector<16x16xf32> -> vector<16x16xf32>
    %cst_288 = arith.constant 0.353553385 : f32
    %378 = vector.broadcast %cst_288 : f32 to vector<16x16xf32>
    %379 = arith.mulf %377, %378 : vector<16x16xf32>
    %cst_289 = arith.constant dense<0xFF800000> : vector<16xf32>
    %380 = vector.multi_reduction <maximumf>, %379, %cst_289 [1] : vector<16x16xf32> to vector<16xf32>
    %381 = vector.shape_cast %380 : vector<16xf32> to vector<16x1xf32>
    %382 = vector.broadcast %381 : vector<16x1xf32> to vector<16x16xf32>
    %383 = arith.subf %379, %382 : vector<16x16xf32>
    %384 = math.exp %383 : vector<16x16xf32>
    %cst_290 = arith.constant dense<0.000000e+00> : vector<16xf32>
    %385 = vector.multi_reduction <add>, %384, %cst_290 [1] : vector<16x16xf32> to vector<16xf32>
    %386 = vector.shape_cast %385 : vector<16xf32> to vector<16x1xf32>
    %387 = tpu.reciprocal %386 {approx = true} : vector<16x1xf32> -> vector<16x1xf32>
    %388 = vector.broadcast %387 : vector<16x1xf32> to vector<16x16xf32>
    %389 = arith.mulf %384, %388 : vector<16x16xf32>
    %cst_291 = arith.constant dense<0.000000e+00> : vector<16x8xf32>
    %390 = tpu.matmul %389, %376, %cst_291 {dimension_numbers = #tpu.dot_dimension_numbers<[1], [0], [0], [1], [0, 0, 1, 1], [], []>} : vector<16x16xf32>, vector<16x8xf32>, vector<16x8xf32> -> vector<16x8xf32>
    %c0_292 = arith.constant 0 : index
    %c0_293 = arith.constant 0 : index
    %c0_294 = arith.constant 0 : index
    %391 = vector.load %arg16[%c0_292, %c0_293, %c0_294] : memref<2x8x16xf32, #tpu.memory_space<vmem>>, vector<1x8x16xf32>
    %392 = vector.shape_cast %391 : vector<1x8x16xf32> to vector<8x16xf32>
    %cst_295 = arith.constant dense<0.000000e+00> : vector<16x16xf32>
    %393 = tpu.matmul %390, %392, %cst_295 {dimension_numbers = #tpu.dot_dimension_numbers<[1], [0], [0], [1], [0, 0, 1, 1], [], []>} : vector<16x8xf32>, vector<8x16xf32>, vector<16x16xf32> -> vector<16x16xf32>
    %394 = arith.addf %355, %393 : vector<16x16xf32>
    %c1_296 = arith.constant 1 : index
    %c0_297 = arith.constant 0 : index
    %c0_298 = arith.constant 0 : index
    %395 = vector.load %arg10[%c1_296, %c0_297, %c0_298] : memref<2x16x8xf32, #tpu.memory_space<vmem>>, vector<1x16x8xf32>
    %396 = vector.shape_cast %395 : vector<1x16x8xf32> to vector<16x8xf32>
    %cst_299 = arith.constant dense<0.000000e+00> : vector<16x8xf32>
    %397 = tpu.matmul %351, %396, %cst_299 {dimension_numbers = #tpu.dot_dimension_numbers<[1], [0], [0], [1], [0, 0, 1, 1], [], []>} : vector<16x16xf32>, vector<16x8xf32>, vector<16x8xf32> -> vector<16x8xf32>
    %c1_300 = arith.constant 1 : index
    %c0_301 = arith.constant 0 : index
    %c0_302 = arith.constant 0 : index
    %398 = vector.load %arg11[%c1_300, %c0_301, %c0_302] : memref<2x1x8xf32, #tpu.memory_space<vmem>>, vector<1x1x8xf32>
    %399 = vector.shape_cast %398 : vector<1x1x8xf32> to vector<1x8xf32>
    %400 = vector.broadcast %399 : vector<1x8xf32> to vector<16x8xf32>
    %401 = arith.addf %397, %400 : vector<16x8xf32>
    %c1_303 = arith.constant 1 : index
    %c0_304 = arith.constant 0 : index
    %c0_305 = arith.constant 0 : index
    %402 = vector.load %arg12[%c1_303, %c0_304, %c0_305] : memref<2x16x8xf32, #tpu.memory_space<vmem>>, vector<1x16x8xf32>
    %403 = vector.shape_cast %402 : vector<1x16x8xf32> to vector<16x8xf32>
    %cst_306 = arith.constant dense<0.000000e+00> : vector<16x8xf32>
    %404 = tpu.matmul %351, %403, %cst_306 {dimension_numbers = #tpu.dot_dimension_numbers<[1], [0], [0], [1], [0, 0, 1, 1], [], []>} : vector<16x16xf32>, vector<16x8xf32>, vector<16x8xf32> -> vector<16x8xf32>
    %c1_307 = arith.constant 1 : index
    %c0_308 = arith.constant 0 : index
    %c0_309 = arith.constant 0 : index
    %405 = vector.load %arg13[%c1_307, %c0_308, %c0_309] : memref<2x1x8xf32, #tpu.memory_space<vmem>>, vector<1x1x8xf32>
    %406 = vector.shape_cast %405 : vector<1x1x8xf32> to vector<1x8xf32>
    %407 = vector.broadcast %406 : vector<1x8xf32> to vector<16x8xf32>
    %408 = arith.addf %404, %407 : vector<16x8xf32>
    %c1_310 = arith.constant 1 : index
    %c0_311 = arith.constant 0 : index
    %c0_312 = arith.constant 0 : index
    %409 = vector.load %arg14[%c1_310, %c0_311, %c0_312] : memref<2x16x8xf32, #tpu.memory_space<vmem>>, vector<1x16x8xf32>
    %410 = vector.shape_cast %409 : vector<1x16x8xf32> to vector<16x8xf32>
    %cst_313 = arith.constant dense<0.000000e+00> : vector<16x8xf32>
    %411 = tpu.matmul %351, %410, %cst_313 {dimension_numbers = #tpu.dot_dimension_numbers<[1], [0], [0], [1], [0, 0, 1, 1], [], []>} : vector<16x16xf32>, vector<16x8xf32>, vector<16x8xf32> -> vector<16x8xf32>
    %c1_314 = arith.constant 1 : index
    %c0_315 = arith.constant 0 : index
    %c0_316 = arith.constant 0 : index
    %412 = vector.load %arg15[%c1_314, %c0_315, %c0_316] : memref<2x1x8xf32, #tpu.memory_space<vmem>>, vector<1x1x8xf32>
    %413 = vector.shape_cast %412 : vector<1x1x8xf32> to vector<1x8xf32>
    %414 = vector.broadcast %413 : vector<1x8xf32> to vector<16x8xf32>
    %415 = arith.addf %411, %414 : vector<16x8xf32>
    %cst_317 = arith.constant dense<0.000000e+00> : vector<16x16xf32>
    %416 = tpu.matmul %401, %408, %cst_317 {dimension_numbers = #tpu.dot_dimension_numbers<[1], [1], [0], [0], [0, 0, 1, 0], [], []>} : vector<16x8xf32>, vector<16x8xf32>, vector<16x16xf32> -> vector<16x16xf32>
    %cst_318 = arith.constant 0.353553385 : f32
    %417 = vector.broadcast %cst_318 : f32 to vector<16x16xf32>
    %418 = arith.mulf %416, %417 : vector<16x16xf32>
    %cst_319 = arith.constant dense<0xFF800000> : vector<16xf32>
    %419 = vector.multi_reduction <maximumf>, %418, %cst_319 [1] : vector<16x16xf32> to vector<16xf32>
    %420 = vector.shape_cast %419 : vector<16xf32> to vector<16x1xf32>
    %421 = vector.broadcast %420 : vector<16x1xf32> to vector<16x16xf32>
    %422 = arith.subf %418, %421 : vector<16x16xf32>
    %423 = math.exp %422 : vector<16x16xf32>
    %cst_320 = arith.constant dense<0.000000e+00> : vector<16xf32>
    %424 = vector.multi_reduction <add>, %423, %cst_320 [1] : vector<16x16xf32> to vector<16xf32>
    %425 = vector.shape_cast %424 : vector<16xf32> to vector<16x1xf32>
    %426 = tpu.reciprocal %425 {approx = true} : vector<16x1xf32> -> vector<16x1xf32>
    %427 = vector.broadcast %426 : vector<16x1xf32> to vector<16x16xf32>
    %428 = arith.mulf %423, %427 : vector<16x16xf32>
    %cst_321 = arith.constant dense<0.000000e+00> : vector<16x8xf32>
    %429 = tpu.matmul %428, %415, %cst_321 {dimension_numbers = #tpu.dot_dimension_numbers<[1], [0], [0], [1], [0, 0, 1, 1], [], []>} : vector<16x16xf32>, vector<16x8xf32>, vector<16x8xf32> -> vector<16x8xf32>
    %c1_322 = arith.constant 1 : index
    %c0_323 = arith.constant 0 : index
    %c0_324 = arith.constant 0 : index
    %430 = vector.load %arg16[%c1_322, %c0_323, %c0_324] : memref<2x8x16xf32, #tpu.memory_space<vmem>>, vector<1x8x16xf32>
    %431 = vector.shape_cast %430 : vector<1x8x16xf32> to vector<8x16xf32>
    %cst_325 = arith.constant dense<0.000000e+00> : vector<16x16xf32>
    %432 = tpu.matmul %429, %431, %cst_325 {dimension_numbers = #tpu.dot_dimension_numbers<[1], [0], [0], [1], [0, 0, 1, 1], [], []>} : vector<16x8xf32>, vector<8x16xf32>, vector<16x16xf32> -> vector<16x16xf32>
    %433 = arith.addf %394, %432 : vector<16x16xf32>
    %c0_326 = arith.constant 0 : index
    %c0_327 = arith.constant 0 : index
    %434 = vector.load %arg25[%c0_326, %c0_327] : memref<16x16xf32, #tpu.memory_space<vmem>>, vector<16x16xf32>
    tpu.vector_store %arg25[%c0_326, %c0_327], %433 {strides = array<i32>} : memref<16x16xf32, #tpu.memory_space<vmem>>, vector<16x16xf32>,
    %c0_328 = arith.constant 0 : index
    %c0_329 = arith.constant 0 : index
    %435 = vector.load %arg25[%c0_328, %c0_329] : memref<16x16xf32, #tpu.memory_space<vmem>>, vector<1x16xf32>
    %c1_330 = arith.constant 1 : index
    %c0_331 = arith.constant 0 : index
    %436 = vector.load %arg25[%c1_330, %c0_331] : memref<16x16xf32, #tpu.memory_space<vmem>>, vector<1x16xf32>
    %c2_332 = arith.constant 2 : index
    %c0_333 = arith.constant 0 : index
    %437 = vector.load %arg25[%c2_332, %c0_333] : memref<16x16xf32, #tpu.memory_space<vmem>>, vector<1x16xf32>
    %c3_334 = arith.constant 3 : index
    %c0_335 = arith.constant 0 : index
    %438 = vector.load %arg25[%c3_334, %c0_335] : memref<16x16xf32, #tpu.memory_space<vmem>>, vector<1x16xf32>
    %c4_336 = arith.constant 4 : index
    %c0_337 = arith.constant 0 : index
    %439 = vector.load %arg25[%c4_336, %c0_337] : memref<16x16xf32, #tpu.memory_space<vmem>>, vector<1x16xf32>
    %c5_338 = arith.constant 5 : index
    %c0_339 = arith.constant 0 : index
    %440 = vector.load %arg25[%c5_338, %c0_339] : memref<16x16xf32, #tpu.memory_space<vmem>>, vector<1x16xf32>
    %c6_340 = arith.constant 6 : index
    %c0_341 = arith.constant 0 : index
    %441 = vector.load %arg25[%c6_340, %c0_341] : memref<16x16xf32, #tpu.memory_space<vmem>>, vector<1x16xf32>
    %c7_342 = arith.constant 7 : index
    %c0_343 = arith.constant 0 : index
    %442 = vector.load %arg25[%c7_342, %c0_343] : memref<16x16xf32, #tpu.memory_space<vmem>>, vector<1x16xf32>
    %c8_344 = arith.constant 8 : index
    %c0_345 = arith.constant 0 : index
    %443 = vector.load %arg25[%c8_344, %c0_345] : memref<16x16xf32, #tpu.memory_space<vmem>>, vector<1x16xf32>
    %c9_346 = arith.constant 9 : index
    %c0_347 = arith.constant 0 : index
    %444 = vector.load %arg25[%c9_346, %c0_347] : memref<16x16xf32, #tpu.memory_space<vmem>>, vector<1x16xf32>
    %c10_348 = arith.constant 10 : index
    %c0_349 = arith.constant 0 : index
    %445 = vector.load %arg25[%c10_348, %c0_349] : memref<16x16xf32, #tpu.memory_space<vmem>>, vector<1x16xf32>
    %c11_350 = arith.constant 11 : index
    %c0_351 = arith.constant 0 : index
    %446 = vector.load %arg25[%c11_350, %c0_351] : memref<16x16xf32, #tpu.memory_space<vmem>>, vector<1x16xf32>
    %c12_352 = arith.constant 12 : index
    %c0_353 = arith.constant 0 : index
    %447 = vector.load %arg25[%c12_352, %c0_353] : memref<16x16xf32, #tpu.memory_space<vmem>>, vector<1x16xf32>
    %c13_354 = arith.constant 13 : index
    %c0_355 = arith.constant 0 : index
    %448 = vector.load %arg25[%c13_354, %c0_355] : memref<16x16xf32, #tpu.memory_space<vmem>>, vector<1x16xf32>
    %c14_356 = arith.constant 14 : index
    %c0_357 = arith.constant 0 : index
    %449 = vector.load %arg25[%c14_356, %c0_357] : memref<16x16xf32, #tpu.memory_space<vmem>>, vector<1x16xf32>
    %c15_358 = arith.constant 15 : index
    %c0_359 = arith.constant 0 : index
    %450 = vector.load %arg25[%c15_358, %c0_359] : memref<16x16xf32, #tpu.memory_space<vmem>>, vector<1x16xf32>
    %451 = tpu.concatenate %435, %436, %437, %438, %439, %440, %441, %442, %443, %444, %445, %446, %447, %448, %449, %450 in 1 : vector<1x16xf32>, vector<1x16xf32>, vector<1x16xf32>, vector<1x16xf32>, vector<1x16xf32>, vector<1x16xf32>, vector<1x16xf32>, vector<1x16xf32>, vector<1x16xf32>, vector<1x16xf32>, vector<1x16xf32>, vector<1x16xf32>, vector<1x16xf32>, vector<1x16xf32>, vector<1x16xf32>, vector<1x16xf32> -> vector<1x256xf32>
    %c0_360 = arith.constant 0 : index
    %c0_361 = arith.constant 0 : index
    %452 = vector.load %arg18[%c0_360, %c0_361] : memref<256x128xf32, #tpu.memory_space<vmem>>, vector<256x128xf32>
    %cst_362 = arith.constant dense<0.000000e+00> : vector<1x128xf32>
    %453 = tpu.matmul %451, %452, %cst_362 {dimension_numbers = #tpu.dot_dimension_numbers<[1], [0], [0], [1], [0, 0, 1, 1], [], []>} : vector<1x256xf32>, vector<256x128xf32>, vector<1x128xf32> -> vector<1x128xf32>
    %c0_363 = arith.constant 0 : index
    %c0_364 = arith.constant 0 : index
    %454 = vector.load %arg19[%c0_363, %c0_364] : memref<1x128xf32, #tpu.memory_space<vmem>>, vector<1x128xf32>
    %455 = arith.addf %453, %454 : vector<1x128xf32>
    %c0_365 = arith.constant 0 : index
    %c0_366 = arith.constant 0 : index
    %456 = vector.load %arg20[%c0_365, %c0_366] : memref<1x1xf32, #tpu.memory_space<vmem>>, vector<1x1xf32>
    %cst_367 = arith.constant 0.000000e+00 : f32
    %457 = vector.broadcast %cst_367 : f32 to vector<1x128xf32>
    %458 = arith.cmpf oge, %455, %457 : vector<1x128xf32>
    %459 = vector.broadcast %456 : vector<1x1xf32> to vector<1x128xf32>
    %460 = arith.mulf %459, %455 : vector<1x128xf32>
    %461 = arith.select %458, %455, %460 : vector<1x128xi1>, vector<1x128xf32>
    %c0_368 = arith.constant 0 : index
    %c0_369 = arith.constant 0 : index
    %462 = vector.load %arg21[%c0_368, %c0_369] : memref<128x1xf32, #tpu.memory_space<vmem>>, vector<128x1xf32>
    %cst_370 = arith.constant dense<0.000000e+00> : vector<1x1xf32>
    %463 = tpu.matmul %461, %462, %cst_370 {dimension_numbers = #tpu.dot_dimension_numbers<[1], [0], [0], [1], [0, 0, 1, 1], [], []>} : vector<1x128xf32>, vector<128x1xf32>, vector<1x1xf32> -> vector<1x1xf32>
    %c0_371 = arith.constant 0 : index
    %c0_372 = arith.constant 0 : index
    %464 = vector.load %arg22[%c0_371, %c0_372] : memref<1x1xf32, #tpu.memory_space<vmem>>, vector<1x1xf32>
    %465 = arith.addf %463, %464 : vector<1x1xf32>
    %466 = tpu.concatenate %232, %465 in 1 : vector<1x1xf32>, vector<1x1xf32> -> vector<1x2xf32>
    %c0_373 = arith.constant 0 : index
    %c0_374 = arith.constant 0 : index
    %467 = vector.load %arg23[%c0_373, %c0_374] : memref<1x2xf32, #tpu.memory_space<vmem>>, vector<1x2xf32>
    tpu.vector_store %arg23[%c0_373, %c0_374], %466 {strides = array<i32>} : memref<1x2xf32, #tpu.memory_space<vmem>>, vector<1x2xf32>,
    return
  }
}

</mosaic_0001>

<bundles_post_ra>
// kernel: tile.13
= control target key start
LH: loop header
LB: loop body
LE: loop exit
PB: predicated region body
PF: predicated region fallthrough
CT: control target
= control target key end

     0   :  { %s28_s0 = inlined_call_operand.vmem [shape: f32[16], index: 0, kind: input, shape index: {}]   ;;  %s29_s1 = inlined_call_operand.vmem [shape: f32[16,16], index: 1, kind: output, shape index: {}]  }
   0x1   :  { %v4_v0 = vld [vmem:[%s28_s0] ss:$0 sm:$0xff] }
   0x2   :  { %5 = vst [vmem:[%s29_s1] sm:$0xff] %v4_v0  ;;  %8 = vst [vmem:[%s29_s1 + $0x8] sm:$0xff] %v4_v0 }

// kernel: tile.14
= control target key start
LH: loop header
LB: loop body
LE: loop exit
PB: predicated region body
PF: predicated region fallthrough
CT: control target
= control target key end

     0   :  { %s7_s6 = smov 3  ;;  %s21_s9 = smov 3  ;;  %vm4_vm0 = vcmask 130048   ;;  %vm11_vm1 = vcmask 1048448   ;;  %vm18_vm2 = vcmask 917248   ;;  %vm25_vm3 = vcmask 786048   ;;  %s131_s0 = inlined_call_operand.vmem [shape: f32[16,16], index: 0, kind: input, shape index: {}]   ;;  %s132_s1 = inlined_call_operand.vmem [shape: f32[1,256], index: 1, kind: output, shape index: {}]  }
   0x1   :  { %v69_v0 = vld [vmem:[%s131_s0 + $0x7] ss:$8 sm:%s7_s6]   ;;  %s84_s10 = smov 112   ;;  %v71_v1 = vld [vmem:[%s131_s0 + $0x5] ss:$8 sm:%s21_s9]   ;;  %s14_s13 = smov 3 }
   0x2   :  { %9 = vrot.lane.b32.xlu0 %v69_v0, %s84_s10  ;;  %s85_s14 = smov 80   ;;  %v70_v2 = vld [vmem:[%s131_s0 + $0x6] ss:$8 sm:%s14_s13]   ;;  %s28_s17 = smov 3  ;;  %vm32_vm4 = vcmask 654848   ;;  %vm39_vm5 = vcmask 523648  }
   0x3   :  { %23 = vrot.lane.b32.xlu1 %v71_v1, %s85_s14  ;;  %v72_v3 = vld [vmem:[%s131_s0 + $0x4] ss:$8 sm:%s28_s17]   ;;  %s35_s20 = smov 3  ;;  %s42_s21 = smov 3  ;;  %vm46_vm6 = vcmask 392448   ;;  %vm53_vm7 = vcmask 261248  }
   0x4   :  { %s86_s22 = smov 96   ;;  %s87_s23 = smov 64   ;;  %v73_v4 = vld [vmem:[%s131_s0 + $0x3] ss:$8 sm:%s35_s20]   ;;  %v74_v5 = vld [vmem:[%s131_s0 + $0x2] ss:$8 sm:%s42_s21]  }
   0x5   :  { %s2_s26 = smov 3  ;;  %s49_s29 = smov 3 }
   0x6   :  { %16 = vrot.lane.b32.xlu0 %v70_v2, %s86_s22  ;;  %v3_v6 = vld [vmem:[%s131_s0] ss:$8 sm:%s2_s26]   ;;  %s88_s3 = smov 48   ;;  %s89_s4 = smov 32  }
   0x7   :  { %30 = vrot.lane.b32.xlu1 %v72_v3, %s87_s23  ;;  %5 = vst.msk [vmem:[#allocation0] ss:$8 sm:$0x3] %vm4_vm0, %v3_v6   ;;  %v75_v7 = vld [vmem:[%s131_s0 + $0x1] ss:$8 sm:%s49_s29]   ;;  %s90_s0 = smov 16  }
   0xa   :  { %37 = vrot.lane.b32.xlu0 %v73_v4, %s88_s3 }
   0xb   :  { %44 = vrot.lane.b32.xlu1 %v74_v5, %s89_s4 }
   0xe   :  { %51 = vrot.lane.b32.xlu0 %v75_v7, %s90_s0 }
  0x74   :  { %v10_v8 = vpop.permute.xlu0 %9  }
  0x75   :  { %12 = vst.msk [vmem:[#allocation0] ss:$8 sm:$0x3] %vm11_vm1, %v10_v8   ;;  %v24_v9 = vpop.permute.xlu1 %23  }
  0x78   :  { %v17_v10 = vpop.permute.xlu0 %16  }
  0x79   :  { %19 = vst.msk [vmem:[#allocation0] ss:$8 sm:$0x3] %vm18_vm2, %v17_v10   ;;  %v31_v11 = vpop.permute.xlu1 %30  }
  0x7a   :  { %26 = vst.msk [vmem:[#allocation0] ss:$8 sm:$0x3] %vm25_vm3, %v24_v9  }
  0x7b   :  { %33 = vst.msk [vmem:[#allocation0] ss:$8 sm:$0x3] %vm32_vm4, %v31_v11  }
  0x7c   :  { %v38_v12 = vpop.permute.xlu0 %37  }
  0x7d   :  { %40 = vst.msk [vmem:[#allocation0] ss:$8 sm:$0x3] %vm39_vm5, %v38_v12   ;;  %v45_v13 = vpop.permute.xlu1 %44  }
  0x7e   :  { %47 = vst.msk [vmem:[#allocation0] ss:$8 sm:$0x3] %vm46_vm6, %v45_v13  }
  0x80   :  { %v52_v14 = vpop.permute.xlu0 %51  }
  0x81   :  { %54 = vst.msk [vmem:[#allocation0] ss:$8 sm:$0x3] %vm53_vm7, %v52_v14  }
  0x88   :  { %v59_v15 = vld [vmem:[#allocation0] sm:$0x1]  ;;  %v64_v16 = vld [vmem:[#allocation0 + $0x8] sm:$0x1] }
  0x89   :  { %62 = vst [vmem:[%s132_s1] sm:$0x1] %v59_v15  ;;  %76 = vst [vmem:[%s132_s1 + $0x1] sm:$0x1] %v64_v16 }

// kernel: tile.18
= control target key start
LH: loop header
LB: loop body
LE: loop exit
PB: predicated region body
PF: predicated region fallthrough
CT: control target
= control target key end

     0   :  { %s22_s0 = inlined_call_operand.vmem [shape: f32[16], index: 0, kind: input, shape index: {}]   ;;  %s23_s1 = inlined_call_operand.vmem [shape: f32[8,16], index: 1, kind: output, shape index: {}]  }
   0x1   :  { %v4_v0 = vld [vmem:[%s22_s0] ss:$0 sm:$0xff] }
   0x2   :  { %5 = vst [vmem:[%s23_s1] sm:$0xff] %v4_v0 }

// kernel: tile.19
= control target key start
LH: loop header
LB: loop body
LE: loop exit
PB: predicated region body
PF: predicated region fallthrough
CT: control target
= control target key end

     0   :  { %s69_s10 = smov 112   ;;  %s70_s11 = smov 80   ;;  %vm3_vm0 = vcmask 130048   ;;  %vm9_vm1 = vcmask 1048448   ;;  %vm15_vm2 = vcmask 917248   ;;  %vm21_vm3 = vcmask 786048   ;;  %s113_s0 = inlined_call_operand.vmem [shape: f32[8,16], index: 0, kind: input, shape index: {}]   ;;  %s114_s1 = inlined_call_operand.vmem [shape: f32[1,128], index: 1, kind: output, shape index: {}]  }
   0x1   :  { %v55_v0 = vld [vmem:[%s113_s0 + $0x7] sm:$0x1]   ;;  %v57_v1 = vld [vmem:[%s113_s0 + $0x5] sm:$0x1]   ;;  %v56_v2 = vld [vmem:[%s113_s0 + $0x6] sm:$0x1]  }
   0x2   :  { %7 = vrot.lane.b32.xlu0 %v55_v0, %s69_s10  ;;  %19 = vrot.lane.b32.xlu1 %v57_v1, %s70_s11  ;;  %v58_v3 = vld [vmem:[%s113_s0 + $0x4] sm:$0x1]   ;;  %v2_v4 = vld [vmem:[%s113_s0] sm:$0x1]   ;;  %s71_s18 = smov 96   ;;  %s72_s19 = smov 64  }
   0x3   :  { %4 = vst.msk [vmem:[#allocation0] sm:$0x1] %vm3_vm0, %v2_v4   ;;  %v59_v5 = vld [vmem:[%s113_s0 + $0x3] sm:$0x1]   ;;  %v60_v6 = vld [vmem:[%s113_s0 + $0x2] sm:$0x1]  }
   0x4   :  { %s73_s24 = smov 48   ;;  %s74_s25 = smov 32   ;;  %v61_v7 = vld [vmem:[%s113_s0 + $0x1] sm:$0x1]   ;;  %vm27_vm4 = vcmask 654848   ;;  %vm33_vm5 = vcmask 523648  }
   0x5   :  { %s75_s0 = smov 16   ;;  %vm39_vm6 = vcmask 392448   ;;  %vm45_vm7 = vcmask 261248  }
   0x6   :  { %13 = vrot.lane.b32.xlu0 %v56_v2, %s71_s18  ;;  %25 = vrot.lane.b32.xlu1 %v58_v3, %s72_s19 }
   0xa   :  { %31 = vrot.lane.b32.xlu0 %v59_v5, %s73_s24  ;;  %37 = vrot.lane.b32.xlu1 %v60_v6, %s74_s25 }
   0xe   :  { %43 = vrot.lane.b32.xlu0 %v61_v7, %s75_s0 }
  0x74   :  { %v8_v8 = vpop.permute.xlu0 %7   ;;  %v20_v9 = vpop.permute.xlu1 %19  }
  0x75   :  { %10 = vst.msk [vmem:[#allocation0] sm:$0x1] %vm9_vm1, %v8_v8  }
  0x78   :  { %v14_v10 = vpop.permute.xlu0 %13   ;;  %v26_v11 = vpop.permute.xlu1 %25  }
  0x79   :  { %16 = vst.msk [vmem:[#allocation0] sm:$0x1] %vm15_vm2, %v14_v10  }
  0x7a   :  { %22 = vst.msk [vmem:[#allocation0] sm:$0x1] %vm21_vm3, %v20_v9  }
  0x7b   :  { %28 = vst.msk [vmem:[#allocation0] sm:$0x1] %vm27_vm4, %v26_v11  }
  0x7c   :  { %v32_v12 = vpop.permute.xlu0 %31   ;;  %v38_v13 = vpop.permute.xlu1 %37  }
  0x7d   :  { %34 = vst.msk [vmem:[#allocation0] sm:$0x1] %vm33_vm5, %v32_v12  }
  0x7e   :  { %40 = vst.msk [vmem:[#allocation0] sm:$0x1] %vm39_vm6, %v38_v13  }
  0x80   :  { %v44_v14 = vpop.permute.xlu0 %43  }
  0x81   :  { %46 = vst.msk [vmem:[#allocation0] sm:$0x1] %vm45_vm7, %v44_v14  }
  0x88   :  { %v51_v15 = vld [vmem:[#allocation0] sm:$0x1] }
  0x89   :  { %54 = vst [vmem:[%s114_s1] sm:$0x1] %v51_v15 }

// kernel: critic_forward.1
= control target key start
LH: loop header
LB: loop body
LE: loop exit
PB: predicated region body
PF: predicated region fallthrough
CT: control target
= control target key end

     0   :  { %s8692_s0 = inlined_call_operand.vmem [shape: f32[2,18,72], index: 0, kind: input, shape index: {}]   ;;  %s8693_s1 = inlined_call_operand.vmem [shape: f32[3,72,256], index: 1, kind: input, shape index: {}]   ;;  %s8694_s2 = inlined_call_operand.vmem [shape: f32[1,256], index: 2, kind: input, shape index: {}]   ;;  %s8695_s3 = inlined_call_operand.<no memory space> [shape: f32[1,1], index: 3, kind: input, shape index: {}]   ;;  %s8696_s4 = inlined_call_operand.vmem [shape: f32[3,160,128], index: 4, kind: input, shape index: {}]   ;;  %s8697_s5 = inlined_call_operand.vmem [shape: f32[1,128], index: 5, kind: input, shape index: {}]   ;;  %s8698_s7 = inlined_call_operand.vmem [shape: f32[2,10,16], index: 7, kind: input, shape index: {}]   ;;  %s8699_s8 = inlined_call_operand.vmem [shape: f32[2,4,8], index: 8, kind: input, shape index: {}]   ;;  %s8700_s9 = inlined_call_operand.vmem [shape: f32[4,16,4], index: 9, kind: input, shape index: {}]   ;;  %s8701_s10 = inlined_call_operand.vmem [shape: f32[2,16,8], index: 10, kind: input, shape index: {}]   ;;  %s8702_s11 = inlined_call_operand.vmem [shape: f32[2,1,8], index: 11, kind: input, shape index: {}]   ;;  %s8703_s12 = inlined_call_operand.vmem [shape: f32[2,16,8], index: 12, kind: input, shape index: {}]   ;;  %s8704_s13 = inlined_call_operand.vmem [shape: f32[2,1,8], index: 13, kind: input, shape index: {}]   ;;  %s8705_s14 = inlined_call_operand.vmem [shape: f32[2,16,8], index: 14, kind: input, shape index: {}]   ;;  %s8706_s15 = inlined_call_operand.vmem [shape: f32[2,1,8], index: 15, kind: input, shape index: {}]   ;;  %s8707_s16 = inlined_call_operand.vmem [shape: f32[2,8,16], index: 16, kind: input, shape index: {}]   ;;  %s8708_s17 = inlined_call_operand.vmem [shape: f32[1,16], index: 17, kind: input, shape index: {}]   ;;  %s8709_s18 = inlined_call_operand.vmem [shape: f32[256,128], index: 18, kind: input, shape index: {}]   ;;  %s8710_s19 = inlined_call_operand.vmem [shape: f32[1,128], index: 19, kind: input, shape index: {}]   ;;  %s8711_s21 = inlined_call_operand.vmem [shape: f32[128,1], index: 21, kind: input, shape index: {}]   ;;  %s8712_s23 = inlined_call_operand.hbm [shape: f32[1,2], index: 23, kind: output, shape index: {}]   ;;  %s8713_s6 = inlined_call_operand.<no memory space> [shape: f32[1,1], index: 6, kind: input, shape index: {}]   ;;  %s8714_s20 = inlined_call_operand.<no memory space> [shape: f32[1,1], index: 20, kind: input, shape index: {}]   ;;  %s8715_s22 = inlined_call_operand.<no memory space> [shape: f32[1,1], index: 22, kind: input, shape index: {}]  }
   0x1   :  { %8746 = sst [smem:[#allocation11_spill]] %s8692_s0  ;;  %v30_v1 = vstv %s8713_s6  ;;  %v32_v2 = vstv %s8714_s20  ;;  %v34_v3 = vstv %s8715_s22 }
   0x2   :  { %8747 = sst [smem:[#allocation12_spill]] %s8693_s1  ;;  %31 = vst [vmem:[#allocation5] sm:$0x1] %v30_v1  ;;  %33 = vst [vmem:[#allocation6] sm:$0x1] %v32_v2 }
   0x3   :  { %8748 = sst [smem:[#allocation13_spill]] %s8694_s2  ;;  %35 = vst [vmem:[#allocation7] sm:$0x1] %v34_v3 }
   0x4   :  { %8749 = sst [smem:[#allocation14_spill]] %s8695_s3 }
   0x5   :  { %8750 = sst [smem:[#allocation15_spill]] %s8696_s4 }
   0x6   :  { %8751 = sst [smem:[#allocation16_spill]] %s8697_s5 }
   0x7   :  { %8752 = sst [smem:[#allocation17_spill]] %s8698_s7 }
   0x8   :  { %8753 = sst [smem:[#allocation18_spill]] %s8699_s8 }
   0x9   :  { %8754 = sst [smem:[#allocation19_spill]] %s8706_s15 }
   0xa   :  { %8755 = sst [smem:[#allocation20_spill]] %s8707_s16 }
   0xb   :  { %8756 = sst [smem:[#allocation21_spill]] %s8708_s17 }
   0xc   :  { %8757 = sst [smem:[#allocation22_spill]] %s8709_s18 }
   0xd   :  { %8758 = sst [smem:[#allocation23_spill]] %s8712_s23 }
   0xe   :  { %s8759_s24 = sld [smem:[#allocation14_spill]] }
  0x14   :  { %v28_v0 = vstv %s8759_s24 }
  0x15   :  { %29 = vst [vmem:[#allocation4] sm:$0x1] %v28_v0 }
  0x16   :  { %s8760_s28 = sld [smem:[#allocation12_spill]]  ;;  %vm124_vm0 = vcmask 588800   ;;  %v6734_v42 = vmov 0.0  }
  0x17   :  { %s8761_s20 = sld [smem:[#allocation11_spill]]  ;;  %195 = vmatprep.mubr.f32.mxu0 %v6734_v42  ;;  %278 = vmatprep.mubr.f32.mxu1 %v6734_v42 }
  0x1c   :  { %v5769_v4 = vld [vmem:[%s8760_s28 + $0x118] sm:$0xff]  ;;  %v102_v5 = vld [vmem:[%s8760_s28 + $0x88] sm:$0xff]  ;;  %v5768_v6 = vld [vmem:[%s8760_s28 + $0x110] sm:$0xff] }
  0x1d   :  { %145 = vmatprep.subr.mxu0 %v5769_v4  ;;  %228 = vmatprep.subr.mxu1 %v102_v5  ;;  %v101_v7 = vld [vmem:[%s8760_s28 + $0x80] sm:$0xff]  ;;  %v5767_v8 = vld [vmem:[%s8760_s28 + $0x108] sm:$0xff]  ;;  %v100_v9 = vld [vmem:[%s8760_s28 + $0x78] sm:$0xff] }
  0x1e   :  { %146 = vmatpush1.msra.mxu0 %v5768_v6  ;;  %229 = vmatpush1.msra.mxu1 %v101_v7  ;;  %v5766_v10 = vld [vmem:[%s8760_s28 + $0x100] sm:$0xff]  ;;  %v99_v11 = vld [vmem:[%s8760_s28 + $0x70] sm:$0xff]  ;;  %v5765_v12 = vld [vmem:[%s8760_s28 + $0xf8] sm:$0xff] }
  0x1f   :  { %147 = vmatprep.subr.mxu0 %v5767_v8  ;;  %230 = vmatprep.subr.mxu1 %v100_v9  ;;  %v98_v13 = vld [vmem:[%s8760_s28 + $0x68] sm:$0xff]  ;;  %v5764_v14 = vld [vmem:[%s8760_s28 + $0xf0] sm:$0xff]  ;;  %v97_v15 = vld [vmem:[%s8760_s28 + $0x60] sm:$0xff] }
  0x20   :  { %148 = vmatpush1.msra.mxu0 %v5766_v10  ;;  %231 = vmatpush1.msra.mxu1 %v99_v11  ;;  %v5763_v16 = vld [vmem:[%s8760_s28 + $0xe8] sm:$0xff]  ;;  %v96_v17 = vld [vmem:[%s8760_s28 + $0x58] sm:$0xff]  ;;  %v5762_v18 = vld [vmem:[%s8760_s28 + $0xe0] sm:$0xff] }
  0x21   :  { %149 = vmatprep.subr.mxu0 %v5765_v12  ;;  %232 = vmatprep.subr.mxu1 %v98_v13  ;;  %v95_v19 = vld [vmem:[%s8760_s28 + $0x50] sm:$0xff]  ;;  %v5761_v20 = vld [vmem:[%s8760_s28 + $0xd8] sm:$0xff]  ;;  %v94_v21 = vld [vmem:[%s8760_s28 + $0x48] sm:$0xff] }
  0x22   :  { %150 = vmatpush1.msra.mxu0 %v5764_v14  ;;  %233 = vmatpush1.msra.mxu1 %v97_v15  ;;  %v5760_v22 = vld [vmem:[%s8760_s28 + $0xd0] sm:$0xff]  ;;  %v93_v23 = vld [vmem:[%s8760_s28 + $0x40] sm:$0xff]  ;;  %v5759_v24 = vld [vmem:[%s8760_s28 + $0xc8] sm:$0xff] }
  0x23   :  { %151 = vmatprep.subr.mxu0 %v5763_v16  ;;  %234 = vmatprep.subr.mxu1 %v96_v17  ;;  %v92_v25 = vld [vmem:[%s8760_s28 + $0x38] sm:$0xff]  ;;  %v5758_v26 = vld [vmem:[%s8760_s28 + $0xc0] sm:$0xff]  ;;  %v91_v27 = vld [vmem:[%s8760_s28 + $0x30] sm:$0xff] }
  0x24   :  { %152 = vmatpush1.msra.mxu0 %v5762_v18  ;;  %235 = vmatpush1.msra.mxu1 %v95_v19  ;;  %v5757_v28 = vld [vmem:[%s8760_s28 + $0xb8] sm:$0xff]  ;;  %v90_v29 = vld [vmem:[%s8760_s28 + $0x28] sm:$0xff]  ;;  %v5756_v30 = vld [vmem:[%s8760_s28 + $0xb0] sm:$0xff] }
  0x25   :  { %153 = vmatprep.subr.mxu0 %v5761_v20  ;;  %236 = vmatprep.subr.mxu1 %v94_v21  ;;  %v89_v31 = vld [vmem:[%s8760_s28 + $0x20] sm:$0xff]  ;;  %v5755_v32 = vld [vmem:[%s8760_s28 + $0xa8] sm:$0xff]  ;;  %v88_v33 = vld [vmem:[%s8760_s28 + $0x18] sm:$0xff] }
  0x26   :  { %154 = vmatpush1.msra.mxu0 %v5760_v22  ;;  %237 = vmatpush1.msra.mxu1 %v93_v23  ;;  %v5754_v34 = vld [vmem:[%s8760_s28 + $0xa0] sm:$0xff]  ;;  %v87_v35 = vld [vmem:[%s8760_s28 + $0x10] sm:$0xff]  ;;  %v5753_v36 = vld [vmem:[%s8760_s28 + $0x98] sm:$0xff] }
  0x27   :  { %155 = vmatprep.subr.mxu0 %v5759_v24  ;;  %238 = vmatprep.subr.mxu1 %v92_v25  ;;  %v86_v37 = vld [vmem:[%s8760_s28 + $0x8] sm:$0xff]  ;;  %v5752_v38 = vld [vmem:[%s8760_s28 + $0x90] sm:$0xff]  ;;  %v85_v39 = vld [vmem:[%s8760_s28] sm:$0xff] }
  0x28   :  { %156 = vmatpush1.msra.mxu0 %v5758_v26  ;;  %239 = vmatpush1.msra.mxu1 %v91_v27  ;;  %v103_v40 = vld [vmem:[%s8761_s20 + $0x1] sm:$0xff]  ;;  %v5789_v45 = vld [vmem:[%s8760_s28 + $0x198] sm:$0xff] }
  0x29   :  { %157 = vmatprep.subr.mxu0 %v5757_v28  ;;  %240 = vmatprep.subr.mxu1 %v90_v29  ;;  %v83_v41 = vld [vmem:[%s8761_s20] sm:$0xff]  ;;  %v5791_v43 = vld [vmem:[%s8760_s28 + $0x1a8] sm:$0xff] }
  0x2a   :  { %158 = vmatpush1.msra.mxu0 %v5756_v30  ;;  %241 = vmatpush1.msra.mxu1 %v89_v31  ;;  %v5790_v44 = vld [vmem:[%s8760_s28 + $0x1a0] sm:$0xff] }
  0x2b   :  { %159 = vmatprep.subr.mxu0 %v5755_v32  ;;  %242 = vmatprep.subr.mxu1 %v88_v33 }
  0x2c   :  { %160 = vmatpush1.msra.mxu0 %v5754_v34  ;;  %243 = vmatpush1.msra.mxu1 %v87_v35 }
  0x2d   :  { %161 = vmatprep.subr.mxu0 %v5753_v36  ;;  %244 = vmatprep.subr.mxu1 %v86_v37 }
  0x2e   :  { %162 = vmatpush1.msra.mxu0 %v5752_v38  ;;  %245 = vmatpush1.msra.mxu1 %v85_v39 }
  0x2f   :  { %5770 = vmatmul.mubr.msk.f32.vlgmr.msra.gmra.mxu0 %vm124_vm0, %v103_v40  ;;  %5772 = vmatmul.mubr.msk.f32.vlgmr.msra.gmra.mxu1 %vm124_vm0, %v83_v41 }
  0x30   :  { %36 = vsyncpa [#allocation9], 0  ;;  %332 = vmatprep.subr.mxu0 %v5791_v43  ;;  %v5788_v46 = vld [vmem:[%s8760_s28 + $0x190] sm:$0xff]  ;;  %201 = vmatprep.mubr.f32.mxu0 %v6734_v42  ;;  %v84_v47 = vld [vmem:[%s8761_s20 + $0x8] sm:$0xff]  ;;  %v6735_v51 = vmov 0   ;;  %v401_v6 = vlaneseq  ;;  %s8762_s22 = sld [smem:[#allocation13_spill]] }
  0x31   :  { %333 = vmatpush1.msra.mxu0 %v5790_v44  ;;  %v5787_v48 = vld [vmem:[%s8760_s28 + $0x188] sm:$0xff]  ;;  %284 = vmatprep.mubr.f32.mxu1 %v6734_v42  ;;  %v5786_v50 = vld [vmem:[%s8760_s28 + $0x180] sm:$0xff]  ;;  %v5785_v52 = vld [vmem:[%s8760_s28 + $0x178] sm:$0xff]  ;;  %s8763_s24 = sld [smem:[#allocation17_spill]]  ;;  %vm439_vm5 = vcmask 130048   ;;  %s8729_s27 = smov 112  }
  0x32   :  { %v104_v49 = vld [vmem:[%s8761_s20 + $0x9] sm:$0xff]  ;;  %334 = vmatprep.subr.mxu0 %v5789_v45  ;;  %6608 = vset.pattern.permute.xlu0 %v6735_v51  ;;  %v5782_v56 = vld [vmem:[%s8760_s28 + $0x160] sm:$0xff]  ;;  %v5781_v57 = vld [vmem:[%s8760_s28 + $0x158] sm:$0xff]  ;;  %v7072_v9 = vshrl.u32 %v401_v6, 7  ;;  %s8764_s3 = sld [smem:[#allocation15_spill]]  ;;  %s8733_s6 = smov 16  }
  0x33   :  { %335 = vmatpush1.msra.mxu0 %v5788_v46  ;;  %5773 = vmatmul.mubr.msk.f32.gmra.mxu1 %vm124_vm0, %v84_v47  ;;  %v5794_v53 = vld [vmem:[#allocation4] ss:$0 sm:$0xff]  ;;  %v5783_v55 = vld [vmem:[%s8760_s28 + $0x168] sm:$0xff]  ;;  %v5778_v60 = vld [vmem:[%s8760_s28 + $0x140] sm:$0xff]  ;;  %s8725_s25 = smov 96   ;;  %s8731_s7 = smov 80  }
  0x34   :  { %336 = vmatprep.subr.mxu0 %v5787_v48  ;;  %v5784_v54 = vld [vmem:[%s8760_s28 + $0x170] sm:$0xff]  ;;  %5771 = vmatmul.mubr.msk.f32.gmra.mxu0 %vm124_vm0, %v104_v49  ;;  %v5779_v59 = vld [vmem:[%s8760_s28 + $0x148] sm:$0xff]  ;;  %v5777_v61 = vld [vmem:[%s8760_s28 + $0x138] sm:$0xff]  ;;  %v407_v12 = vsub.s32 1, %v7072_v9  ;;  %v7076_v14 = vsub.s32 0, %v7072_v9  ;;  %s8727_s2 = smov 64  }
  0x35   :  { %337 = vmatpush1.msra.mxu0 %v5786_v50  ;;  %382 = vmatprep.mubr.f32.mxu0 %v6734_v42  ;;  %v5780_v58 = vld [vmem:[%s8760_s28 + $0x150] sm:$0xff]  ;;  %v5775_v63 = vld [vmem:[%s8760_s28 + $0x128] sm:$0xff]  ;;  %v5774_v0 = vld [vmem:[%s8760_s28 + $0x120] sm:$0xff]  ;;  %s8735_s30 = smov 32   ;;  %s8723_s4 = smov 48   ;;  %vm681_vm6 = vcmask 261120  }
  0x36   :  { %338 = vmatprep.subr.mxu0 %v5785_v52  ;;  %426 = vperm.xlu0 %6608, %v5794_v53   ;;  %v5776_v62 = vld [vmem:[%s8760_s28 + $0x130] sm:$0xff]  ;;  %v291_v1 = vld [vmem:[%s8761_s20 + $0x2] sm:$0xff]  ;;  %v399_v16 = vld [vmem:[%s8762_s22] sm:$0x3]  ;;  %vm684_vm7 = vcmask 392192   ;;  %vm687_vm8 = vcmask 523264  }
  0x37   :  { %339 = vmatpush1.msra.mxu0 %v5784_v54  ;;  %510 = vmatprep.mubr.f32.mxu1 %v6734_v42  ;;  %v292_v2 = vld [vmem:[%s8761_s20 + $0xa] sm:$0xff]  ;;  %v408_v22 = vrot.slane %v399_v16, %v407_v12  ;;  %v404_v24 = vrot.slane %v399_v16, %v7076_v14  ;;  %v437_v43 = vld [vmem:[%s8763_s24] sm:$0xff]  ;;  %v438_v45 = vld [vmem:[%s8763_s24 + $0x8] sm:$0x3]  ;;  %vm690_vm9 = vcmask 654336   ;;  %vm693_vm10 = vcmask 785408  }
  0x38   :  { %340 = vmatprep.subr.mxu0 %v5783_v55  ;;  %6609 = vset.pattern.permute.xlu1 %v6735_v51  ;;  %v5797_v46 = vld [vmem:[%s8763_s24 + $0x10] sm:$0xff]  ;;  %v5798_v47 = vld [vmem:[%s8763_s24 + $0x18] sm:$0x3]  ;;  %v5813_v6 = vld [vmem:[%s8764_s3 + $0x100] sm:$0xff]  ;;  %vm696_vm11 = vcmask 916480   ;;  %vm704_vm12 = vcmask 254976  }
  0x39   :  { %341 = vmatpush1.msra.mxu0 %v5782_v56  ;;  %vm757_vm13 = vcmask 1046528   ;;  %vm939_vm14 = vcmask 1045504   ;;  %vm6743_vm15 = vmmov 0   ;;  %s8765_s1 = sld [smem:[#allocation16_spill]]  ;;  %s8768_s29 = smov 80  }
  0x3a   :  { %342 = vmatprep.subr.mxu0 %v5781_v57  ;;  %s8769_s0 = smov 48   ;;  %s8772_s26 = smov 96  }
  0x3b   :  { %343 = vmatpush1.msra.mxu0 %v5780_v58 }
  0x3c   :  { %344 = vmatprep.subr.mxu0 %v5779_v59 }
  0x3d   :  { %345 = vmatpush1.msra.mxu0 %v5778_v60  ;;  %v723_v60 = vld [vmem:[%s8764_s3 + $0x78] sm:$0xff] }
  0x3e   :  { %346 = vmatprep.subr.mxu0 %v5777_v61  ;;  %v722_v61 = vld [vmem:[%s8764_s3 + $0x70] sm:$0xff] }
  0x3f   :  { %347 = vmatpush1.msra.mxu0 %v5776_v62  ;;  %v721_v62 = vld [vmem:[%s8764_s3 + $0x68] sm:$0xff] }
  0x40   :  { %348 = vmatprep.subr.mxu0 %v5775_v63  ;;  %v720_v63 = vld [vmem:[%s8764_s3 + $0x60] sm:$0xff] }
  0x41   :  { %349 = vmatpush1.msra.mxu0 %v5774_v0  ;;  %v719_v0 = vld [vmem:[%s8764_s3 + $0x58] sm:$0xff] }
  0x42   :  { %5792 = vmatmul.mubr.msk.f32.vlgmr.msra.gmra.mxu0 %vm124_vm0, %v291_v1  ;;  %840 = vmatprep.subr.mxu0 %v6734_v42  ;;  %v5816_v1 = vld [vmem:[%s8764_s3 + $0x118] sm:$0xff] }
  0x43   :  { %388 = vmatprep.mubr.f32.mxu0 %v6734_v42  ;;  %841 = vmatpush1.msra.mxu0 %v723_v60 }
  0x44   :  { %842 = vmatprep.subr.mxu0 %v6734_v42 }
  0x45   :  { %843 = vmatpush1.msra.mxu0 %v722_v61 }
  0x46   :  { %5793 = vmatmul.mubr.msk.f32.gmra.mxu0 %vm124_vm0, %v292_v2  ;;  %844 = vmatprep.subr.mxu0 %v6734_v42  ;;  %v5815_v2 = vld [vmem:[%s8764_s3 + $0x110] sm:$0xff] }
  0x47   :  { %845 = vmatpush1.msra.mxu0 %v721_v62 }
  0x48   :  { %846 = vmatprep.subr.mxu0 %v6734_v42 }
  0x49   :  { %847 = vmatpush1.msra.mxu0 %v720_v63 }
  0x4a   :  { %848 = vmatprep.subr.mxu0 %v6734_v42 }
  0x4b   :  { %849 = vmatpush1.msra.mxu0 %v719_v0 }
  0x4c   :  { %850 = vmatprep.subr.mxu0 %v6734_v42 }
  0xb1   :  { %v427_v33 = vpop.permute.xlu0 %426 }
  0xef   :  { %v197_v3 = vpop.f32.mrf.mxu0  ;;  %v280_v4 = vpop.f32.mrf.mxu1 }
  0xf0   :  { %v281_v17 = vadd.f32 %v280_v4, %v197_v3  ;;  %v718_v3 = vld [vmem:[%s8764_s3 + $0x50] sm:$0xff]  ;;  %v717_v4 = vld [vmem:[%s8764_s3 + $0x48] sm:$0xff] }
  0xf1   :  { %v199_v5 = vpop.f32.mrf.mxu0  ;;  %v282_v8 = vpop.f32.mrf.mxu1  ;;  %851 = vmatpush1.msra.mxu0 %v718_v3 }
  0xf2   :  { %v283_v15 = vadd.f32 %v282_v8, %v199_v5  ;;  %852 = vmatprep.subr.mxu0 %v6734_v42  ;;  %v5814_v5 = vld [vmem:[%s8764_s3 + $0x108] sm:$0xff]  ;;  %v715_v8 = vld [vmem:[%s8764_s3 + $0x38] sm:$0xff] }
  0xf3   :  { %v286_v10 = vpop.f32.mrf.mxu1  ;;  %853 = vmatpush1.msra.mxu0 %v717_v4 }
  0xf4   :  { %v203_v7 = vpop.f32.mrf.mxu0  ;;  %854 = vmatprep.subr.mxu0 %v6734_v42 }
  0xf5   :  { %v288_v18 = vpop.f32.mrf.mxu1  ;;  %v287_v20 = vadd.f32 %v286_v10, %v203_v7  ;;  %v716_v7 = vld [vmem:[%s8764_s3 + $0x40] sm:$0xff]  ;;  %v5812_v10 = vld [vmem:[%s8764_s3 + $0xf8] sm:$0xff] }
  0xf6   :  { %v205_v11 = vpop.f32.mrf.mxu0  ;;  %855 = vmatpush1.msra.mxu0 %v716_v7 }
  0xf7   :  { %v289_v26 = vadd.f32 %v288_v18, %v205_v11  ;;  %856 = vmatprep.subr.mxu0 %v6734_v42  ;;  %v5811_v11 = vld [vmem:[%s8764_s3 + $0xf0] sm:$0xff]  ;;  %v5810_v18 = vld [vmem:[%s8764_s3 + $0xe8] sm:$0xff] }
  0xf8   :  { %857 = vmatpush1.msra.mxu0 %v715_v8 }
  0xf9   :  { %858 = vmatprep.subr.mxu0 %v6734_v42 }
 0x102   :  { %v384_v13 = vpop.f32.mrf.mxu0 }
 0x103   :  { %v395_v23 = vadd.f32 %v384_v13, %v281_v17  ;;  %v714_v13 = vld [vmem:[%s8764_s3 + $0x30] sm:$0xff]  ;;  %v713_v17 = vld [vmem:[%s8764_s3 + $0x28] sm:$0xff] }
 0x104   :  { %v386_v19 = vpop.f32.mrf.mxu0  ;;  %859 = vmatpush1.msra.mxu0 %v714_v13 }
 0x105   :  { %v396_v21 = vadd.f32 %v386_v19, %v283_v15  ;;  %v411_v32 = vadd.f32 %v404_v24, %v395_v23  ;;  %860 = vmatprep.subr.mxu0 %v6734_v42  ;;  %v5809_v19 = vld [vmem:[%s8764_s3 + $0xe0] sm:$0xff]  ;;  %v711_v23 = vld [vmem:[%s8764_s3 + $0x18] sm:$0xff] }
 0x106   :  { %v390_v25 = vpop.f32.mrf.mxu0  ;;  %861 = vmatpush1.msra.mxu0 %v713_v17 }
 0x107   :  { %v397_v27 = vadd.f32 %v390_v25, %v287_v20  ;;  %v412_v29 = vadd.f32 %v408_v22, %v396_v21  ;;  %v429_v38 = vmul.f32 %v427_v33, %v411_v32  ;;  %vm416_vm4 = vcmp.ge.f32.partialorder %v411_v32, 0.0  ;;  %v712_v20 = vld [vmem:[%s8764_s3 + $0x20] sm:$0xff]  ;;  %862 = vmatprep.subr.mxu0 %v6734_v42  ;;  %v5807_v25 = vld [vmem:[%s8764_s3 + $0xd0] sm:$0xff] }
 0x108   :  { %v392_v28 = vpop.f32.mrf.mxu0  ;;  %863 = vmatpush1.msra.mxu0 %v712_v20 }
 0x109   :  { %v413_v30 = vadd.f32 %v404_v24, %v397_v27  ;;  %v398_v31 = vadd.f32 %v392_v28, %v289_v26  ;;  %v430_v36 = vmul.f32 %v427_v33, %v412_v29  ;;  %vm417_vm3 = vcmp.ge.f32.partialorder %v412_v29, 0.0  ;;  %v5808_v24 = vld [vmem:[%s8764_s3 + $0xd8] sm:$0xff]  ;;  %864 = vmatprep.subr.mxu0 %v6734_v42  ;;  %v710_v26 = vld [vmem:[%s8764_s3 + $0x10] sm:$0xff]  ;;  %v5806_v28 = vld [vmem:[%s8764_s3 + $0xc8] sm:$0xff] }
 0x10a   :  { %v433_v44 = vsel %vm416_vm4, %v411_v32, %v429_v38  ;;  %865 = vmatpush1.msra.mxu0 %v711_v23  ;;  %v708_v32 = vld [vmem:[%s8764_s3] sm:$0xff]  ;;  %v726_v38 = vld [vmem:[%s8764_s3 + $0x90] sm:$0xff]  ;;  %vm8744_vm4 = vcmask 1043456  }
 0x10b   :  { %v414_v34 = vadd.f32 %v408_v22, %v398_v31  ;;  %v431_v35 = vmul.f32 %v427_v33, %v413_v30  ;;  %vm418_vm2 = vcmp.ge.f32.partialorder %v413_v30, 0.0  ;;  %v434_v41 = vsel %vm417_vm3, %v412_v29, %v430_v36  ;;  %866 = vmatprep.subr.mxu0 %v6734_v42  ;;  %v709_v29 = vld [vmem:[%s8764_s3 + $0x8] sm:$0xff]  ;;  %v5805_v31 = vld [vmem:[%s8764_s3 + $0xc0] sm:$0xff] }
 0x10c   :  { %867 = vmatpush1.msra.mxu0 %v710_v26  ;;  %vm8745_vm3 = vcmask 31744  }
 0x10d   :  { %vm419_vm1 = vcmp.ge.f32.partialorder %v414_v34, 0.0  ;;  %v432_v37 = vmul.f32 %v427_v33, %v414_v34  ;;  %v435_v40 = vsel %vm418_vm2, %v413_v30, %v431_v35  ;;  %868 = vmatprep.subr.mxu0 %v6734_v42  ;;  %v727_v35 = vld [vmem:[%s8764_s3 + $0x98] sm:$0xff]  ;;  %vm1042_vm2 = vcmask 64512  }
 0x10e   :  { %869 = vmatpush1.msra.mxu0 %v709_v29 }
 0x10f   :  { %v436_v39 = vsel %vm419_vm1, %v414_v34, %v432_v37  ;;  %870 = vmatprep.subr.mxu0 %v6734_v42  ;;  %v5804_v34 = vld [vmem:[%s8764_s3 + $0xb8] sm:$0xff]  ;;  %v5803_v37 = vld [vmem:[%s8764_s3 + $0xb0] sm:$0xff] }
 0x110   :  { %474 = vmatprep.subr.mxu1 %v436_v39  ;;  %871 = vmatpush1.msra.mxu0 %v708_v32 }
 0x111   :  { %475 = vmatpush1.msra.mxu1 %v435_v40  ;;  %896 = vmatprep.subr.mxu0 %v6734_v42 }
 0x112   :  { %476 = vmatprep.subr.mxu1 %v434_v41  ;;  %897 = vmatpush2.msra.mxu0 %v727_v35  ;;  %v5837_v35 = vld [vmem:[%s8764_s3 + $0x1b0] sm:$0xff] }
 0x113   :  { %477 = vmatpush1.msra.mxu1 %v433_v44  ;;  %898 = vmatprep.subr.mxu0 %v6734_v42 }
 0x114   :  { %5795 = vmatmul.mubr.msk.f32.vlgmr.msra.gmra.mxu1 %vm439_vm5, %v437_v43  ;;  %560 = vmatprep.subr.mxu1 %v436_v39  ;;  %v5802_v39 = vld [vmem:[%s8764_s3 + $0xa8] sm:$0xff]  ;;  %v724_v43 = vld [vmem:[%s8764_s3 + $0x80] sm:$0xff] }
 0x115   :  { %561 = vmatpush1.msra.mxu1 %v435_v40  ;;  %516 = vmatprep.mubr.f32.mxu1 %v6734_v42  ;;  %v725_v40 = vld [vmem:[%s8764_s3 + $0x88] sm:$0xff] }
 0x116   :  { %562 = vmatprep.subr.mxu1 %v434_v41  ;;  %899 = vmatpush2.msra.mxu0 %v726_v38  ;;  %v5801_v41 = vld [vmem:[%s8764_s3 + $0xa0] sm:$0xff]  ;;  %v5834_v38 = vld [vmem:[%s8764_s3 + $0x198] sm:$0xff] }
 0x117   :  { %563 = vmatpush1.msra.mxu1 %v433_v44  ;;  %900 = vmatprep.subr.mxu0 %v6734_v42  ;;  %v5820_v44 = vld [vmem:[%s8764_s3 + $0x138] sm:$0xff] }
 0x118   :  { %5796 = vmatmul.mubr.msk.f32.gmra.mxu1 %vm439_vm5, %v438_v45  ;;  %767 = vmatprep.subr.mxu1 %v6734_v42  ;;  %v5819_v45 = vld [vmem:[%s8764_s3 + $0x130] sm:$0xff] }
 0x119   :  { %596 = vmatprep.mubr.f32.mxu1 %v6734_v42  ;;  %901 = vmatpush2.msra.mxu0 %v725_v40  ;;  %v5832_v40 = vld [vmem:[%s8764_s3 + $0x188] sm:$0xff] }
 0x11a   :  { %902 = vmatprep.subr.mxu0 %v6734_v42 }
 0x11b   :  { %903 = vmatpush2.msra.mxu0 %v724_v43  ;;  %v5830_v43 = vld [vmem:[%s8764_s3 + $0x178] sm:$0xff] }
 0x11c   :  { %5799 = vmatmul.mubr.msk.f32.vlgmr.msra.gmra.mxu1 %vm439_vm5, %v5797_v46  ;;  %6306 = vmatprep.subr.mxu0 %v6734_v42  ;;  %v5818_v46 = vld [vmem:[%s8764_s3 + $0x128] sm:$0xff] }
 0x11d   :  { %602 = vmatprep.mubr.f32.mxu1 %v6734_v42  ;;  %768 = vmatpush1.msra.mxu1 %v5816_v1 }
 0x11e   :  { %769 = vmatprep.subr.mxu1 %v6734_v42 }
 0x11f   :  { %770 = vmatpush1.msra.mxu1 %v5815_v2 }
 0x120   :  { %5800 = vmatmul.mubr.msk.f32.gmra.mxu1 %vm439_vm5, %v5798_v47  ;;  %771 = vmatprep.subr.mxu1 %v6734_v42  ;;  %v5817_v47 = vld [vmem:[%s8764_s3 + $0x120] sm:$0xff] }
 0x121   :  { %772 = vmatpush1.msra.mxu1 %v5814_v5 }
 0x122   :  { %773 = vmatprep.subr.mxu1 %v6734_v42 }
 0x123   :  { %774 = vmatpush1.msra.mxu1 %v5813_v6 }
 0x124   :  { %775 = vmatprep.subr.mxu1 %v6734_v42 }
 0x125   :  { %776 = vmatpush1.msra.mxu1 %v5812_v10 }
 0x126   :  { %777 = vmatprep.subr.mxu1 %v6734_v42 }
 0x127   :  { %778 = vmatpush1.msra.mxu1 %v5811_v11 }
 0x128   :  { %779 = vmatprep.subr.mxu1 %v6734_v42 }
 0x129   :  { %780 = vmatpush1.msra.mxu1 %v5810_v18 }
 0x12a   :  { %781 = vmatprep.subr.mxu1 %v6734_v42 }
 0x12b   :  { %782 = vmatpush1.msra.mxu1 %v5809_v19 }
 0x12c   :  { %783 = vmatprep.subr.mxu1 %v6734_v42 }
 0x12d   :  { %784 = vmatpush1.msra.mxu1 %v5808_v24 }
 0x12e   :  { %785 = vmatprep.subr.mxu1 %v6734_v42 }
 0x12f   :  { %786 = vmatpush1.msra.mxu1 %v5807_v25 }
 0x130   :  { %787 = vmatprep.subr.mxu1 %v6734_v42 }
 0x131   :  { %788 = vmatpush1.msra.mxu1 %v5806_v28 }
 0x132   :  { %789 = vmatprep.subr.mxu1 %v6734_v42 }
 0x133   :  { %790 = vmatpush1.msra.mxu1 %v5805_v31  ;;  %v5838_v31 = vld [vmem:[%s8764_s3 + $0x1b8] sm:$0xff] }
 0x134   :  { %791 = vmatprep.subr.mxu1 %v6734_v42 }
 0x135   :  { %792 = vmatpush1.msra.mxu1 %v5804_v34 }
 0x136   :  { %793 = vmatprep.subr.mxu1 %v6734_v42 }
 0x137   :  { %794 = vmatpush1.msra.mxu1 %v5803_v37  ;;  %v5835_v37 = vld [vmem:[%s8764_s3 + $0x1a0] sm:$0xff] }
 0x138   :  { %795 = vmatprep.subr.mxu1 %v6734_v42 }
 0x139   :  { %796 = vmatpush1.msra.mxu1 %v5802_v39  ;;  %v5833_v39 = vld [vmem:[%s8764_s3 + $0x190] sm:$0xff] }
 0x13a   :  { %797 = vmatprep.subr.mxu1 %v6734_v42 }
 0x13b   :  { %798 = vmatpush1.msra.mxu1 %v5801_v41  ;;  %v5831_v41 = vld [vmem:[%s8764_s3 + $0x180] sm:$0xff] }
 0x13c   :  { %823 = vmatprep.subr.mxu1 %v6734_v42 }
 0x13d   :  { %824 = vmatpush2.msra.mxu1 %v5820_v44  ;;  %v5829_v44 = vld [vmem:[%s8764_s3 + $0x170] sm:$0xff] }
 0x13e   :  { %825 = vmatprep.subr.mxu1 %v6734_v42 }
 0x13f   :  { %826 = vmatpush2.msra.mxu1 %v5819_v45  ;;  %v5828_v45 = vld [vmem:[%s8764_s3 + $0x168] sm:$0xff] }
 0x140   :  { %827 = vmatprep.subr.mxu1 %v6734_v42 }
 0x141   :  { %828 = vmatpush2.msra.mxu1 %v5818_v46  ;;  %v5827_v46 = vld [vmem:[%s8764_s3 + $0x160] sm:$0xff] }
 0x142   :  { %829 = vmatprep.subr.mxu1 %v6734_v42 }
 0x143   :  { %830 = vmatpush2.msra.mxu1 %v5817_v47  ;;  %v5826_v47 = vld [vmem:[%s8764_s3 + $0x158] sm:$0xff] }
 0x144   :  { %949 = vmatprep.subr.mxu1 %v6734_v42 }
 0x1d4   :  { %v512_v48 = vpop.f32.mrf.mxu1 }
 0x1d6   :  { %v514_v49 = vpop.f32.mrf.mxu1 }
 0x1d8   :  { %v518_v50 = vpop.f32.mrf.mxu1 }
 0x1da   :  { %v520_v51 = vpop.f32.mrf.mxu1 }
 0x1dc   :  { %v598_v52 = vpop.f32.mrf.mxu1 }
 0x1dd   :  { %v609_v53 = vmax.f32 %v512_v48, %v598_v52  ;;  %v5845_v48 = vld [vmem:[#allocation5] ss:$0 sm:$0xff] }
 0x1de   :  { %v600_v54 = vpop.f32.mrf.mxu1 }
 0x1df   :  { %615 = vrot.lane.b32.xlu0 %v609_v53, %s8729_s27  ;;  %v7111_v59 = vmax.f32 %v514_v49, %v600_v54 }
 0x1e0   :  { %v604_v55 = vpop.f32.mrf.mxu1 }
 0x1e1   :  { %v7105_v56 = vmax.f32 %v518_v50, %v604_v55 }
 0x1e2   :  { %v606_v57 = vpop.f32.mrf.mxu1 }
 0x1e3   :  { %v7107_v58 = vmax.f32 %v520_v51, %v606_v57  ;;  %617 = vrot.lane.b32.xlu1 %v7105_v56, %s8729_s27 }
 0x1e5   :  { %627 = vrot.lane.b32.xlu0 %v7107_v58, %s8729_s27 }
 0x1e7   :  { %625 = vrot.lane.b32.xlu1 %v7111_v59, %s8729_s27 }
 0x251   :  { %v616_v15 = vpop.permute.xlu0 %615 }
 0x252   :  { %v7179_v16 = vmax.f32 %v609_v53, %v616_v15 }
 0x254   :  { %635 = vrot.lane.b32.xlu1 %v7179_v16, %s8733_s6 }
 0x255   :  { %v618_v21 = vpop.permute.xlu1 %617 }
 0x256   :  { %v7200_v22 = vmax.f32 %v7105_v56, %v618_v21 }
 0x257   :  { %v628_v33 = vpop.permute.xlu0 %627 }
 0x258   :  { %641 = vrot.lane.b32.xlu1 %v7179_v16, %s8729_s27  ;;  %637 = vrot.lane.b32.xlu0 %v7200_v22, %s8733_s6  ;;  %v632_v36 = vmax.f32 %v7107_v58, %v628_v33  ;;  %s8767_s6 = smov 16  }
 0x259   :  { %v626_v27 = vpop.permute.xlu1 %625 }
 0x25a   :  { %v631_v30 = vmax.f32 %v7111_v59, %v626_v27 }
 0x25c   :  { %647 = vrot.lane.b32.xlu1 %v7179_v16, %s8725_s25  ;;  %643 = vrot.lane.b32.xlu0 %v7200_v22, %s8729_s27 }
 0x260   :  { %655 = vrot.lane.b32.xlu1 %v631_v30, %s8731_s7  ;;  %649 = vrot.lane.b32.xlu0 %v7200_v22, %s8725_s25 }
 0x264   :  { %661 = vrot.lane.b32.xlu1 %v631_v30, %s8727_s2  ;;  %657 = vrot.lane.b32.xlu0 %v632_v36, %s8731_s7  ;;  %s8770_s7 = smov 112  }
 0x268   :  { %673 = vrot.lane.b32.xlu1 %v631_v30, %s8735_s30  ;;  %663 = vrot.lane.b32.xlu0 %v632_v36, %s8727_s2 }
 0x26c   :  { %667 = vrot.lane.b32.xlu1 %v631_v30, %s8723_s4  ;;  %675 = vrot.lane.b32.xlu0 %v632_v36, %s8735_s30 }
 0x270   :  { %669 = vrot.lane.b32.xlu0 %v632_v36, %s8723_s4  ;;  %1036 = vperm.xlu1 %6609, %v5845_v48   ;;  %v5836_v36 = vld [vmem:[%s8764_s3 + $0x1a8] sm:$0xff]  ;;  %v5825_v48 = vld [vmem:[%s8764_s3 + $0x150] sm:$0xff]  ;;  %s8766_s4 = sld [smem:[#allocation18_spill]] }
 0x2c6   :  { %v636_v49 = vpop.permute.xlu1 %635 }
 0x2c7   :  { %v679_v58 = vsel %vm439_vm5, 0.0, %v636_v49  ;;  %v5824_v49 = vld [vmem:[%s8764_s3 + $0x148] sm:$0xff] }
 0x2c8   :  { %v682_v59 = vsel %vm681_vm6, %v679_v58, %v7179_v16 }
 0x2ca   :  { %v642_v50 = vpop.permute.xlu1 %641  ;;  %v638_v51 = vpop.permute.xlu0 %637 }
 0x2cb   :  { %v685_v62 = vsel %vm684_vm7, %v682_v59, %v642_v50  ;;  %v680_v63 = vsel %vm439_vm5, 0.0, %v638_v51  ;;  %v5823_v50 = vld [vmem:[%s8764_s3 + $0x140] sm:$0xff]  ;;  %v5842_v51 = vld [vmem:[%s8764_s3 + $0x1d8] sm:$0xff] }
 0x2cc   :  { %v683_v3 = vsel %vm681_vm6, %v680_v63, %v7200_v22 }
 0x2ce   :  { %v648_v52 = vpop.permute.xlu1 %647  ;;  %v644_v53 = vpop.permute.xlu0 %643 }
 0x2cf   :  { %v688_v1 = vsel %vm687_vm8, %v685_v62, %v648_v52  ;;  %v686_v7 = vsel %vm684_vm7, %v683_v3, %v644_v53  ;;  %v5841_v52 = vld [vmem:[%s8764_s3 + $0x1d0] sm:$0xff] }
 0x2d2   :  { %v656_v54 = vpop.permute.xlu1 %655  ;;  %v650_v55 = vpop.permute.xlu0 %649 }
 0x2d3   :  { %v691_v2 = vsel %vm690_vm9, %v688_v1, %v656_v54  ;;  %v689_v11 = vsel %vm687_vm8, %v686_v7, %v650_v55  ;;  %v5840_v54 = vld [vmem:[%s8764_s3 + $0x1c8] sm:$0xff] }
 0x2d6   :  { %v662_v56 = vpop.permute.xlu1 %661  ;;  %v658_v57 = vpop.permute.xlu0 %657 }
 0x2d7   :  { %v694_v4 = vsel %vm693_vm10, %v691_v2, %v662_v56  ;;  %v692_v13 = vsel %vm690_vm9, %v689_v11, %v658_v57  ;;  %v5839_v57 = vld [vmem:[%s8764_s3 + $0x1c0] sm:$0xff] }
 0x2d8   :  { %v5844_v2 = vld [vmem:[%s8765_s1] ss:$0 sm:$0xff]  ;;  %v5847_v11 = vld [vmem:[%s8766_s4 + $0x4] sm:$0xf] }
 0x2da   :  { %v674_v60 = vpop.permute.xlu1 %673  ;;  %v664_v61 = vpop.permute.xlu0 %663 }
 0x2db   :  { %v699_v0 = vsel %vm439_vm5, %v674_v60, 0.0  ;;  %v695_v15 = vsel %vm693_vm10, %v692_v13, %v664_v61 }
 0x2dc   :  { %702 = vst.msk [vmem:[#allocation2 + $0x8] sm:$0xff] %vm681_vm6, %v699_v0 }
 0x2de   :  { %v668_v5 = vpop.permute.xlu1 %667  ;;  %v676_v6 = vpop.permute.xlu0 %675 }
 0x2df   :  { %v697_v8 = vsel %vm696_vm11, %v694_v4, %v668_v5  ;;  %v700_v10 = vsel %vm439_vm5, %v676_v6, 0.0 }
 0x2e0   :  { %701 = vst [vmem:[#allocation2] sm:$0xff] %v697_v8  ;;  %705 = vst.msk [vmem:[#allocation2 + $0x18] sm:$0x3] %vm704_vm12, %v700_v10 }
 0x2e2   :  { %v670_v16 = vpop.permute.xlu0 %669 }
 0x2e3   :  { %v698_v17 = vsel %vm696_vm11, %v695_v15, %v670_v16  ;;  %v707_v18 = vld [vmem:[#allocation2 + $0x8] sm:$0xff] }
 0x2e4   :  { %703 = vst [vmem:[#allocation2 + $0x10] sm:$0x3] %v698_v17  ;;  %5822 = vmatprep.mubr.msk.f32.mxu0 %vm681_vm6, %v707_v18  ;;  %v729_v19 = vld [vmem:[#allocation2 + $0x8] sm:$0xfe] }
 0x2e5   :  { %905 = vmatmul.mubr.f32.vlgmr.msra.gmra.mxu0 %v697_v8  ;;  %v761_v21 = vrot.slane %v729_v19, 1  ;;  %v911_v26 = vld [vmem:[#allocation2 + $0x8] sm:$0xfc]  ;;  %v1041_v8 = vld [vmem:[%s8766_s4] sm:$0xf]  ;;  %v5849_v19 = vld [vmem:[%s8700_s9 + $0x10] sm:$0xff] }
 0x2e6   :  { %v943_v32 = vrot.slane %v911_v26, 2  ;;  %6308 = vmatprep.mubr.msk.f32.mxu0 %vm6743_vm15, %v6734_v42  ;;  %v1198_v26 = vld [vmem:[%s8700_s9 + $0x8] sm:$0xff] }
 0x2e7   :  { %v731_v20 = vld [vmem:[#allocation2 + $0x18] sm:$0x1]  ;;  %v728_v24 = vld [vmem:[#allocation2] sm:$0xfe] }
 0x2e8   :  { %v762_v22 = vrot.slane %v731_v20, 1  ;;  %v913_v23 = vld [vmem:[#allocation2 + $0x18] sm:$0x3]  ;;  %v758_v29 = vrot.slane %v728_v24, 1  ;;  %v910_v55 = vld [vmem:[#allocation2] sm:$0xfc] }
 0x2e9   :  { %v944_v28 = vrot.slane %v913_v23, 2  ;;  %v940_v58 = vrot.slane %v910_v55, 2  ;;  %v5850_v23 = vld [vmem:[%s8700_s9 + $0x18] sm:$0xff]  ;;  %v1197_v24 = vld [vmem:[%s8700_s9] sm:$0xff] }
 0x2ea   :  { %v763_v25 = vsel %vm757_vm13, %v761_v21, %v762_v22 }
 0x2eb   :  { %5821 = vmatprep.mubr.msk.f32.mxu1 %vm681_vm6, %v763_v25  ;;  %v730_v27 = vld [vmem:[#allocation2 + $0x10] sm:$0x1]  ;;  %v945_v34 = vsel %vm939_vm14, %v943_v32, %v944_v28  ;;  %v1037_v5 = vpop.permute.xlu1 %1036  ;;  %v1562_v32 = vld [vmem:[%s8701_s10 + $0x8] sm:$0xff] }
 0x2ec   :  { %v759_v30 = vrot.slane %v730_v27, 1  ;;  %v912_v53 = vld [vmem:[#allocation2 + $0x10] sm:$0x3]  ;;  %v5857_v27 = vld [vmem:[%s8700_s9 + $0x20] sm:$0xff] }
 0x2ed   :  { %v941_v56 = vrot.slane %v912_v53, 2 }
 0x2ee   :  { %v760_v33 = vsel %vm757_vm13, %v758_v29, %v759_v30  ;;  %v5858_v29 = vld [vmem:[%s8700_s9 + $0x28] sm:$0xff]  ;;  %v5862_v30 = vld [vmem:[%s8700_s9 + $0x30] sm:$0xff] }
 0x2ef   :  { %832 = vmatmul.mubr.f32.vlgmr.msra.gmra.mxu1 %v760_v33  ;;  %v942_v59 = vsel %vm939_vm14, %v940_v58, %v941_v56  ;;  %v1561_v33 = vld [vmem:[%s8701_s10] sm:$0xff] }
 0x2f0   :  { %950 = vmatpush1.msra.mxu1 %v5838_v31  ;;  %5843 = vmatprep.mubr.msk.f32.mxu1 %vm681_vm6, %v945_v34  ;;  %v5863_v31 = vld [vmem:[%s8700_s9 + $0x38] sm:$0xff]  ;;  %v1652_v34 = vld [vmem:[%s8703_s12 + $0x8] sm:$0xff]  ;;  %v5871_v56 = vld [vmem:[%s8704_s13] ss:$0 sm:$0xff] }
 0x2f1   :  { %951 = vmatprep.subr.mxu1 %v6734_v42 }
 0x2f2   :  { %952 = vmatpush1.msra.mxu1 %v5837_v35 }
 0x2f3   :  { %953 = vmatprep.subr.mxu1 %v6734_v42 }
 0x2f4   :  { %954 = vmatpush1.msra.mxu1 %v5836_v36 }
 0x2f5   :  { %955 = vmatprep.subr.mxu1 %v6734_v42 }
 0x2f6   :  { %956 = vmatpush1.msra.mxu1 %v5835_v37 }
 0x2f7   :  { %957 = vmatprep.subr.mxu1 %v6734_v42 }
 0x2f8   :  { %958 = vmatpush1.msra.mxu1 %v5834_v38 }
 0x2f9   :  { %959 = vmatprep.subr.mxu1 %v6734_v42 }
 0x2fa   :  { %960 = vmatpush1.msra.mxu1 %v5833_v39 }
 0x2fb   :  { %961 = vmatprep.subr.mxu1 %v6734_v42 }
 0x2fc   :  { %962 = vmatpush1.msra.mxu1 %v5832_v40 }
 0x2fd   :  { %963 = vmatprep.subr.mxu1 %v6734_v42 }
 0x2fe   :  { %964 = vmatpush1.msra.mxu1 %v5831_v41 }
 0x2ff   :  { %965 = vmatprep.subr.mxu1 %v6734_v42 }
 0x300   :  { %966 = vmatpush1.msra.mxu1 %v5830_v43 }
 0x301   :  { %967 = vmatprep.subr.mxu1 %v6734_v42 }
 0x302   :  { %968 = vmatpush1.msra.mxu1 %v5829_v44 }
 0x303   :  { %969 = vmatprep.subr.mxu1 %v6734_v42 }
 0x304   :  { %970 = vmatpush1.msra.mxu1 %v5828_v45 }
 0x305   :  { %971 = vmatprep.subr.mxu1 %v6734_v42 }
 0x306   :  { %972 = vmatpush1.msra.mxu1 %v5827_v46 }
 0x307   :  { %973 = vmatprep.subr.mxu1 %v6734_v42 }
 0x308   :  { %974 = vmatpush1.msra.mxu1 %v5826_v47 }
 0x309   :  { %975 = vmatprep.subr.mxu1 %v6734_v42 }
 0x30a   :  { %976 = vmatpush1.msra.mxu1 %v5825_v48 }
 0x30b   :  { %977 = vmatprep.subr.mxu1 %v6734_v42 }
 0x30c   :  { %978 = vmatpush1.msra.mxu1 %v5824_v49 }
 0x30d   :  { %979 = vmatprep.subr.mxu1 %v6734_v42 }
 0x30e   :  { %980 = vmatpush1.msra.mxu1 %v5823_v50  ;;  %v1651_v50 = vld [vmem:[%s8703_s12] sm:$0xff] }
 0x30f   :  { %1005 = vmatprep.subr.mxu1 %v6734_v42 }
 0x310   :  { %1006 = vmatpush2.msra.mxu1 %v5842_v51  ;;  %v1736_v51 = vld [vmem:[%s8705_s14 + $0x8] sm:$0xff] }
 0x311   :  { %1007 = vmatprep.subr.mxu1 %v6734_v42 }
 0x312   :  { %1008 = vmatpush2.msra.mxu1 %v5841_v52  ;;  %v1735_v52 = vld [vmem:[%s8705_s14] sm:$0xff] }
 0x313   :  { %1009 = vmatprep.subr.mxu1 %v6734_v42 }
 0x314   :  { %1010 = vmatpush2.msra.mxu1 %v5840_v54  ;;  %v5868_v54 = vld [vmem:[%s8702_s11] ss:$0 sm:$0xff] }
 0x315   :  { %1011 = vmatprep.subr.mxu1 %v6734_v42 }
 0x316   :  { %1012 = vmatpush2.msra.mxu1 %v5839_v57 }
 0x317   :  { %1014 = vmatmul.mubr.f32.vlgmr.msra.gmra.mxu1 %v942_v59 }
 0x3a5   :  { %v906_v60 = vpop.f32.mrf.mxu0 }
 0x3a7   :  { %v908_v61 = vpop.f32.mrf.mxu0 }
 0x3a8   :  { %v5874_v61 = vld [vmem:[%s8706_s15] ss:$0 sm:$0xff] }
 0x3af   :  { %v833_v62 = vpop.f32.mrf.mxu1 }
 0x3b0   :  { %v907_v0 = vadd.f32 %v906_v60, %v833_v62 }
 0x3b1   :  { %v835_v63 = vpop.f32.mrf.mxu1 }
 0x3d7   :  { %v1015_v1 = vpop.f32.mrf.mxu1 }
 0x3d8   :  { %v1019_v3 = vadd.f32 %v1015_v1, %v907_v0 }
 0x3d9   :  { %v1017_v4 = vpop.f32.mrf.mxu1 }
 0x3da   :  { %v1027_v6 = vadd.f32 %v5844_v2, %v1019_v3  ;;  %v5886_v2 = vld [vmem:[%s8701_s10 + $0x18] sm:$0xff] }
 0x3dc   :  { %v1039_v7 = vmul.f32 %v1037_v5, %v1027_v6  ;;  %vm1029_vm1 = vcmp.ge.f32.partialorder %v1027_v6, 0.0  ;;  %v5885_v5 = vld [vmem:[%s8701_s10 + $0x10] sm:$0xff] }
 0x3de   :  { %v1040_v10 = vsel %vm1029_vm1, %v1027_v6, %v1039_v7  ;;  %v5898_v6 = vld [vmem:[%s8705_s14 + $0x18] sm:$0xff]  ;;  %v5897_v7 = vld [vmem:[%s8705_s14 + $0x10] sm:$0xff] }
 0x3df   :  { %6307 = vmatpush3.msra.mxu0 %v1040_v10 }
 0x3e0   :  { %6309 = vmatmul.mubr.msk.f32.vlgmr.msra.gmra.mxu0 %vm1042_vm2, %v1041_v8  ;;  %6311 = vmatprep.subr.mxu0 %v6734_v42 }
 0x3e1   :  { %6312 = vmatpush3.msra.mxu0 %v1040_v10  ;;  %6313 = vmatprep.mubr.msk.f32.mxu0 %vm6743_vm15, %v6734_v42 }
 0x3e4   :  { %6314 = vmatmul.mubr.msk.f32.vlgmr.msra.gmra.mxu0 %vm1042_vm2, %v5847_v11 }
 0x3e5   :  { %6318 = vmatprep.mubr.msk.f32.mxu0 %vm8745_vm3, %v5849_v19 }
 0x4a0   :  { %v1112_v13 = vpop.f32.mrf.mxu0 }
 0x4a2   :  { %v6310_v15 = vpop.f32.mrf.mxu0 }
 0x4a4   :  { %v1187_v16 = vpop.f32.mrf.mxu0 }
 0x4a5   :  { %v1191_v17 = vmax.f32 %v1112_v13, %v1187_v16  ;;  %v5888_v13 = vld [vmem:[%s8702_s11 + $0x1] ss:$0 sm:$0xff] }
 0x4a6   :  { %v6315_v18 = vpop.f32.mrf.mxu0 }
 0x4a7   :  { %1193 = vrot.lane.b32.xlu0 %v1191_v17, %s8729_s27 }
 0x519   :  { %v1194_v20 = vpop.permute.xlu0 %1193 }
 0x51a   :  { %v1196_v21 = vmax.f32 %v1191_v17, %v1194_v20 }
 0x51c   :  { %1376 = vrot.lane.b32.xlu0 %v1196_v21, %s8727_s2  ;;  %1203 = vrot.lane.b32.xlu1 %v1196_v21, %s8725_s25  ;;  %s8771_s25 = smov 64  }
 0x520   :  { %1466 = vrot.lane.b32.xlu1 %v1196_v21, %s8735_s30 }
 0x58e   :  { %v1204_v22 = vpop.permute.xlu1 %1203  ;;  %v1377_v25 = vpop.permute.xlu0 %1376 }
 0x58f   :  { %6316 = vmatprep.subr.msk.mxu0 %vm8744_vm4, %v1204_v22 }
 0x590   :  { %6317 = vmatpush3.msk.msra.mxu0 %vm8744_vm4, %v1204_v22 }
 0x591   :  { %6319 = vmatmul.mubr.msk.f32.vlgmr.msra.gmra.mxu0 %vm8745_vm3, %v5850_v23  ;;  %6321 = vmatprep.subr.msk.mxu0 %vm8744_vm4, %v1196_v21 }
 0x592   :  { %6322 = vmatpush3.msk.msra.mxu0 %vm8744_vm4, %v1196_v21  ;;  %6323 = vmatprep.mubr.msk.f32.mxu0 %vm8745_vm3, %v1197_v24  ;;  %v1467_v28 = vpop.permute.xlu1 %1466  ;;  %v5900_v21 = vld [vmem:[%s8706_s15 + $0x1] ss:$0 sm:$0xff] }
 0x593   :  { %6326 = vmatprep.subr.msk.mxu0 %vm8744_vm4, %v1377_v25 }
 0x595   :  { %6324 = vmatmul.mubr.msk.f32.vlgmr.msra.gmra.mxu0 %vm8745_vm3, %v1198_v26 }
 0x596   :  { %6327 = vmatpush3.msk.msra.mxu0 %vm8744_vm4, %v1377_v25  ;;  %6328 = vmatprep.mubr.msk.f32.mxu0 %vm8745_vm3, %v5857_v27 }
 0x597   :  { %6331 = vmatprep.subr.msk.mxu0 %vm8744_vm4, %v1467_v28 }
 0x599   :  { %6329 = vmatmul.mubr.msk.f32.vlgmr.msra.gmra.mxu0 %vm8745_vm3, %v5858_v29 }
 0x59a   :  { %6332 = vmatpush3.msk.msra.mxu0 %vm8744_vm4, %v1467_v28  ;;  %6333 = vmatprep.mubr.msk.f32.mxu0 %vm8745_vm3, %v5862_v30 }
 0x59b   :  { %6336 = vmatprep.subr.mxu0 %v1562_v32 }
 0x59d   :  { %6334 = vmatmul.mubr.msk.f32.vlgmr.msra.gmra.mxu0 %vm8745_vm3, %v5863_v31 }
 0x59e   :  { %6337 = vmatpush3.msra.mxu0 %v1562_v32 }
 0x59f   :  { %6338 = vmatprep.subr.mxu0 %v1561_v33 }
 0x5a0   :  { %6339 = vmatpush3.msra.mxu0 %v1561_v33 }
 0x5a1   :  { %6343 = vmatprep.subr.mxu0 %v1652_v34 }
 0x651   :  { %v6320_v35 = vpop.f32.mrf.mxu0 }
 0x653   :  { %v1281_v36 = vpop.f32.mrf.mxu0 }
 0x655   :  { %v6325_v37 = vpop.f32.mrf.mxu0 }
 0x656   :  { %v1370_v43 = vadd.f32 %v6325_v37, %v6320_v35 }
 0x657   :  { %v1364_v38 = vpop.f32.mrf.mxu0 }
 0x658   :  { %v1365_v41 = vadd.f32 %v1364_v38, %v1281_v36 }
 0x659   :  { %v6330_v39 = vpop.f32.mrf.mxu0 }
 0x65a   :  { %v1462_v46 = vadd.f32 %v6330_v39, %v1370_v43  ;;  %v2011_v43 = vld [vmem:[%s8707_s16] sm:$0xff] }
 0x65b   :  { %v1452_v40 = vpop.f32.mrf.mxu0 }
 0x65c   :  { %v1461_v45 = vadd.f32 %v1452_v40, %v1365_v41 }
 0x65d   :  { %v6335_v44 = vpop.f32.mrf.mxu0 }
 0x65e   :  { %v7481_v49 = vadd.f32 %v6335_v44, %v1462_v46  ;;  %v5892_v44 = vld [vmem:[%s8703_s12 + $0x18] sm:$0xff] }
 0x65f   :  { %v1542_v47 = vpop.f32.mrf.mxu0 }
 0x660   :  { %v7479_v48 = vadd.f32 %v1542_v47, %v1461_v45  ;;  %v5891_v47 = vld [vmem:[%s8703_s12 + $0x10] sm:$0xff] }
 0x662   :  { %6340 = vmatprep.mubr.msk.f32.mxu0 %vm439_vm5, %v7479_v48 }
 0x663   :  { %6341 = vmatmul.mubr.msk.f32.vlgmr.msra.gmra.mxu0 %vm439_vm5, %v7481_v49 }
 0x664   :  { %6344 = vmatpush3.msra.mxu0 %v1652_v34  ;;  %6347 = vmatprep.mubr.msk.f32.mxu0 %vm439_vm5, %v7479_v48 }
 0x665   :  { %6345 = vmatprep.subr.mxu0 %v1651_v50 }
 0x666   :  { %6346 = vmatpush3.msra.mxu0 %v1651_v50 }
 0x667   :  { %6348 = vmatmul.mubr.msk.f32.vlgmr.msra.gmra.mxu0 %vm439_vm5, %v7481_v49  ;;  %6350 = vmatprep.subr.mxu0 %v1736_v51 }
 0x668   :  { %6351 = vmatpush3.msra.mxu0 %v1736_v51  ;;  %6354 = vmatprep.mubr.msk.f32.mxu0 %vm439_vm5, %v7479_v48 }
 0x669   :  { %6352 = vmatprep.subr.mxu0 %v1735_v52 }
 0x66a   :  { %6353 = vmatpush3.msra.mxu0 %v1735_v52 }
 0x66b   :  { %6355 = vmatmul.mubr.msk.f32.vlgmr.msra.gmra.mxu0 %vm439_vm5, %v7481_v49 }
 0x723   :  { %v6342_v53 = vpop.f32.mrf.mxu0 }
 0x724   :  { %v1648_v4 = vadd.f32 %v6342_v53, %v5868_v54  ;;  %v5894_v53 = vld [vmem:[%s8704_s13 + $0x1] ss:$0 sm:$0xff] }
 0x725   :  { %v1642_v55 = vpop.f32.mrf.mxu0 }
 0x726   :  { %v1643_v57 = vadd.f32 %v5868_v54, %v1642_v55 }
 0x727   :  { %v6349_v58 = vpop.f32.mrf.mxu0 }
 0x728   :  { %v1732_v59 = vadd.f32 %v6349_v58, %v5871_v56  ;;  %6361 = vmatprep.mubr.msk.f32.mxu0 %vm1042_vm2, %v1643_v57 }
 0x729   :  { %v1726_v60 = vpop.f32.mrf.mxu0 }
 0x72a   :  { %v1727_v62 = vadd.f32 %v5871_v56, %v1726_v60  ;;  %6357 = vmatprep.subr.msk.mxu0 %vm1042_vm2, %v1732_v59 }
 0x72b   :  { %v6356_v63 = vpop.f32.mrf.mxu0  ;;  %6358 = vmatpush3.xpose.msk.msra.mxu0 %vm1042_vm2, %v1732_v59 }
 0x72c   :  { %v1816_v0 = vadd.f32 %v6356_v63, %v5874_v61  ;;  %6359 = vmatprep.subr.msk.mxu0 %vm1042_vm2, %v1727_v62 }
 0x72d   :  { %v1810_v1 = vpop.f32.mrf.mxu0 }
 0x72e   :  { %v1811_v3 = vadd.f32 %v5874_v61, %v1810_v1  ;;  %6364 = vmatprep.subr.mxu1 %v1816_v0 }
 0x72f   :  { %6360 = vmatpush3.xpose.msk.msra.mxu0 %vm1042_vm2, %v1727_v62  ;;  %6365 = vmatpush3.msra.mxu1 %v1816_v0 }
 0x730   :  { %6366 = vmatprep.subr.mxu1 %v1811_v3  ;;  %6376 = vmatprep.subr.mxu0 %v5886_v2 }
 0x731   :  { %6367 = vmatpush3.msra.mxu1 %v1811_v3 }
 0x732   :  { %6362 = vmatmul.mubr.msk.f32.vlgmr.msra.gmra.mxu0 %vm1042_vm2, %v1648_v4  ;;  %6371 = vmatprep.subr.mxu1 %v2011_v43 }
 0x733   :  { %6377 = vmatpush3.msra.mxu0 %v5886_v2  ;;  %6380 = vmatprep.mubr.msk.f32.mxu0 %vm439_vm5, %v7479_v48 }
 0x734   :  { %6378 = vmatprep.subr.mxu0 %v5885_v5 }
 0x735   :  { %6379 = vmatpush3.msra.mxu0 %v5885_v5 }
 0x736   :  { %6381 = vmatmul.mubr.msk.f32.vlgmr.msra.gmra.mxu0 %vm439_vm5, %v7481_v49  ;;  %6390 = vmatprep.subr.mxu0 %v5898_v6 }
 0x737   :  { %6391 = vmatpush3.msra.mxu0 %v5898_v6  ;;  %6394 = vmatprep.mubr.msk.f32.mxu0 %vm439_vm5, %v7479_v48 }
 0x738   :  { %6392 = vmatprep.subr.mxu0 %v5897_v7 }
 0x739   :  { %6393 = vmatpush3.msra.mxu0 %v5897_v7 }
 0x73a   :  { %6395 = vmatmul.mubr.msk.f32.vlgmr.msra.gmra.mxu0 %vm439_vm5, %v7481_v49 }
 0x7f2   :  { %v6363_v8 = vpop.f32.mrf.mxu0 }
 0x7f3   :  { %v1907_v10 = vmul.f32 0.35355338, %v6363_v8 }
 0x7f4   :  { %v1897_v11 = vpop.f32.mrf.mxu0 }
 0x7f5   :  { %v1906_v15 = vmul.f32 0.35355338, %v1897_v11  ;;  %v1911_v16 = vsel %vm439_vm5, %v1907_v10, -inf }
 0x7f6   :  { %1912 = vmax.xlane.f32.xlu1 %v1911_v16  ;;  %v6382_v17 = vpop.f32.mrf.mxu0 }
 0x7f7   :  { %v7543_v18 = vadd.f32 %v6382_v17, %v5888_v13  ;;  %v1908_v19 = vsel %vm439_vm5, %v1906_v15, -inf  ;;  %v5909_v17 = vld [vmem:[%s8707_s16 + $0x8] sm:$0xff] }
 0x7f8   :  { %v2172_v20 = vpop.f32.mrf.mxu0  ;;  %1909 = vmax.xlane.f32.xlu0 %v1908_v19 }
 0x7f9   :  { %v2173_v50 = vadd.f32 %v5888_v13, %v2172_v20  ;;  %v2749_v20 = vld [vmem:[%s8709_s18 + $0xf8] sm:$0xff] }
 0x7fa   :  { %v6396_v22 = vpop.f32.mrf.mxu0 }
 0x7fb   :  { %v2350_v23 = vadd.f32 %v6396_v22, %v5900_v21  ;;  %v2748_v22 = vld [vmem:[%s8709_s18 + $0xf0] sm:$0xff] }
 0x7fc   :  { %v2344_v24 = vpop.f32.mrf.mxu0 }
 0x7fd   :  { %v2345_v25 = vadd.f32 %v5900_v21, %v2344_v24  ;;  %6404 = vmatprep.subr.mxu0 %v2350_v23  ;;  %v2733_v21 = vld [vmem:[%s8709_s18 + $0x78] sm:$0xff]  ;;  %v2747_v24 = vld [vmem:[%s8709_s18 + $0xe8] sm:$0xff] }
 0x7fe   :  { %6405 = vmatpush3.msra.mxu0 %v2350_v23  ;;  %v2732_v23 = vld [vmem:[%s8709_s18 + $0x70] sm:$0xff] }
 0x7ff   :  { %6406 = vmatprep.subr.mxu0 %v2345_v25 }
 0x800   :  { %6407 = vmatpush3.msra.mxu0 %v2345_v25  ;;  %v2731_v25 = vld [vmem:[%s8709_s18 + $0x68] sm:$0xff] }
 0x801   :  { %6411 = vmatprep.subr.mxu0 %v5909_v17 }
 0x87f   :  { %v1913_v26 = vpop.xlane.xlu1 %1912 }
 0x880   :  { %v1915_v27 = vsub.f32 %v1907_v10, %v1913_v26  ;;  %v2746_v26 = vld [vmem:[%s8709_s18 + $0xe0] sm:$0xff] }
 0x881   :  { %v1910_v28 = vpop.xlane.xlu0 %1909 }
 0x882   :  { %v1914_v29 = vsub.f32 %v1906_v15, %v1910_v28  ;;  %v1918_v30 = vmul.f32 1.442695, %v1915_v27  ;;  %v2730_v27 = vld [vmem:[%s8709_s18 + $0x60] sm:$0xff]  ;;  %v2745_v28 = vld [vmem:[%s8709_s18 + $0xd8] sm:$0xff] }
 0x884   :  { %v1916_v31 = vmul.f32 1.442695, %v1914_v29  ;;  %v2729_v29 = vld [vmem:[%s8709_s18 + $0x58] sm:$0xff] }
 0x886   :  { %6680 = vpow2.f32 %v1916_v31  ;;  %v2728_v31 = vld [vmem:[%s8709_s18 + $0x50] sm:$0xff] }
 0x887   :  { %6682 = vpow2.f32 %v1918_v30  ;;  %v2744_v30 = vld [vmem:[%s8709_s18 + $0xd0] sm:$0xff] }
 0x893   :  { %v6681_v32 = vpop.eup %6680 }
 0x894   :  { %v1920_v33 = vsel %vm439_vm5, %v6681_v32, 0.0  ;;  %v6683_v34 = vpop.eup %6682 }
 0x895   :  { %1921 = vadd.xlane.f32.xlu0 %v1920_v33  ;;  %v1923_v35 = vsel %vm439_vm5, %v6683_v34, 0.0  ;;  %v2727_v33 = vld [vmem:[%s8709_s18 + $0x48] sm:$0xff] }
 0x899   :  { %1924 = vadd.xlane.f32.xlu0 %v1923_v35  ;;  %v5867_v35 = vld [vmem:[%s8708_s17] ss:$0 sm:$0xff] }
 0x91e   :  { %v1922_v36 = vpop.xlane.xlu0 %1921 }
 0x91f   :  { %6684 = vrcp.f32 %v1922_v36 }
 0x922   :  { %v1925_v37 = vpop.xlane.xlu0 %1924 }
 0x923   :  { %6686 = vrcp.f32 %v1925_v37 }
 0x92c   :  { %v6685_v38 = vpop.eup %6684 }
 0x92d   :  { %v1928_v39 = vmul.f32 %v6685_v38, %v6681_v32  ;;  %v2743_v32 = vld [vmem:[%s8709_s18 + $0xc8] sm:$0xff] }
 0x92f   :  { %6368 = vmatprep.mubr.msk.f32.mxu1 %vm439_vm5, %v1928_v39 }
 0x930   :  { %v6687_v40 = vpop.eup %6686 }
 0x931   :  { %v1929_v41 = vmul.f32 %v6687_v40, %v6683_v34  ;;  %v2742_v34 = vld [vmem:[%s8709_s18 + $0xc0] sm:$0xff] }
 0x933   :  { %6369 = vmatmul.mubr.msk.f32.vlgmr.msra.gmra.mxu1 %vm439_vm5, %v1929_v41 }
 0x934   :  { %6372 = vmatpush3.msra.mxu1 %v2011_v43  ;;  %v2726_v43 = vld [vmem:[%s8709_s18 + $0x40] sm:$0xff] }
 0x935   :  { %6383 = vmatprep.subr.mxu1 %v5892_v44 }
 0x9f3   :  { %v6370_v45 = vpop.f32.mrf.mxu1 }
 0x9f5   :  { %v2002_v46 = vpop.f32.mrf.mxu1 }
 0x9f6   :  { %6373 = vmatprep.mubr.msk.f32.mxu1 %vm1042_vm2, %v2002_v46  ;;  %v2740_v46 = vld [vmem:[%s8709_s18 + $0xb0] sm:$0xff] }
 0x9f7   :  { %6374 = vmatmul.mubr.msk.f32.vlgmr.msra.gmra.mxu1 %vm1042_vm2, %v6370_v45  ;;  %v2725_v45 = vld [vmem:[%s8709_s18 + $0x38] sm:$0xff] }
 0x9f8   :  { %6384 = vmatpush3.msra.mxu1 %v5892_v44  ;;  %6387 = vmatprep.mubr.msk.f32.mxu1 %vm439_vm5, %v7479_v48  ;;  %v2741_v44 = vld [vmem:[%s8709_s18 + $0xb8] sm:$0xff] }
 0x9f9   :  { %6385 = vmatprep.subr.mxu1 %v5891_v47 }
 0x9fa   :  { %6386 = vmatpush3.msra.mxu1 %v5891_v47  ;;  %v2724_v47 = vld [vmem:[%s8709_s18 + $0x30] sm:$0xff] }
 0x9fb   :  { %6388 = vmatmul.mubr.msk.f32.vlgmr.msra.gmra.mxu1 %vm439_vm5, %v7481_v49 }
 0x9fc   :  { %6401 = vmatprep.mubr.msk.f32.mxu1 %vm1042_vm2, %v2173_v50  ;;  %v2739_v50 = vld [vmem:[%s8709_s18 + $0xa8] sm:$0xff] }
 0xab7   :  { %v7569_v51 = vpop.f32.mrf.mxu1 }
 0xab8   :  { %v2094_v36 = vadd.f32 %v7569_v51, %v5867_v35  ;;  %v2723_v51 = vld [vmem:[%s8709_s18 + $0x28] sm:$0xff] }
 0xab9   :  { %v7571_v52 = vpop.f32.mrf.mxu1 }
 0xaba   :  { %v2093_v38 = vadd.f32 %v5867_v35, %v7571_v52  ;;  %v2738_v52 = vld [vmem:[%s8709_s18 + $0xa0] sm:$0xff] }
 0xabb   :  { %v6389_v54 = vpop.f32.mrf.mxu1 }
 0xabc   :  { %v2264_v55 = vadd.f32 %v6389_v54, %v5894_v53 }
 0xabd   :  { %v2258_v56 = vpop.f32.mrf.mxu1 }
 0xabe   :  { %v2259_v48 = vadd.f32 %v5894_v53, %v2258_v56  ;;  %6397 = vmatprep.subr.msk.mxu1 %vm1042_vm2, %v2264_v55 }
 0xabf   :  { %6398 = vmatpush3.xpose.msk.msra.mxu1 %vm1042_vm2, %v2264_v55 }
 0xac0   :  { %6399 = vmatprep.subr.msk.mxu1 %vm1042_vm2, %v2259_v48 }
 0xac3   :  { %6400 = vmatpush3.xpose.msk.msra.mxu1 %vm1042_vm2, %v2259_v48 }
 0xac4   :  { %6140 = vmatprep.subr.mxu1 %v2749_v20 }
 0xac6   :  { %6402 = vmatmul.mubr.msk.f32.vlgmr.msra.gmra.mxu1 %vm1042_vm2, %v7543_v18 }
 0xac7   :  { %6141 = vmatpush3.msra.mxu1 %v2733_v21  ;;  %v2849_v21 = vld [vmem:[%s8711_s21 + $0x78] sm:$0xff] }
 0xac8   :  { %6142 = vmatprep.subr.mxu1 %v2748_v22  ;;  %v2848_v22 = vld [vmem:[%s8711_s21 + $0x70] sm:$0xff] }
 0xac9   :  { %6143 = vmatpush3.msra.mxu1 %v2732_v23  ;;  %v2821_v23 = vld [vmem:[#allocation6] sm:$0x1] }
 0xaca   :  { %6144 = vmatprep.subr.mxu1 %v2747_v24  ;;  %v2847_v24 = vld [vmem:[%s8711_s21 + $0x68] sm:$0xff] }
 0xacb   :  { %6145 = vmatpush3.msra.mxu1 %v2731_v25  ;;  %v5933_v25 = vld [vmem:[%s8760_s28 + $0x118] sm:$0xff] }
 0xacc   :  { %6146 = vmatprep.subr.mxu1 %v2746_v26  ;;  %v2846_v26 = vld [vmem:[%s8711_s21 + $0x60] sm:$0xff] }
 0xacd   :  { %6147 = vmatpush3.msra.mxu1 %v2730_v27  ;;  %v2845_v27 = vld [vmem:[%s8711_s21 + $0x58] sm:$0xff] }
 0xace   :  { %6148 = vmatprep.subr.mxu1 %v2745_v28  ;;  %v2844_v28 = vld [vmem:[%s8711_s21 + $0x50] sm:$0xff] }
 0xacf   :  { %6149 = vmatpush3.msra.mxu1 %v2729_v29  ;;  %v2843_v29 = vld [vmem:[%s8711_s21 + $0x48] sm:$0xff] }
 0xad0   :  { %6150 = vmatprep.subr.mxu1 %v2744_v30  ;;  %v2842_v30 = vld [vmem:[%s8711_s21 + $0x40] sm:$0xff] }
 0xad1   :  { %6151 = vmatpush3.msra.mxu1 %v2728_v31  ;;  %v2841_v31 = vld [vmem:[%s8711_s21 + $0x38] sm:$0xff] }
 0xad2   :  { %6152 = vmatprep.subr.mxu1 %v2743_v32  ;;  %v2840_v32 = vld [vmem:[%s8711_s21 + $0x30] sm:$0xff] }
 0xad3   :  { %6153 = vmatpush3.msra.mxu1 %v2727_v33  ;;  %v2839_v33 = vld [vmem:[%s8711_s21 + $0x28] sm:$0xff] }
 0xad4   :  { %6154 = vmatprep.subr.mxu1 %v2742_v34 }
 0xad5   :  { %6155 = vmatpush3.msra.mxu1 %v2726_v43 }
 0xad6   :  { %6156 = vmatprep.subr.mxu1 %v2741_v44 }
 0xad7   :  { %6157 = vmatpush3.msra.mxu1 %v2725_v45 }
 0xad8   :  { %6158 = vmatprep.subr.mxu1 %v2740_v46 }
 0xad9   :  { %6159 = vmatpush3.msra.mxu1 %v2724_v47 }
 0xada   :  { %6160 = vmatprep.subr.mxu1 %v2739_v50 }
 0xadb   :  { %6161 = vmatpush3.msra.mxu1 %v2723_v51 }
 0xadc   :  { %6162 = vmatprep.subr.mxu1 %v2738_v52 }
 0xb86   :  { %v6403_v49 = vpop.f32.mrf.mxu1 }
 0xb87   :  { %v2441_v57 = vmul.f32 0.35355338, %v6403_v49 }
 0xb88   :  { %v2431_v58 = vpop.f32.mrf.mxu1 }
 0xb89   :  { %v2440_v59 = vmul.f32 0.35355338, %v2431_v58  ;;  %v2445_v60 = vsel %vm439_vm5, %v2441_v57, -inf }
 0xb8a   :  { %2446 = vmax.xlane.f32.xlu0 %v2445_v60  ;;  %v2737_v60 = vld [vmem:[%s8709_s18 + $0x98] sm:$0xff] }
 0xb8b   :  { %v2442_v61 = vsel %vm439_vm5, %v2440_v59, -inf }
 0xb8c   :  { %2443 = vmax.xlane.f32.xlu1 %v2442_v61 }
 0xc13   :  { %v2447_v62 = vpop.xlane.xlu0 %2446 }
 0xc14   :  { %v2449_v63 = vsub.f32 %v2441_v57, %v2447_v62 }
 0xc15   :  { %v2444_v0 = vpop.xlane.xlu1 %2443 }
 0xc16   :  { %v2452_v1 = vmul.f32 1.442695, %v2449_v63  ;;  %v2448_v2 = vsub.f32 %v2440_v59, %v2444_v0  ;;  %v2722_v59 = vld [vmem:[%s8709_s18 + $0x20] sm:$0xff]  ;;  %v2721_v63 = vld [vmem:[%s8709_s18 + $0x18] sm:$0xff] }
 0xc17   :  { %6163 = vmatpush3.msra.mxu1 %v2722_v59 }
 0xc18   :  { %6688 = vpow2.f32 %v2452_v1  ;;  %v2450_v3 = vmul.f32 1.442695, %v2448_v2  ;;  %6164 = vmatprep.subr.mxu1 %v2737_v60  ;;  %v2736_v2 = vld [vmem:[%s8709_s18 + $0x90] sm:$0xff] }
 0xc19   :  { %6165 = vmatpush3.msra.mxu1 %v2721_v63 }
 0xc1a   :  { %6690 = vpow2.f32 %v2450_v3  ;;  %6166 = vmatprep.subr.mxu1 %v2736_v2 }
 0xc25   :  { %v6689_v4 = vpop.eup %6688 }
 0xc26   :  { %v2457_v5 = vsel %vm439_vm5, %v6689_v4, 0.0 }
 0xc27   :  { %v6691_v6 = vpop.eup %6690  ;;  %2458 = vadd.xlane.f32.xlu0 %v2457_v5  ;;  %v2720_v5 = vld [vmem:[%s8709_s18 + $0x10] sm:$0xff] }
 0xc28   :  { %v2454_v7 = vsel %vm439_vm5, %v6691_v6, 0.0  ;;  %6167 = vmatpush3.msra.mxu1 %v2720_v5 }
 0xc29   :  { %2455 = vadd.xlane.f32.xlu1 %v2454_v7 }
 0xcb0   :  { %v2459_v8 = vpop.xlane.xlu0 %2458 }
 0xcb1   :  { %6692 = vrcp.f32 %v2459_v8 }
 0xcb2   :  { %v2456_v10 = vpop.xlane.xlu1 %2455 }
 0xcb3   :  { %6694 = vrcp.f32 %v2456_v10 }
 0xcbe   :  { %v6693_v11 = vpop.eup %6692 }
 0xcbf   :  { %v2463_v16 = vmul.f32 %v6693_v11, %v6689_v4 }
 0xcc0   :  { %v6695_v13 = vpop.eup %6694 }
 0xcc1   :  { %v2462_v15 = vmul.f32 %v6695_v13, %v6691_v6  ;;  %v2735_v6 = vld [vmem:[%s8709_s18 + $0x88] sm:$0xff] }
 0xcc2   :  { %v2719_v13 = vld [vmem:[%s8709_s18 + $0x8] sm:$0xff]  ;;  %6168 = vmatprep.subr.mxu1 %v2735_v6 }
 0xcc3   :  { %6408 = vmatprep.mubr.msk.f32.mxu0 %vm439_vm5, %v2462_v15  ;;  %6169 = vmatpush3.msra.mxu1 %v2719_v13  ;;  %v5929_v13 = vld [vmem:[%s8760_s28 + $0xf8] sm:$0xff] }
 0xcc4   :  { %6409 = vmatmul.mubr.msk.f32.vlgmr.msra.gmra.mxu0 %vm439_vm5, %v2463_v16  ;;  %v2734_v16 = vld [vmem:[%s8709_s18 + $0x80] sm:$0xff] }
 0xcc5   :  { %6412 = vmatpush3.msra.mxu0 %v5909_v17  ;;  %v2718_v17 = vld [vmem:[%s8709_s18] sm:$0xff]  ;;  %6170 = vmatprep.subr.mxu1 %v2734_v16  ;;  %v5927_v16 = vld [vmem:[%s8760_s28 + $0xe8] sm:$0xff]  ;;  %s8773_s18 = smov 32  }
 0xcc6   :  { %6416 = vmatprep.subr.mxu0 %v6734_v42  ;;  %6171 = vmatpush3.msra.mxu1 %v2718_v17  ;;  %v5926_v17 = vld [vmem:[%s8760_s28 + $0xe0] sm:$0xff] }
 0xcc7   :  { %2982 = vmatprep.subr.mxu1 %v5933_v25  ;;  %v2836_v25 = vld [vmem:[%s8711_s21 + $0x10] sm:$0xff] }
 0xd84   :  { %v6410_v18 = vpop.f32.mrf.mxu0 }
 0xd86   :  { %v2536_v19 = vpop.f32.mrf.mxu0 }
 0xd87   :  { %6413 = vmatprep.mubr.msk.f32.mxu0 %vm1042_vm2, %v2536_v19 }
 0xd88   :  { %6414 = vmatmul.mubr.msk.f32.vlgmr.msra.gmra.mxu0 %vm1042_vm2, %v6410_v18  ;;  %v5960_v18 = vld [vmem:[#allocation4] ss:$0 sm:$0xff] }
 0xd89   :  { %6448 = vmatprep.mubr.msk.f32.mxu0 %vm6743_vm15, %v6734_v42  ;;  %6417 = vmatpush3.msra.mxu0 %v2849_v21  ;;  %v5923_v21 = vld [vmem:[%s8760_s28 + $0xc8] sm:$0xff] }
 0xd8a   :  { %6418 = vmatprep.subr.mxu0 %v6734_v42 }
 0xd8b   :  { %6419 = vmatpush3.msra.mxu0 %v2848_v22  ;;  %v2837_v22 = vld [vmem:[%s8711_s21 + $0x18] sm:$0xff] }
 0xd8c   :  { %6420 = vmatprep.subr.mxu0 %v6734_v42 }
 0xd8d   :  { %6421 = vmatpush3.msra.mxu0 %v2847_v24  ;;  %v5921_v24 = vld [vmem:[%s8760_s28 + $0xb8] sm:$0xff] }
 0xd8e   :  { %6422 = vmatprep.subr.mxu0 %v6734_v42 }
 0xd8f   :  { %6423 = vmatpush3.msra.mxu0 %v2846_v26  ;;  %v5920_v26 = vld [vmem:[%s8760_s28 + $0xb0] sm:$0xff] }
 0xd90   :  { %6424 = vmatprep.subr.mxu0 %v6734_v42 }
 0xd91   :  { %6425 = vmatpush3.msra.mxu0 %v2845_v27  ;;  %v5919_v27 = vld [vmem:[%s8760_s28 + $0xa8] sm:$0xff] }
 0xd92   :  { %6426 = vmatprep.subr.mxu0 %v6734_v42 }
 0xd93   :  { %6427 = vmatpush3.msra.mxu0 %v2844_v28  ;;  %v2835_v28 = vld [vmem:[%s8711_s21 + $0x8] sm:$0xff] }
 0xd94   :  { %6428 = vmatprep.subr.mxu0 %v6734_v42 }
 0xd95   :  { %6429 = vmatpush3.msra.mxu0 %v2843_v29  ;;  %v5918_v29 = vld [vmem:[%s8760_s28 + $0xa0] sm:$0xff] }
 0xd96   :  { %6430 = vmatprep.subr.mxu0 %v6734_v42 }
 0xd97   :  { %6431 = vmatpush3.msra.mxu0 %v2842_v30  ;;  %v5917_v30 = vld [vmem:[%s8760_s28 + $0x98] sm:$0xff] }
 0xd98   :  { %6432 = vmatprep.subr.mxu0 %v6734_v42 }
 0xd99   :  { %6433 = vmatpush3.msra.mxu0 %v2841_v31  ;;  %v2834_v31 = vld [vmem:[%s8711_s21] sm:$0xff] }
 0xd9a   :  { %6434 = vmatprep.subr.mxu0 %v6734_v42 }
 0xd9b   :  { %6435 = vmatpush3.msra.mxu0 %v2840_v32  ;;  %v5916_v32 = vld [vmem:[%s8760_s28 + $0x90] sm:$0xff] }
 0xd9c   :  { %6436 = vmatprep.subr.mxu0 %v6734_v42 }
 0xd9d   :  { %6437 = vmatpush3.msra.mxu0 %v2839_v33  ;;  %v2941_v33 = vld [vmem:[%s8760_s28 + $0x88] sm:$0xff] }
 0xd9e   :  { %6438 = vmatprep.subr.mxu0 %v6734_v42 }
 0xe48   :  { %v6415_v37 = vpop.f32.mrf.mxu0 }
 0xe49   :  { %v2629_v39 = vadd.f32 %v6415_v37, %v2094_v36 }
 0xe4a   :  { %v2619_v40 = vpop.f32.mrf.mxu0 }
 0xe4b   :  { %2631 = vst.msk [vmem:[#allocation3 + $0x8] sm:$0xff] %vm439_vm5, %v2629_v39  ;;  %v2628_v41 = vadd.f32 %v2619_v40, %v2093_v38 }
 0xe4d   :  { %2630 = vst.msk [vmem:[#allocation3] sm:$0xff] %vm439_vm5, %v2628_v41 }
 0xe52   :  { %v2642_v53 = vld [vmem:[#allocation3 + $0xa] sm:$0x1]  ;;  %v2641_v56 = vld [vmem:[#allocation3 + $0x9] sm:$0x1]  ;;  %v2645_v61 = vld [vmem:[#allocation3 + $0xd] sm:$0x1] }
 0xe53   :  { %v2643_v62 = vld [vmem:[#allocation3 + $0xb] sm:$0x1]  ;;  %v2647_v7 = vld [vmem:[#allocation3 + $0xf] sm:$0x1]  ;;  %v2644_v8 = vld [vmem:[#allocation3 + $0xc] sm:$0x1] }
 0xe54   :  { %v2634_v54 = vld [vmem:[#allocation3 + $0x2] sm:$0x1]  ;;  %v2633_v55 = vld [vmem:[#allocation3 + $0x1] sm:$0x1]  ;;  %v2637_v57 = vld [vmem:[#allocation3 + $0x5] sm:$0x1] }
 0xe55   :  { %v6615_v48 = vpack.i.bf16 %v2634_v54, %v2642_v53  ;;  %v6610_v49 = vpack.i.bf16 %v2633_v55, %v2641_v56  ;;  %v2635_v58 = vld [vmem:[#allocation3 + $0x3] sm:$0x1]  ;;  %v6630_v0 = vpack.i.bf16 %v2637_v57, %v2645_v61  ;;  %v2639_v3 = vld [vmem:[#allocation3 + $0x7] sm:$0x1]  ;;  %v2636_v4 = vld [vmem:[#allocation3 + $0x4] sm:$0x1] }
 0xe56   :  { %v6620_v1 = vpack.i.bf16 %v2635_v58, %v2643_v62  ;;  %v6640_v10 = vpack.i.bf16 %v2639_v3, %v2647_v7  ;;  %v6625_v11 = vpack.i.bf16 %v2636_v4, %v2644_v8  ;;  %v2638_v15 = vld [vmem:[#allocation3 + $0x6] sm:$0x1]  ;;  %v2646_v19 = vld [vmem:[#allocation3 + $0xe] sm:$0x1]  ;;  %v2640_v41 = vld [vmem:[#allocation3 + $0x8] sm:$0x1] }
 0xe57   :  { %6616 = vrot.lane.b32.xlu0 %v6615_v48, %s8735_s30  ;;  %6611 = vrot.lane.b32.xlu1 %v6610_v49, %s8767_s6  ;;  %v6635_v20 = vpack.i.bf16 %v2638_v15, %v2646_v19  ;;  %v2632_v43 = vld [vmem:[#allocation3] sm:$0x1]  ;;  %v5932_v8 = vld [vmem:[%s8760_s28 + $0x110] sm:$0xff] }
 0xe58   :  { %v5928_v15 = vld [vmem:[%s8760_s28 + $0xf0] sm:$0xff]  ;;  %v2838_v19 = vld [vmem:[%s8711_s21 + $0x20] sm:$0xff] }
 0xe59   :  { %6439 = vmatpush3.msra.mxu0 %v2838_v19  ;;  %v2926_v19 = vld [vmem:[%s8760_s28 + $0x10] sm:$0xff] }
 0xe5a   :  { %6440 = vmatprep.subr.mxu0 %v6734_v42 }
 0xe5b   :  { %6631 = vrot.lane.b32.xlu0 %v6630_v0, %s8768_s29  ;;  %6621 = vrot.lane.b32.xlu1 %v6620_v1, %s8769_s0 }
 0xe5c   :  { %6441 = vmatpush3.msra.mxu0 %v2837_v22  ;;  %v5912_v22 = vld [vmem:[%s8761_s20 + $0x18] sm:$0xff] }
 0xe5d   :  { %6442 = vmatprep.subr.mxu0 %v6734_v42 }
 0xe5e   :  { %6443 = vmatpush3.msra.mxu0 %v2836_v25 }
 0xe5f   :  { %6641 = vrot.lane.b32.xlu0 %v6640_v10, %s8770_s7  ;;  %6626 = vrot.lane.b32.xlu1 %v6625_v11, %s8771_s25  ;;  %v5931_v10 = vld [vmem:[%s8760_s28 + $0x108] sm:$0xff]  ;;  %v5930_v11 = vld [vmem:[%s8760_s28 + $0x100] sm:$0xff] }
 0xe60   :  { %6444 = vmatprep.subr.mxu0 %v6734_v42 }
 0xe61   :  { %6445 = vmatpush3.msra.mxu0 %v2835_v28 }
 0xe62   :  { %6446 = vmatprep.subr.mxu0 %v6734_v42 }
 0xe63   :  { %3262 = vperm.xlu0 %6608, %v5960_v18   ;;  %6636 = vrot.lane.b32.xlu1 %v6635_v20, %s8772_s26  ;;  %v5925_v18 = vld [vmem:[%s8760_s28 + $0xd8] sm:$0xff]  ;;  %v5924_v20 = vld [vmem:[%s8760_s28 + $0xd0] sm:$0xff] }
 0xe64   :  { %6447 = vmatpush3.msra.mxu0 %v2834_v31 }
 0xe65   :  { %3065 = vmatprep.subr.mxu0 %v2941_v33 }
 0xe67   :  { %2825 = vperm.xlu1 %6609, %v2821_v23   ;;  %v5922_v23 = vld [vmem:[%s8760_s28 + $0xc0] sm:$0xff] }
 0xec9   :  { %v6617_v34 = vpop.permute.xlu0 %6616  ;;  %v6612_v35 = vpop.permute.xlu1 %6611 }
 0xeca   :  { %v6614_v36 = vunpack.i.h.bf16 %v6612_v35  ;;  %v6613_v37 = vunpack.i.l.bf16 %v6612_v35  ;;  %v6619_v39 = vunpack.i.h.bf16 %v6617_v34  ;;  %v6618_v40 = vunpack.i.l.bf16 %v6617_v34  ;;  %v5957_v34 = vld [vmem:[%s8760_s28 + $0x1a8] sm:$0xff]  ;;  %v5914_v35 = vld [vmem:[%s8761_s20 + $0x19] sm:$0xff] }
 0xecc   :  { %v2704_v45 = vsel %vm439_vm5, %v2632_v43, %v6614_v36  ;;  %v2711_v46 = vsel %vm439_vm5, %v2640_v41, %v6613_v37  ;;  %v5956_v36 = vld [vmem:[%s8760_s28 + $0x1a0] sm:$0xff]  ;;  %v5955_v37 = vld [vmem:[%s8760_s28 + $0x198] sm:$0xff]  ;;  %v5950_v43 = vld [vmem:[%s8760_s28 + $0x170] sm:$0xff] }
 0xecd   :  { %v6622_v38 = vpop.permute.xlu1 %6621  ;;  %v6632_v44 = vpop.permute.xlu0 %6631  ;;  %v2705_v52 = vsel %vm681_vm6, %v2704_v45, %v6619_v39  ;;  %v2712_v53 = vsel %vm681_vm6, %v2711_v46, %v6618_v40  ;;  %v5953_v39 = vld [vmem:[%s8760_s28 + $0x188] sm:$0xff]  ;;  %v5952_v40 = vld [vmem:[%s8760_s28 + $0x180] sm:$0xff]  ;;  %v5951_v41 = vld [vmem:[%s8760_s28 + $0x178] sm:$0xff] }
 0xece   :  { %v6624_v47 = vunpack.i.h.bf16 %v6622_v38  ;;  %v6623_v50 = vunpack.i.l.bf16 %v6622_v38  ;;  %v6634_v59 = vunpack.i.h.bf16 %v6632_v44  ;;  %v6633_v60 = vunpack.i.l.bf16 %v6632_v44  ;;  %v5954_v38 = vld [vmem:[%s8760_s28 + $0x190] sm:$0xff]  ;;  %v5949_v44 = vld [vmem:[%s8760_s28 + $0x168] sm:$0xff]  ;;  %v5948_v45 = vld [vmem:[%s8760_s28 + $0x160] sm:$0xff] }
 0xecf   :  { %v5947_v46 = vld [vmem:[%s8760_s28 + $0x158] sm:$0xff] }
 0xed0   :  { %v2706_v56 = vsel %vm684_vm7, %v2705_v52, %v6624_v47  ;;  %v2713_v48 = vsel %vm684_vm7, %v2712_v53, %v6623_v50  ;;  %v5946_v47 = vld [vmem:[%s8760_s28 + $0x150] sm:$0xff]  ;;  %v5945_v50 = vld [vmem:[%s8760_s28 + $0x148] sm:$0xff]  ;;  %v5944_v52 = vld [vmem:[%s8760_s28 + $0x140] sm:$0xff] }
 0xed1   :  { %v6627_v51 = vpop.permute.xlu1 %6626  ;;  %v6642_v49 = vpop.permute.xlu0 %6641  ;;  %v5943_v53 = vld [vmem:[%s8760_s28 + $0x138] sm:$0xff] }
 0xed2   :  { %v6629_v54 = vunpack.i.h.bf16 %v6627_v51  ;;  %v6628_v55 = vunpack.i.l.bf16 %v6627_v51  ;;  %v6644_v0 = vunpack.i.h.bf16 %v6642_v49  ;;  %v6643_v1 = vunpack.i.l.bf16 %v6642_v49  ;;  %v5915_v51 = vld [vmem:[%s8761_s20 + $0x21] sm:$0xff] }
 0xed3   :  { %v5939_v49 = vld [vmem:[%s8761_s20 + $0x22] sm:$0xff] }
 0xed4   :  { %v2707_v57 = vsel %vm687_vm8, %v2706_v56, %v6629_v54  ;;  %v2714_v58 = vsel %vm687_vm8, %v2713_v48, %v6628_v55  ;;  %v5942_v54 = vld [vmem:[%s8760_s28 + $0x130] sm:$0xff]  ;;  %v5941_v55 = vld [vmem:[%s8760_s28 + $0x128] sm:$0xff]  ;;  %v5940_v56 = vld [vmem:[%s8760_s28 + $0x120] sm:$0xff] }
 0xed5   :  { %v6637_v61 = vpop.permute.xlu1 %6636  ;;  %v2715_v2 = vsel %vm690_vm9, %v2714_v58, %v6633_v60  ;;  %v2708_v3 = vsel %vm690_vm9, %v2707_v57, %v6634_v59  ;;  %v5938_v48 = vld [vmem:[%s8761_s20 + $0x1a] sm:$0xff] }
 0xed6   :  { %v6639_v62 = vunpack.i.h.bf16 %v6637_v61  ;;  %v6638_v63 = vunpack.i.l.bf16 %v6637_v61  ;;  %v2750_v59 = vld [vmem:[%s8710_s19] sm:$0x1] }
 0xed8   :  { %v2716_v4 = vsel %vm693_vm10, %v2715_v2, %v6638_v63  ;;  %v2709_v5 = vsel %vm693_vm10, %v2708_v3, %v6639_v62  ;;  %v2939_v3 = vld [vmem:[%s8760_s28 + $0x78] sm:$0xff] }
 0xed9   :  { %v2717_v6 = vsel %vm696_vm11, %v2716_v4, %v6643_v1  ;;  %v2710_v7 = vsel %vm696_vm11, %v2709_v5, %v6644_v0  ;;  %v2940_v1 = vld [vmem:[%s8760_s28 + $0x80] sm:$0xff]  ;;  %v2938_v4 = vld [vmem:[%s8760_s28 + $0x70] sm:$0xff]  ;;  %v2937_v5 = vld [vmem:[%s8760_s28 + $0x68] sm:$0xff] }
 0xeda   :  { %2815 = vmatprep.mubr.f32.mxu1 %v2717_v6  ;;  %v2936_v6 = vld [vmem:[%s8760_s28 + $0x60] sm:$0xff] }
 0xedb   :  { %2816 = vmatmul.mubr.f32.vlgmr.msra.gmra.mxu1 %v2710_v7  ;;  %v2935_v7 = vld [vmem:[%s8760_s28 + $0x58] sm:$0xff] }
 0xedc   :  { %2983 = vmatpush1.msra.mxu1 %v5932_v8  ;;  %3032 = vmatprep.mubr.f32.mxu1 %v6734_v42  ;;  %v2934_v8 = vld [vmem:[%s8760_s28 + $0x50] sm:$0xff] }
 0xedd   :  { %2984 = vmatprep.subr.mxu1 %v5931_v10  ;;  %v2933_v10 = vld [vmem:[%s8760_s28 + $0x48] sm:$0xff] }
 0xede   :  { %2985 = vmatpush1.msra.mxu1 %v5930_v11  ;;  %v2932_v11 = vld [vmem:[%s8760_s28 + $0x40] sm:$0xff] }
 0xedf   :  { %2986 = vmatprep.subr.mxu1 %v5929_v13  ;;  %v2931_v13 = vld [vmem:[%s8760_s28 + $0x38] sm:$0xff] }
 0xee0   :  { %2987 = vmatpush1.msra.mxu1 %v5928_v15  ;;  %v2930_v15 = vld [vmem:[%s8760_s28 + $0x30] sm:$0xff] }
 0xee1   :  { %2988 = vmatprep.subr.mxu1 %v5927_v16  ;;  %v2929_v16 = vld [vmem:[%s8760_s28 + $0x28] sm:$0xff] }
 0xee2   :  { %2989 = vmatpush1.msra.mxu1 %v5926_v17  ;;  %v2826_v58 = vpop.permute.xlu1 %2825  ;;  %v2928_v17 = vld [vmem:[%s8760_s28 + $0x20] sm:$0xff] }
 0xee3   :  { %2990 = vmatprep.subr.mxu1 %v5925_v18  ;;  %v2831_v62 = vrot.slane %v2826_v58, %v7076_v14  ;;  %v2927_v18 = vld [vmem:[%s8760_s28 + $0x18] sm:$0xff] }
 0xee4   :  { %2991 = vmatpush1.msra.mxu1 %v5924_v20  ;;  %v2925_v20 = vld [vmem:[%s8760_s28 + $0x8] sm:$0xff] }
 0xee5   :  { %2992 = vmatprep.subr.mxu1 %v5923_v21  ;;  %v2924_v21 = vld [vmem:[%s8760_s28] sm:$0xff]  ;;  %s8788_s28 = sld [smem:[#allocation19_spill]] }
 0xee6   :  { %2993 = vmatpush1.msra.mxu1 %v5922_v23  ;;  %v5913_v23 = vld [vmem:[%s8761_s20 + $0x20] sm:$0xff] }
 0xee7   :  { %2994 = vmatprep.subr.mxu1 %v5921_v24 }
 0xee8   :  { %2995 = vmatpush1.msra.mxu1 %v5920_v26 }
 0xee9   :  { %2996 = vmatprep.subr.mxu1 %v5919_v27 }
 0xeea   :  { %2997 = vmatpush1.msra.mxu1 %v5918_v29 }
 0xeeb   :  { %2998 = vmatprep.subr.mxu1 %v5917_v30 }
 0xeec   :  { %2999 = vmatpush1.msra.mxu1 %v5916_v32 }
 0xeed   :  { %3168 = vmatprep.subr.mxu1 %v5957_v34  ;;  %5934 = vmatmul.mubr.msk.f32.vlgmr.msra.gmra.mxu1 %vm124_vm0, %v5914_v35  ;;  %v3235_v35 = vld [vmem:[%s8762_s22] sm:$0x3]  ;;  %s8790_s22 = sld [smem:[#allocation22_spill]] }
 0xeee   :  { %3169 = vmatpush1.msra.mxu1 %v5956_v36  ;;  %3038 = vmatprep.mubr.f32.mxu1 %v6734_v42 }
 0xeef   :  { %3170 = vmatprep.subr.mxu1 %v5955_v37 }
 0xef0   :  { %3171 = vmatpush1.msra.mxu1 %v5954_v38 }
 0xef1   :  { %3172 = vmatprep.subr.mxu1 %v5953_v39  ;;  %5935 = vmatmul.mubr.msk.f32.gmra.mxu1 %vm124_vm0, %v5915_v51 }
 0xef2   :  { %3173 = vmatpush1.msra.mxu1 %v5952_v40  ;;  %3218 = vmatprep.mubr.f32.mxu1 %v6734_v42  ;;  %v3244_v40 = vrot.slane %v3235_v35, %v407_v12 }
 0xef3   :  { %3174 = vmatprep.subr.mxu1 %v5951_v41 }
 0xef4   :  { %3175 = vmatpush1.msra.mxu1 %v5950_v43 }
 0xef5   :  { %3176 = vmatprep.subr.mxu1 %v5949_v44  ;;  %v3240_v44 = vrot.slane %v3235_v35, %v7076_v14  ;;  %v5976_v35 = vld [vmem:[%s8764_s3 + $0xe8] sm:$0xff] }
 0xef6   :  { %3177 = vmatpush1.msra.mxu1 %v5948_v45 }
 0xef7   :  { %3178 = vmatprep.subr.mxu1 %v5947_v46 }
 0xef8   :  { %3179 = vmatpush1.msra.mxu1 %v5946_v47 }
 0xef9   :  { %3180 = vmatprep.subr.mxu1 %v5945_v50 }
 0xefa   :  { %3181 = vmatpush1.msra.mxu1 %v5944_v52 }
 0xefb   :  { %3182 = vmatprep.subr.mxu1 %v5943_v53 }
 0xefc   :  { %3183 = vmatpush1.msra.mxu1 %v5942_v54 }
 0xefd   :  { %3184 = vmatprep.subr.mxu1 %v5941_v55  ;;  %v3263_v55 = vpop.permute.xlu0 %3262 }
 0xefe   :  { %3185 = vmatpush1.msra.mxu1 %v5940_v56 }
 0xeff   :  { %5958 = vmatmul.mubr.msk.f32.vlgmr.msra.gmra.mxu1 %vm124_vm0, %v5938_v48  ;;  %3665 = vmatprep.subr.mxu1 %v6734_v42 }
 0xf00   :  { %3224 = vmatprep.mubr.f32.mxu1 %v6734_v42 }
 0xf03   :  { %5959 = vmatmul.mubr.msk.f32.gmra.mxu1 %vm124_vm0, %v5939_v49 }
 0xf9b   :  { %v6172_v57 = vpop.f32.mrf.mxu1 }
 0xf9d   :  { %v6173_v60 = vpop.f32.mrf.mxu1 }
 0xf9e   :  { %v6174_v61 = vadd.f32 %v6173_v60, %v6172_v57  ;;  %v3273_v60 = vld [vmem:[%s8763_s24] sm:$0xff] }
 0xfa0   :  { %v2818_v63 = vadd.f32 %v6174_v61, %v2750_v59 }
 0xfa2   :  { %v2832_v0 = vmul.f32 %v2831_v62, %v2818_v63  ;;  %vm2822_vm1 = vcmp.ge.f32.partialorder %v2818_v63, 0.0  ;;  %v3274_v62 = vld [vmem:[%s8763_s24 + $0x8] sm:$0x3] }
 0xfa4   :  { %v2833_v2 = vsel %vm2822_vm1, %v2818_v63, %v2832_v0  ;;  %v5963_v63 = vld [vmem:[%s8763_s24 + $0x10] sm:$0xff]  ;;  %v5964_v0 = vld [vmem:[%s8763_s24 + $0x18] sm:$0x3]  ;;  %s8791_s24 = sld [smem:[#allocation21_spill]] }
 0xfa5   :  { %6449 = vmatmul.mubr.f32.vlgmr.msra.gmra.mxu0 %v2833_v2 }
 0xfa6   :  { %3066 = vmatpush1.msra.mxu0 %v2940_v1  ;;  %3115 = vmatprep.mubr.f32.mxu0 %v6734_v42 }
 0xfa7   :  { %3067 = vmatprep.subr.mxu0 %v2939_v3 }
 0xfa8   :  { %3068 = vmatpush1.msra.mxu0 %v2938_v4 }
 0xfa9   :  { %3069 = vmatprep.subr.mxu0 %v2937_v5 }
 0xfaa   :  { %3070 = vmatpush1.msra.mxu0 %v2936_v6 }
 0xfab   :  { %3071 = vmatprep.subr.mxu0 %v2935_v7 }
 0xfac   :  { %3072 = vmatpush1.msra.mxu0 %v2934_v8 }
 0xfad   :  { %3073 = vmatprep.subr.mxu0 %v2933_v10  ;;  %v3034_v25 = vpop.f32.mrf.mxu1 }
 0xfae   :  { %3074 = vmatpush1.msra.mxu0 %v2932_v11 }
 0xfaf   :  { %3075 = vmatprep.subr.mxu0 %v2931_v13  ;;  %v3036_v27 = vpop.f32.mrf.mxu1 }
 0xfb0   :  { %3076 = vmatpush1.msra.mxu0 %v2930_v15 }
 0xfb1   :  { %3077 = vmatprep.subr.mxu0 %v2929_v16  ;;  %v3040_v28 = vpop.f32.mrf.mxu1  ;;  %v3550_v16 = vld [vmem:[%s8764_s3 + $0x78] sm:$0xff] }
 0xfb2   :  { %3078 = vmatpush1.msra.mxu0 %v2928_v17  ;;  %v3549_v17 = vld [vmem:[%s8764_s3 + $0x70] sm:$0xff]  ;;  %3666 = vmatpush1.msra.mxu1 %v3550_v16 }
 0xfb3   :  { %3079 = vmatprep.subr.mxu0 %v2927_v18  ;;  %v3042_v29 = vpop.f32.mrf.mxu1  ;;  %3667 = vmatprep.subr.mxu1 %v6734_v42  ;;  %v3548_v18 = vld [vmem:[%s8764_s3 + $0x68] sm:$0xff] }
 0xfb4   :  { %3080 = vmatpush1.msra.mxu0 %v2926_v19  ;;  %3668 = vmatpush1.msra.mxu1 %v3549_v17  ;;  %v3547_v19 = vld [vmem:[%s8764_s3 + $0x60] sm:$0xff] }
 0xfb5   :  { %3081 = vmatprep.subr.mxu0 %v2925_v20  ;;  %3669 = vmatprep.subr.mxu1 %v6734_v42  ;;  %v5982_v20 = vld [vmem:[%s8764_s3 + $0x118] sm:$0xff] }
 0xfb6   :  { %3082 = vmatpush1.msra.mxu0 %v2924_v21  ;;  %3670 = vmatpush1.msra.mxu1 %v3548_v18  ;;  %v5981_v21 = vld [vmem:[%s8764_s3 + $0x110] sm:$0xff] }
 0xfb7   :  { %5936 = vmatmul.mubr.msk.f32.vlgmr.msra.gmra.mxu0 %vm124_vm0, %v5912_v22  ;;  %3671 = vmatprep.subr.mxu1 %v6734_v42  ;;  %v3546_v22 = vld [vmem:[%s8764_s3 + $0x58] sm:$0xff] }
 0xfb8   :  { %3121 = vmatprep.mubr.f32.mxu0 %v6734_v42  ;;  %3672 = vmatpush1.msra.mxu1 %v3547_v19 }
 0xfb9   :  { %3673 = vmatprep.subr.mxu1 %v6734_v42 }
 0xfba   :  { %3674 = vmatpush1.msra.mxu1 %v3546_v22 }
 0xfbb   :  { %5937 = vmatmul.mubr.msk.f32.gmra.mxu0 %vm124_vm0, %v5913_v23  ;;  %3675 = vmatprep.subr.mxu1 %v6734_v42  ;;  %v3545_v23 = vld [vmem:[%s8764_s3 + $0x50] sm:$0xff] }
 0xfbc   :  { %3345 = vmatprep.mubr.f32.mxu0 %v6734_v42  ;;  %3676 = vmatpush1.msra.mxu1 %v3545_v23 }
 0xfbd   :  { %3677 = vmatprep.subr.mxu1 %v6734_v42 }
 0xfbf   :  { %v3220_v30 = vpop.f32.mrf.mxu1 }
 0xfc1   :  { %v3222_v32 = vpop.f32.mrf.mxu1 }
 0xfc3   :  { %v3226_v38 = vpop.f32.mrf.mxu1 }
 0xfc5   :  { %v3228_v50 = vpop.f32.mrf.mxu1 }
0x1065   :  { %v7981_v24 = vpop.f32.mrf.mxu0 }
0x1067   :  { %v6450_v26 = vpop.f32.mrf.mxu0 }
0x1068   :  { %v5979_v26 = vld [vmem:[%s8764_s3 + $0x100] sm:$0xff] }
0x1077   :  { %v3117_v31 = vpop.f32.mrf.mxu0 }
0x1078   :  { %v3118_v33 = vadd.f32 %v3117_v31, %v3034_v25  ;;  %v5980_v25 = vld [vmem:[%s8764_s3 + $0x108] sm:$0xff]  ;;  %v5977_v31 = vld [vmem:[%s8764_s3 + $0xf0] sm:$0xff] }
0x1079   :  { %v3119_v34 = vpop.f32.mrf.mxu0 }
0x107a   :  { %v3120_v36 = vadd.f32 %v3119_v34, %v3036_v27  ;;  %v3231_v43 = vadd.f32 %v3220_v30, %v3118_v33  ;;  %v3544_v27 = vld [vmem:[%s8764_s3 + $0x48] sm:$0xff]  ;;  %v3542_v30 = vld [vmem:[%s8764_s3 + $0x38] sm:$0xff]  ;;  %v3541_v34 = vld [vmem:[%s8764_s3 + $0x30] sm:$0xff] }
0x107b   :  { %v3123_v37 = vpop.f32.mrf.mxu0  ;;  %3678 = vmatpush1.msra.mxu1 %v3544_v27 }
0x107c   :  { %v3232_v39 = vadd.f32 %v3222_v32, %v3120_v36  ;;  %v3124_v41 = vadd.f32 %v3123_v37, %v3040_v28  ;;  %v3247_v54 = vadd.f32 %v3240_v44, %v3231_v43  ;;  %3679 = vmatprep.subr.mxu1 %v6734_v42  ;;  %v3543_v28 = vld [vmem:[%s8764_s3 + $0x40] sm:$0xff]  ;;  %v3540_v36 = vld [vmem:[%s8764_s3 + $0x28] sm:$0xff]  ;;  %v3538_v43 = vld [vmem:[%s8764_s3 + $0x18] sm:$0xff] }
0x107d   :  { %v3125_v45 = vpop.f32.mrf.mxu0  ;;  %3680 = vmatpush1.msra.mxu1 %v3543_v28  ;;  %v5975_v37 = vld [vmem:[%s8764_s3 + $0xe0] sm:$0xff] }
0x107e   :  { %v3233_v46 = vadd.f32 %v3226_v38, %v3124_v41  ;;  %v3126_v47 = vadd.f32 %v3125_v45, %v3042_v29  ;;  %v3248_v51 = vadd.f32 %v3244_v40, %v3232_v39  ;;  %v3265_v12 = vmul.f32 %v3263_v55, %v3247_v54  ;;  %v5978_v29 = vld [vmem:[%s8764_s3 + $0xf8] sm:$0xff]  ;;  %3681 = vmatprep.subr.mxu1 %v6734_v42 }
0x107f   :  { %vm3252_vm3 = vcmp.ge.f32.partialorder %v3247_v54, 0.0  ;;  %3682 = vmatpush1.msra.mxu1 %v3542_v30  ;;  %v5974_v41 = vld [vmem:[%s8764_s3 + $0xd8] sm:$0xff] }
0x1080   :  { %v3249_v52 = vadd.f32 %v3240_v44, %v3233_v46  ;;  %v3234_v53 = vadd.f32 %v3228_v50, %v3126_v47  ;;  %v3266_v9 = vmul.f32 %v3263_v55, %v3248_v51  ;;  %vm3253_vm4 = vcmp.ge.f32.partialorder %v3248_v51, 0.0  ;;  %3683 = vmatprep.subr.mxu1 %v6734_v42  ;;  %v5973_v44 = vld [vmem:[%s8764_s3 + $0xd0] sm:$0xff]  ;;  %v5972_v47 = vld [vmem:[%s8764_s3 + $0xc8] sm:$0xff] }
0x1081   :  { %v3269_v61 = vsel %vm3252_vm3, %v3247_v54, %v3265_v12  ;;  %3684 = vmatpush1.msra.mxu1 %v3541_v34  ;;  %v3537_v46 = vld [vmem:[%s8764_s3 + $0x10] sm:$0xff]  ;;  %v3535_v54 = vld [vmem:[%s8764_s3] sm:$0xff]  ;;  %v5968_v12 = vld [vmem:[%s8764_s3 + $0xa8] sm:$0xff] }
0x1082   :  { %v3250_v56 = vadd.f32 %v3244_v40, %v3234_v53  ;;  %v3267_v48 = vmul.f32 %v3263_v55, %v3249_v52  ;;  %vm3254_vm1 = vcmp.ge.f32.partialorder %v3249_v52, 0.0  ;;  %v3270_v59 = vsel %vm3253_vm4, %v3248_v51, %v3266_v9  ;;  %3685 = vmatprep.subr.mxu1 %v6734_v42  ;;  %v3539_v40 = vld [vmem:[%s8764_s3 + $0x20] sm:$0xff]  ;;  %v3536_v51 = vld [vmem:[%s8764_s3 + $0x8] sm:$0xff]  ;;  %v3553_v9 = vld [vmem:[%s8764_s3 + $0x90] sm:$0xff] }
0x1083   :  { %3686 = vmatpush1.msra.mxu1 %v3540_v36  ;;  %v5971_v53 = vld [vmem:[%s8764_s3 + $0xc0] sm:$0xff] }
0x1084   :  { %vm3255_vm0 = vcmp.ge.f32.partialorder %v3250_v56, 0.0  ;;  %v3268_v49 = vmul.f32 %v3263_v55, %v3250_v56  ;;  %v3271_v58 = vsel %vm3254_vm1, %v3249_v52, %v3267_v48  ;;  %3687 = vmatprep.subr.mxu1 %v6734_v42  ;;  %v3554_v48 = vld [vmem:[%s8764_s3 + $0x98] sm:$0xff] }
0x1085   :  { %3688 = vmatpush1.msra.mxu1 %v3539_v40 }
0x1086   :  { %v3272_v57 = vsel %vm3255_vm0, %v3250_v56, %v3268_v49  ;;  %3689 = vmatprep.subr.mxu1 %v6734_v42  ;;  %v5970_v56 = vld [vmem:[%s8764_s3 + $0xb8] sm:$0xff]  ;;  %v5969_v49 = vld [vmem:[%s8764_s3 + $0xb0] sm:$0xff] }
0x1087   :  { %3309 = vmatprep.subr.mxu0 %v3272_v57  ;;  %3690 = vmatpush1.msra.mxu1 %v3538_v43 }
0x1088   :  { %3310 = vmatpush1.msra.mxu0 %v3271_v58  ;;  %3691 = vmatprep.subr.mxu1 %v6734_v42 }
0x1089   :  { %3311 = vmatprep.subr.mxu0 %v3270_v59  ;;  %3692 = vmatpush1.msra.mxu1 %v3537_v46 }
0x108a   :  { %3312 = vmatpush1.msra.mxu0 %v3269_v61  ;;  %3693 = vmatprep.subr.mxu1 %v6734_v42 }
0x108b   :  { %5961 = vmatmul.mubr.msk.f32.vlgmr.msra.gmra.mxu0 %vm439_vm5, %v3273_v60  ;;  %3394 = vmatprep.subr.mxu0 %v3272_v57  ;;  %v3552_v57 = vld [vmem:[%s8764_s3 + $0x88] sm:$0xff]  ;;  %v5986_v60 = vld [vmem:[%s8764_s3 + $0x138] sm:$0xff] }
0x108c   :  { %3395 = vmatpush1.msra.mxu0 %v3271_v58  ;;  %3351 = vmatprep.mubr.f32.mxu0 %v6734_v42  ;;  %v5967_v58 = vld [vmem:[%s8764_s3 + $0xa0] sm:$0xff] }
0x108d   :  { %3396 = vmatprep.subr.mxu0 %v3270_v59  ;;  %3694 = vmatpush1.msra.mxu1 %v3536_v51  ;;  %v3551_v59 = vld [vmem:[%s8764_s3 + $0x80] sm:$0xff]  ;;  %v6004_v51 = vld [vmem:[%s8764_s3 + $0x1b8] sm:$0xff] }
0x108e   :  { %3397 = vmatpush1.msra.mxu0 %v3269_v61  ;;  %3695 = vmatprep.subr.mxu1 %v6734_v42  ;;  %v6011_v61 = vld [vmem:[#allocation5] ss:$0 sm:$0xff] }
0x108f   :  { %5962 = vmatmul.mubr.msk.f32.gmra.mxu0 %vm439_vm5, %v3274_v62  ;;  %3592 = vmatprep.subr.mxu0 %v6734_v42  ;;  %v5985_v62 = vld [vmem:[%s8764_s3 + $0x130] sm:$0xff] }
0x1090   :  { %3430 = vmatprep.mubr.f32.mxu0 %v6734_v42  ;;  %3696 = vmatpush1.msra.mxu1 %v3535_v54 }
0x1091   :  { %3721 = vmatprep.subr.mxu1 %v6734_v42 }
0x1092   :  { %3722 = vmatpush2.msra.mxu1 %v3554_v48  ;;  %v6001_v48 = vld [vmem:[%s8764_s3 + $0x1a0] sm:$0xff] }
0x1093   :  { %5965 = vmatmul.mubr.msk.f32.vlgmr.msra.gmra.mxu0 %vm439_vm5, %v5963_v63  ;;  %3723 = vmatprep.subr.mxu1 %v6734_v42  ;;  %v5984_v63 = vld [vmem:[%s8764_s3 + $0x128] sm:$0xff] }
0x1094   :  { %3436 = vmatprep.mubr.f32.mxu0 %v6734_v42  ;;  %3593 = vmatpush1.msra.mxu0 %v5982_v20 }
0x1095   :  { %3594 = vmatprep.subr.mxu0 %v6734_v42  ;;  %3724 = vmatpush2.msra.mxu1 %v3553_v9  ;;  %v5999_v9 = vld [vmem:[%s8764_s3 + $0x190] sm:$0xff] }
0x1096   :  { %3595 = vmatpush1.msra.mxu0 %v5981_v21  ;;  %3725 = vmatprep.subr.mxu1 %v6734_v42 }
0x1097   :  { %5966 = vmatmul.mubr.msk.f32.gmra.mxu0 %vm439_vm5, %v5964_v0  ;;  %3596 = vmatprep.subr.mxu0 %v6734_v42  ;;  %v5983_v0 = vld [vmem:[%s8764_s3 + $0x120] sm:$0xff] }
0x1098   :  { %3597 = vmatpush1.msra.mxu0 %v5980_v25  ;;  %3726 = vmatpush2.msra.mxu1 %v3552_v57  ;;  %v5997_v57 = vld [vmem:[%s8764_s3 + $0x180] sm:$0xff] }
0x1099   :  { %3598 = vmatprep.subr.mxu0 %v6734_v42  ;;  %3727 = vmatprep.subr.mxu1 %v6734_v42 }
0x109a   :  { %3599 = vmatpush1.msra.mxu0 %v5979_v26  ;;  %3728 = vmatpush2.msra.mxu1 %v3551_v59  ;;  %v5995_v59 = vld [vmem:[%s8764_s3 + $0x170] sm:$0xff] }
0x109b   :  { %3600 = vmatprep.subr.mxu0 %v6734_v42  ;;  %6451 = vmatprep.subr.mxu1 %v6734_v42 }
0x109c   :  { %3601 = vmatpush1.msra.mxu0 %v5978_v29 }
0x109d   :  { %3602 = vmatprep.subr.mxu0 %v6734_v42 }
0x109e   :  { %3603 = vmatpush1.msra.mxu0 %v5977_v31 }
0x109f   :  { %3604 = vmatprep.subr.mxu0 %v6734_v42 }
0x10a0   :  { %3605 = vmatpush1.msra.mxu0 %v5976_v35 }
0x10a1   :  { %3606 = vmatprep.subr.mxu0 %v6734_v42 }
0x10a2   :  { %3607 = vmatpush1.msra.mxu0 %v5975_v37 }
0x10a3   :  { %3608 = vmatprep.subr.mxu0 %v6734_v42 }
0x10a4   :  { %3609 = vmatpush1.msra.mxu0 %v5974_v41 }
0x10a5   :  { %3610 = vmatprep.subr.mxu0 %v6734_v42 }
0x10a6   :  { %3611 = vmatpush1.msra.mxu0 %v5973_v44 }
0x10a7   :  { %3612 = vmatprep.subr.mxu0 %v6734_v42 }
0x10a8   :  { %3613 = vmatpush1.msra.mxu0 %v5972_v47 }
0x10a9   :  { %3614 = vmatprep.subr.mxu0 %v6734_v42 }
0x10aa   :  { %3615 = vmatpush1.msra.mxu0 %v5971_v53 }
0x10ab   :  { %3616 = vmatprep.subr.mxu0 %v6734_v42 }
0x10ac   :  { %3617 = vmatpush1.msra.mxu0 %v5970_v56  ;;  %v6002_v56 = vld [vmem:[%s8764_s3 + $0x1a8] sm:$0xff] }
0x10ad   :  { %3618 = vmatprep.subr.mxu0 %v6734_v42 }
0x10ae   :  { %3619 = vmatpush1.msra.mxu0 %v5969_v49  ;;  %v6000_v49 = vld [vmem:[%s8764_s3 + $0x198] sm:$0xff] }
0x10af   :  { %3620 = vmatprep.subr.mxu0 %v6734_v42 }
0x10b0   :  { %3621 = vmatpush1.msra.mxu0 %v5968_v12  ;;  %v5998_v12 = vld [vmem:[%s8764_s3 + $0x188] sm:$0xff] }
0x10b1   :  { %3622 = vmatprep.subr.mxu0 %v6734_v42 }
0x10b2   :  { %3623 = vmatpush1.msra.mxu0 %v5967_v58  ;;  %v5996_v58 = vld [vmem:[%s8764_s3 + $0x178] sm:$0xff] }
0x10b3   :  { %3648 = vmatprep.subr.mxu0 %v6734_v42 }
0x10b4   :  { %3649 = vmatpush2.msra.mxu0 %v5986_v60  ;;  %v5994_v60 = vld [vmem:[%s8764_s3 + $0x168] sm:$0xff] }
0x10b5   :  { %3650 = vmatprep.subr.mxu0 %v6734_v42 }
0x10b6   :  { %3651 = vmatpush2.msra.mxu0 %v5985_v62  ;;  %v5992_v62 = vld [vmem:[%s8764_s3 + $0x158] sm:$0xff] }
0x10b7   :  { %3652 = vmatprep.subr.mxu0 %v6734_v42 }
0x10b8   :  { %3653 = vmatpush2.msra.mxu0 %v5984_v63  ;;  %v5991_v63 = vld [vmem:[%s8764_s3 + $0x150] sm:$0xff] }
0x10b9   :  { %3654 = vmatprep.subr.mxu0 %v6734_v42 }
0x10ba   :  { %3655 = vmatpush2.msra.mxu0 %v5983_v0  ;;  %v5990_v0 = vld [vmem:[%s8764_s3 + $0x148] sm:$0xff] }
0x10bb   :  { %3772 = vmatprep.subr.mxu0 %v6734_v42 }
0x114b   :  { %v3347_v1 = vpop.f32.mrf.mxu0 }
0x114d   :  { %v3349_v2 = vpop.f32.mrf.mxu0 }
0x114f   :  { %v3353_v3 = vpop.f32.mrf.mxu0 }
0x1151   :  { %v3355_v4 = vpop.f32.mrf.mxu0 }
0x1153   :  { %v3432_v5 = vpop.f32.mrf.mxu0 }
0x1154   :  { %v3443_v6 = vmax.f32 %v3347_v1, %v3432_v5 }
0x1155   :  { %v3434_v7 = vpop.f32.mrf.mxu0 }
0x1156   :  { %3449 = vrot.lane.b32.xlu1 %v3443_v6, %s8770_s7  ;;  %v8010_v10 = vmax.f32 %v3349_v2, %v3434_v7 }
0x1157   :  { %v3438_v8 = vpop.f32.mrf.mxu0 }
0x1158   :  { %v3445_v11 = vmax.f32 %v3353_v3, %v3438_v8 }
0x1159   :  { %v3440_v13 = vpop.f32.mrf.mxu0 }
0x115a   :  { %3459 = vrot.lane.b32.xlu1 %v8010_v10, %s8770_s7  ;;  %3451 = vrot.lane.b32.xlu0 %v3445_v11, %s8770_s7  ;;  %v8015_v15 = vmax.f32 %v3355_v4, %v3440_v13 }
0x115e   :  { %3461 = vrot.lane.b32.xlu0 %v8015_v15, %s8770_s7 }
0x11c8   :  { %v3450_v32 = vpop.permute.xlu1 %3449 }
0x11c9   :  { %v8076_v33 = vmax.f32 %v3443_v6, %v3450_v32 }
0x11cb   :  { %3469 = vrot.lane.b32.xlu1 %v8076_v33, %s8767_s6 }
0x11cc   :  { %v3452_v38 = vpop.permute.xlu0 %3451  ;;  %v3460_v45 = vpop.permute.xlu1 %3459 }
0x11cd   :  { %v8096_v39 = vmax.f32 %v3445_v11, %v3452_v38  ;;  %v3465_v50 = vmax.f32 %v8010_v10, %v3460_v45 }
0x11cf   :  { %3475 = vrot.lane.b32.xlu1 %v8076_v33, %s8770_s7  ;;  %3471 = vrot.lane.b32.xlu0 %v8096_v39, %s8767_s6 }
0x11d0   :  { %v3462_v52 = vpop.permute.xlu0 %3461 }
0x11d1   :  { %v3466_v55 = vmax.f32 %v8015_v15, %v3462_v52 }
0x11d3   :  { %3481 = vrot.lane.b32.xlu1 %v8076_v33, %s8772_s26  ;;  %3477 = vrot.lane.b32.xlu0 %v8096_v39, %s8770_s7 }
0x11d7   :  { %3489 = vrot.lane.b32.xlu1 %v3465_v50, %s8768_s29  ;;  %3483 = vrot.lane.b32.xlu0 %v8096_v39, %s8772_s26 }
0x11db   :  { %3495 = vrot.lane.b32.xlu1 %v3465_v50, %s8771_s25  ;;  %3491 = vrot.lane.b32.xlu0 %v3466_v55, %s8768_s29 }
0x11df   :  { %3507 = vrot.lane.b32.xlu1 %v3465_v50, %s8773_s18  ;;  %3497 = vrot.lane.b32.xlu0 %v3466_v55, %s8771_s25 }
0x11e3   :  { %3501 = vrot.lane.b32.xlu1 %v3465_v50, %s8769_s0  ;;  %3509 = vrot.lane.b32.xlu0 %v3466_v55, %s8773_s18 }
0x11e7   :  { %3859 = vperm.xlu1 %6609, %v6011_v61   ;;  %3503 = vrot.lane.b32.xlu0 %v3466_v55, %s8769_s0  ;;  %v6003_v55 = vld [vmem:[%s8764_s3 + $0x1b0] sm:$0xff]  ;;  %v5993_v61 = vld [vmem:[%s8764_s3 + $0x160] sm:$0xff] }
0x123d   :  { %v3470_v1 = vpop.permute.xlu1 %3469 }
0x123e   :  { %v3513_v11 = vsel %vm439_vm5, 0.0, %v3470_v1  ;;  %v5989_v1 = vld [vmem:[%s8764_s3 + $0x140] sm:$0xff] }
0x123f   :  { %v3515_v13 = vsel %vm681_vm6, %v3513_v11, %v8076_v33 }
0x1241   :  { %v3476_v2 = vpop.permute.xlu1 %3475  ;;  %v3472_v3 = vpop.permute.xlu0 %3471 }
0x1242   :  { %v3517_v17 = vsel %vm684_vm7, %v3515_v13, %v3476_v2  ;;  %v3514_v18 = vsel %vm439_vm5, 0.0, %v3472_v3  ;;  %v6008_v2 = vld [vmem:[%s8764_s3 + $0x1d8] sm:$0xff]  ;;  %v6007_v3 = vld [vmem:[%s8764_s3 + $0x1d0] sm:$0xff] }
0x1243   :  { %v3516_v22 = vsel %vm681_vm6, %v3514_v18, %v8096_v39 }
0x1245   :  { %v3482_v4 = vpop.permute.xlu1 %3481  ;;  %v3478_v5 = vpop.permute.xlu0 %3477 }
0x1246   :  { %v3519_v20 = vsel %vm687_vm8, %v3517_v17, %v3482_v4  ;;  %v3518_v27 = vsel %vm684_vm7, %v3516_v22, %v3478_v5  ;;  %v6006_v5 = vld [vmem:[%s8764_s3 + $0x1c8] sm:$0xff] }
0x1249   :  { %v3490_v6 = vpop.permute.xlu1 %3489  ;;  %v3484_v7 = vpop.permute.xlu0 %3483 }
0x124a   :  { %v3521_v21 = vsel %vm690_vm9, %v3519_v20, %v3490_v6  ;;  %v3520_v30 = vsel %vm687_vm8, %v3518_v27, %v3484_v7  ;;  %v6010_v20 = vld [vmem:[%s8765_s1] ss:$0 sm:$0xff] }
0x124b   :  { %v3864_v27 = vld [vmem:[%s8766_s4] sm:$0xf] }
0x124d   :  { %v3496_v8 = vpop.permute.xlu1 %3495  ;;  %v3492_v10 = vpop.permute.xlu0 %3491 }
0x124e   :  { %v3523_v23 = vsel %vm693_vm10, %v3521_v21, %v3496_v8  ;;  %v3522_v31 = vsel %vm690_vm9, %v3520_v30, %v3492_v10  ;;  %v6005_v8 = vld [vmem:[%s8764_s3 + $0x1c0] sm:$0xff]  ;;  %s8789_s3 = sld [smem:[#allocation20_spill]] }
0x1251   :  { %v3508_v15 = vpop.permute.xlu1 %3507  ;;  %v3498_v16 = vpop.permute.xlu0 %3497 }
0x1252   :  { %v3527_v19 = vsel %vm439_vm5, %v3508_v15, 0.0  ;;  %v3524_v32 = vsel %vm693_vm10, %v3522_v31, %v3498_v16 }
0x1253   :  { %3530 = vst.msk [vmem:[#allocation2 + $0x8] sm:$0xff] %vm681_vm6, %v3527_v19 }
0x1255   :  { %v3502_v25 = vpop.permute.xlu1 %3501  ;;  %v3510_v26 = vpop.permute.xlu0 %3509 }
0x1256   :  { %v3525_v28 = vsel %vm696_vm11, %v3523_v23, %v3502_v25  ;;  %v3528_v29 = vsel %vm439_vm5, %v3510_v26, 0.0 }
0x1257   :  { %3529 = vst [vmem:[#allocation2] sm:$0xff] %v3525_v28  ;;  %3532 = vst.msk [vmem:[#allocation2 + $0x18] sm:$0x3] %vm704_vm12, %v3528_v29  ;;  %v6013_v29 = vld [vmem:[%s8766_s4 + $0x4] sm:$0xf] }
0x1259   :  { %v3504_v33 = vpop.permute.xlu0 %3503 }
0x125a   :  { %v3526_v34 = vsel %vm696_vm11, %v3524_v32, %v3504_v33  ;;  %v3534_v35 = vld [vmem:[#allocation2 + $0x8] sm:$0xff] }
0x125b   :  { %3531 = vst [vmem:[#allocation2 + $0x10] sm:$0x3] %v3526_v34  ;;  %5988 = vmatprep.mubr.msk.f32.mxu1 %vm681_vm6, %v3534_v35  ;;  %v3556_v36 = vld [vmem:[#allocation2 + $0x8] sm:$0xfe]  ;;  %v6015_v35 = vld [vmem:[%s8700_s9 + $0x10] sm:$0xff] }
0x125c   :  { %3730 = vmatmul.mubr.f32.vlgmr.msra.gmra.mxu1 %v3525_v28  ;;  %v3586_v38 = vrot.slane %v3556_v36, 1  ;;  %v3736_v44 = vld [vmem:[#allocation2 + $0x8] sm:$0xfc] }
0x125d   :  { %6453 = vmatprep.mubr.msk.f32.mxu1 %vm6743_vm15, %v6734_v42  ;;  %v3766_v52 = vrot.slane %v3736_v44, 2  ;;  %v6023_v44 = vld [vmem:[%s8700_s9 + $0x20] sm:$0xff] }
0x125e   :  { %v3558_v37 = vld [vmem:[#allocation2 + $0x18] sm:$0x1]  ;;  %v3555_v41 = vld [vmem:[#allocation2] sm:$0xfe] }
0x125f   :  { %v3587_v39 = vrot.slane %v3558_v37, 1  ;;  %v3738_v40 = vld [vmem:[#allocation2 + $0x18] sm:$0x3]  ;;  %v3583_v47 = vrot.slane %v3555_v41, 1  ;;  %v3735_v6 = vld [vmem:[#allocation2] sm:$0xfc] }
0x1260   :  { %v3767_v46 = vrot.slane %v3738_v40, 2  ;;  %v3763_v10 = vrot.slane %v3735_v6, 2  ;;  %v4018_v40 = vld [vmem:[%s8700_s9] sm:$0xff] }
0x1261   :  { %v3588_v43 = vsel %vm757_vm13, %v3586_v38, %v3587_v39  ;;  %v6016_v39 = vld [vmem:[%s8700_s9 + $0x18] sm:$0xff]  ;;  %v6037_v6 = vld [vmem:[%s8704_s13] ss:$0 sm:$0xff] }
0x1262   :  { %5987 = vmatprep.mubr.msk.f32.mxu0 %vm681_vm6, %v3588_v43  ;;  %v3557_v45 = vld [vmem:[#allocation2 + $0x10] sm:$0x1]  ;;  %v3768_v54 = vsel %vm939_vm14, %v3766_v52, %v3767_v46  ;;  %v3860_v25 = vpop.permute.xlu1 %3859  ;;  %v4019_v43 = vld [vmem:[%s8700_s9 + $0x8] sm:$0xff]  ;;  %v4377_v52 = vld [vmem:[%s8701_s10] sm:$0xff] }
0x1263   :  { %v3584_v50 = vrot.slane %v3557_v45, 1  ;;  %v3737_v4 = vld [vmem:[#allocation2 + $0x10] sm:$0x3]  ;;  %v6024_v46 = vld [vmem:[%s8700_s9 + $0x28] sm:$0xff] }
0x1264   :  { %v3764_v7 = vrot.slane %v3737_v4, 2  ;;  %v6034_v4 = vld [vmem:[%s8702_s11] ss:$0 sm:$0xff] }
0x1265   :  { %v3585_v53 = vsel %vm757_vm13, %v3583_v47, %v3584_v50  ;;  %vm8774_vm13 = vcmask 31744   ;;  %v6028_v47 = vld [vmem:[%s8700_s9 + $0x30] sm:$0xff]  ;;  %v6029_v50 = vld [vmem:[%s8700_s9 + $0x38] sm:$0xff] }
0x1266   :  { %3657 = vmatmul.mubr.f32.vlgmr.msra.gmra.mxu0 %v3585_v53  ;;  %v3765_v11 = vsel %vm939_vm14, %v3763_v10, %v3764_v7  ;;  %vm8775_vm14 = vcmask 1043456   ;;  %vm8777_vm4 = vmmov %vm8774_vm13  ;;  %v4468_v53 = vld [vmem:[%s8703_s12 + $0x8] sm:$0xff] }
0x1267   :  { %3773 = vmatpush1.msra.mxu0 %v6004_v51  ;;  %6009 = vmatprep.mubr.msk.f32.mxu0 %vm681_vm6, %v3768_v54  ;;  %vm8776_vm3 = vmmov %vm8775_vm14  ;;  %v4378_v51 = vld [vmem:[%s8701_s10 + $0x8] sm:$0xff] }
0x1268   :  { %3774 = vmatprep.subr.mxu0 %v6734_v42  ;;  %vm8778_vm0 = vmmov %vm8776_vm3 }
0x1269   :  { %3775 = vmatpush1.msra.mxu0 %v6003_v55  ;;  %vm8779_vm1 = vmmov %vm8778_vm0 }
0x126a   :  { %3776 = vmatprep.subr.mxu0 %v6734_v42 }
0x126b   :  { %3777 = vmatpush1.msra.mxu0 %v6002_v56 }
0x126c   :  { %3778 = vmatprep.subr.mxu0 %v6734_v42 }
0x126d   :  { %3779 = vmatpush1.msra.mxu0 %v6001_v48 }
0x126e   :  { %3780 = vmatprep.subr.mxu0 %v6734_v42 }
0x126f   :  { %3781 = vmatpush1.msra.mxu0 %v6000_v49 }
0x1270   :  { %3782 = vmatprep.subr.mxu0 %v6734_v42 }
0x1271   :  { %3783 = vmatpush1.msra.mxu0 %v5999_v9 }
0x1272   :  { %3784 = vmatprep.subr.mxu0 %v6734_v42 }
0x1273   :  { %3785 = vmatpush1.msra.mxu0 %v5998_v12 }
0x1274   :  { %3786 = vmatprep.subr.mxu0 %v6734_v42 }
0x1275   :  { %3787 = vmatpush1.msra.mxu0 %v5997_v57 }
0x1276   :  { %3788 = vmatprep.subr.mxu0 %v6734_v42 }
0x1277   :  { %3789 = vmatpush1.msra.mxu0 %v5996_v58 }
0x1278   :  { %3790 = vmatprep.subr.mxu0 %v6734_v42 }
0x1279   :  { %3791 = vmatpush1.msra.mxu0 %v5995_v59 }
0x127a   :  { %3792 = vmatprep.subr.mxu0 %v6734_v42 }
0x127b   :  { %3793 = vmatpush1.msra.mxu0 %v5994_v60 }
0x127c   :  { %3794 = vmatprep.subr.mxu0 %v6734_v42 }
0x127d   :  { %3795 = vmatpush1.msra.mxu0 %v5993_v61 }
0x127e   :  { %3796 = vmatprep.subr.mxu0 %v6734_v42 }
0x127f   :  { %3797 = vmatpush1.msra.mxu0 %v5992_v62 }
0x1280   :  { %3798 = vmatprep.subr.mxu0 %v6734_v42 }
0x1281   :  { %3799 = vmatpush1.msra.mxu0 %v5991_v63 }
0x1282   :  { %3800 = vmatprep.subr.mxu0 %v6734_v42 }
0x1283   :  { %3801 = vmatpush1.msra.mxu0 %v5990_v0  ;;  %v4467_v0 = vld [vmem:[%s8703_s12] sm:$0xff] }
0x1284   :  { %3802 = vmatprep.subr.mxu0 %v6734_v42 }
0x1285   :  { %3803 = vmatpush1.msra.mxu0 %v5989_v1  ;;  %v4552_v1 = vld [vmem:[%s8705_s14 + $0x8] sm:$0xff] }
0x1286   :  { %3828 = vmatprep.subr.mxu0 %v6734_v42 }
0x1287   :  { %3829 = vmatpush2.msra.mxu0 %v6008_v2  ;;  %v4551_v2 = vld [vmem:[%s8705_s14] sm:$0xff] }
0x1288   :  { %3830 = vmatprep.subr.mxu0 %v6734_v42 }
0x1289   :  { %3831 = vmatpush2.msra.mxu0 %v6007_v3 }
0x128a   :  { %3832 = vmatprep.subr.mxu0 %v6734_v42 }
0x128b   :  { %3833 = vmatpush2.msra.mxu0 %v6006_v5 }
0x128c   :  { %3834 = vmatprep.subr.mxu0 %v6734_v42 }
0x128d   :  { %3835 = vmatpush2.msra.mxu0 %v6005_v8 }
0x128e   :  { %3837 = vmatmul.mubr.f32.vlgmr.msra.gmra.mxu0 %v3765_v11 }
0x131c   :  { %v3731_v13 = vpop.f32.mrf.mxu1 }
0x131e   :  { %v3733_v15 = vpop.f32.mrf.mxu1 }
0x1326   :  { %v3658_v16 = vpop.f32.mrf.mxu0 }
0x1327   :  { %v3732_v18 = vadd.f32 %v3731_v13, %v3658_v16  ;;  %v6040_v13 = vld [vmem:[%s8788_s28] ss:$0 sm:$0xff] }
0x1328   :  { %v3660_v17 = vpop.f32.mrf.mxu0 }
0x134e   :  { %v3838_v19 = vpop.f32.mrf.mxu0 }
0x134f   :  { %v3842_v21 = vadd.f32 %v3838_v19, %v3732_v18  ;;  %v6052_v19 = vld [vmem:[%s8701_s10 + $0x18] sm:$0xff] }
0x1350   :  { %v3840_v22 = vpop.f32.mrf.mxu0 }
0x1351   :  { %v3850_v23 = vadd.f32 %v6010_v20, %v3842_v21  ;;  %v6051_v22 = vld [vmem:[%s8701_s10 + $0x10] sm:$0xff] }
0x1353   :  { %v3862_v26 = vmul.f32 %v3860_v25, %v3850_v23  ;;  %vm3852_vm12 = vcmp.ge.f32.partialorder %v3850_v23, 0.0  ;;  %v6063_v25 = vld [vmem:[%s8705_s14 + $0x10] sm:$0xff] }
0x1355   :  { %v3863_v28 = vsel %vm3852_vm12, %v3850_v23, %v3862_v26  ;;  %vm8780_vm12 = vmmov %vm8777_vm4  ;;  %v6064_v23 = vld [vmem:[%s8705_s14 + $0x18] sm:$0xff] }
0x1356   :  { %6452 = vmatpush3.msra.mxu1 %v3863_v28 }
0x1357   :  { %6454 = vmatmul.mubr.msk.f32.vlgmr.msra.gmra.mxu1 %vm1042_vm2, %v3864_v27  ;;  %6456 = vmatprep.subr.mxu1 %v6734_v42 }
0x1358   :  { %6457 = vmatpush3.msra.mxu1 %v3863_v28  ;;  %6458 = vmatprep.mubr.msk.f32.mxu1 %vm6743_vm15, %v6734_v42 }
0x135b   :  { %6459 = vmatmul.mubr.msk.f32.vlgmr.msra.gmra.mxu1 %vm1042_vm2, %v6013_v29  ;;  %v6054_v29 = vld [vmem:[%s8702_s11 + $0x1] ss:$0 sm:$0xff] }
0x135c   :  { %6463 = vmatprep.mubr.msk.f32.mxu1 %vm8774_vm13, %v6015_v35  ;;  %vm8781_vm13 = vmmov %vm8778_vm0 }
0x1417   :  { %v3934_v30 = vpop.f32.mrf.mxu1 }
0x1419   :  { %v6455_v31 = vpop.f32.mrf.mxu1 }
0x141b   :  { %v4008_v32 = vpop.f32.mrf.mxu1 }
0x141c   :  { %v4012_v33 = vmax.f32 %v3934_v30, %v4008_v32 }
0x141d   :  { %v6460_v34 = vpop.f32.mrf.mxu1 }
0x141e   :  { %4014 = vrot.lane.b32.xlu0 %v4012_v33, %s8770_s7 }
0x1490   :  { %v4015_v36 = vpop.permute.xlu0 %4014 }
0x1491   :  { %v4017_v37 = vmax.f32 %v4012_v33, %v4015_v36  ;;  %v6066_v36 = vld [vmem:[%s8788_s28 + $0x1] ss:$0 sm:$0xff] }
0x1493   :  { %4193 = vrot.lane.b32.xlu0 %v4017_v37, %s8771_s25  ;;  %4023 = vrot.lane.b32.xlu1 %v4017_v37, %s8772_s26 }
0x1497   :  { %4282 = vrot.lane.b32.xlu1 %v4017_v37, %s8773_s18 }
0x1505   :  { %v4024_v38 = vpop.permute.xlu1 %4023  ;;  %v4194_v41 = vpop.permute.xlu0 %4193 }
0x1506   :  { %6461 = vmatprep.subr.msk.mxu1 %vm8775_vm14, %v4024_v38  ;;  %vm8782_vm14 = vmmov %vm8777_vm4 }
0x1507   :  { %6462 = vmatpush3.msk.msra.mxu1 %vm8776_vm3, %v4024_v38  ;;  %vm8783_vm3 = vmmov %vm8778_vm0 }
0x1508   :  { %6464 = vmatmul.mubr.msk.f32.vlgmr.msra.gmra.mxu1 %vm8777_vm4, %v6016_v39  ;;  %6466 = vmatprep.subr.msk.mxu1 %vm8778_vm0, %v4017_v37 }
0x1509   :  { %6467 = vmatpush3.msk.msra.mxu1 %vm8779_vm1, %v4017_v37  ;;  %6468 = vmatprep.mubr.msk.f32.mxu1 %vm8780_vm12, %v4018_v40  ;;  %v4283_v45 = vpop.permute.xlu1 %4282  ;;  %vm8784_vm1 = vmmov %vm8777_vm4 }
0x150a   :  { %6471 = vmatprep.subr.msk.mxu1 %vm8781_vm13, %v4194_v41  ;;  %vm8785_vm12 = vmmov %vm8778_vm0 }
0x150b   :  { %vm8786_vm13 = vmmov %vm8784_vm1 }
0x150c   :  { %6469 = vmatmul.mubr.msk.f32.vlgmr.msra.gmra.mxu1 %vm8782_vm14, %v4019_v43  ;;  %vm8787_vm14 = vmmov %vm8784_vm1 }
0x150d   :  { %6472 = vmatpush3.msk.msra.mxu1 %vm8783_vm3, %v4194_v41  ;;  %6473 = vmatprep.mubr.msk.f32.mxu1 %vm8777_vm4, %v6023_v44 }
0x150e   :  { %6476 = vmatprep.subr.msk.mxu1 %vm8778_vm0, %v4283_v45 }
0x1510   :  { %6474 = vmatmul.mubr.msk.f32.vlgmr.msra.gmra.mxu1 %vm8784_vm1, %v6024_v46 }
0x1511   :  { %6477 = vmatpush3.msk.msra.mxu1 %vm8785_vm12, %v4283_v45  ;;  %6478 = vmatprep.mubr.msk.f32.mxu1 %vm8786_vm13, %v6028_v47 }
0x1512   :  { %6481 = vmatprep.subr.mxu1 %v4378_v51 }
0x1514   :  { %6479 = vmatmul.mubr.msk.f32.vlgmr.msra.gmra.mxu1 %vm8787_vm14, %v6029_v50 }
0x1515   :  { %6482 = vmatpush3.msra.mxu1 %v4378_v51 }
0x1516   :  { %6483 = vmatprep.subr.mxu1 %v4377_v52 }
0x1517   :  { %6484 = vmatpush3.msra.mxu1 %v4377_v52 }
0x1518   :  { %6488 = vmatprep.subr.mxu1 %v4468_v53 }
0x15c8   :  { %v6465_v54 = vpop.f32.mrf.mxu1 }
0x15ca   :  { %v4099_v55 = vpop.f32.mrf.mxu1 }
0x15cc   :  { %v6470_v56 = vpop.f32.mrf.mxu1 }
0x15cd   :  { %v4188_v57 = vadd.f32 %v6470_v56, %v6465_v54 }
0x15ce   :  { %v4182_v48 = vpop.f32.mrf.mxu1 }
0x15cf   :  { %v4183_v12 = vadd.f32 %v4182_v48, %v4099_v55 }
0x15d0   :  { %v6475_v49 = vpop.f32.mrf.mxu1 }
0x15d1   :  { %v4279_v60 = vadd.f32 %v6475_v49, %v4188_v57  ;;  %v6058_v57 = vld [vmem:[%s8703_s12 + $0x18] sm:$0xff] }
0x15d2   :  { %v4269_v9 = vpop.f32.mrf.mxu1 }
0x15d3   :  { %v4278_v59 = vadd.f32 %v4269_v9, %v4183_v12  ;;  %v4827_v12 = vld [vmem:[%s8789_s3] sm:$0xff] }
0x15d4   :  { %v6480_v58 = vpop.f32.mrf.mxu1 }
0x15d5   :  { %v8382_v63 = vadd.f32 %v6480_v58, %v4279_v60  ;;  %v6057_v60 = vld [vmem:[%s8703_s12 + $0x10] sm:$0xff] }
0x15d6   :  { %v4358_v61 = vpop.f32.mrf.mxu1 }
0x15d7   :  { %v8380_v62 = vadd.f32 %v4358_v61, %v4278_v59 }
0x15d9   :  { %6485 = vmatprep.mubr.msk.f32.mxu1 %vm439_vm5, %v8380_v62 }
0x15da   :  { %6486 = vmatmul.mubr.msk.f32.vlgmr.msra.gmra.mxu1 %vm439_vm5, %v8382_v63 }
0x15db   :  { %6489 = vmatpush3.msra.mxu1 %v4468_v53  ;;  %6492 = vmatprep.mubr.msk.f32.mxu1 %vm439_vm5, %v8380_v62 }
0x15dc   :  { %6490 = vmatprep.subr.mxu1 %v4467_v0 }
0x15dd   :  { %6491 = vmatpush3.msra.mxu1 %v4467_v0 }
0x15de   :  { %6493 = vmatmul.mubr.msk.f32.vlgmr.msra.gmra.mxu1 %vm439_vm5, %v8382_v63  ;;  %6495 = vmatprep.subr.mxu1 %v4552_v1 }
0x15df   :  { %6496 = vmatpush3.msra.mxu1 %v4552_v1  ;;  %6499 = vmatprep.mubr.msk.f32.mxu1 %vm439_vm5, %v8380_v62 }
0x15e0   :  { %6497 = vmatprep.subr.mxu1 %v4551_v2 }
0x15e1   :  { %6498 = vmatpush3.msra.mxu1 %v4551_v2  ;;  %v6060_v2 = vld [vmem:[%s8704_s13 + $0x1] ss:$0 sm:$0xff] }
0x15e2   :  { %6500 = vmatmul.mubr.msk.f32.vlgmr.msra.gmra.mxu1 %vm439_vm5, %v8382_v63 }
0x169a   :  { %v6487_v3 = vpop.f32.mrf.mxu1 }
0x169b   :  { %v4464_v21 = vadd.f32 %v6487_v3, %v6034_v4 }
0x169c   :  { %v4458_v5 = vpop.f32.mrf.mxu1 }
0x169d   :  { %v4459_v7 = vadd.f32 %v6034_v4, %v4458_v5 }
0x169e   :  { %v6494_v8 = vpop.f32.mrf.mxu1 }
0x169f   :  { %v4548_v10 = vadd.f32 %v6494_v8, %v6037_v6  ;;  %6506 = vmatprep.mubr.msk.f32.mxu1 %vm1042_vm2, %v4459_v7 }
0x16a0   :  { %v4542_v11 = vpop.f32.mrf.mxu1 }
0x16a1   :  { %v4543_v15 = vadd.f32 %v6037_v6, %v4542_v11  ;;  %6502 = vmatprep.subr.msk.mxu1 %vm1042_vm2, %v4548_v10 }
0x16a2   :  { %v6501_v16 = vpop.f32.mrf.mxu1  ;;  %6503 = vmatpush3.xpose.msk.msra.mxu1 %vm1042_vm2, %v4548_v10 }
0x16a3   :  { %v4632_v17 = vadd.f32 %v6501_v16, %v6040_v13  ;;  %6504 = vmatprep.subr.msk.mxu1 %vm1042_vm2, %v4543_v15 }
0x16a4   :  { %v4626_v18 = vpop.f32.mrf.mxu1 }
0x16a5   :  { %v4627_v20 = vadd.f32 %v6040_v13, %v4626_v18  ;;  %6509 = vmatprep.subr.mxu0 %v4632_v17 }
0x16a6   :  { %6505 = vmatpush3.xpose.msk.msra.mxu1 %vm1042_vm2, %v4543_v15  ;;  %6510 = vmatpush3.msra.mxu0 %v4632_v17 }
0x16a7   :  { %6511 = vmatprep.subr.mxu0 %v4627_v20  ;;  %6521 = vmatprep.subr.mxu1 %v6052_v19 }
0x16a8   :  { %6512 = vmatpush3.msra.mxu0 %v4627_v20 }
0x16a9   :  { %6507 = vmatmul.mubr.msk.f32.vlgmr.msra.gmra.mxu1 %vm1042_vm2, %v4464_v21  ;;  %6516 = vmatprep.subr.mxu0 %v4827_v12 }
0x16aa   :  { %6522 = vmatpush3.msra.mxu1 %v6052_v19  ;;  %6525 = vmatprep.mubr.msk.f32.mxu1 %vm439_vm5, %v8380_v62 }
0x16ab   :  { %6523 = vmatprep.subr.mxu1 %v6051_v22 }
0x16ac   :  { %6524 = vmatpush3.msra.mxu1 %v6051_v22 }
0x16ad   :  { %6526 = vmatmul.mubr.msk.f32.vlgmr.msra.gmra.mxu1 %vm439_vm5, %v8382_v63  ;;  %6535 = vmatprep.subr.mxu1 %v6064_v23 }
0x16ae   :  { %6536 = vmatpush3.msra.mxu1 %v6064_v23  ;;  %6539 = vmatprep.mubr.msk.f32.mxu1 %vm439_vm5, %v8380_v62 }
0x16af   :  { %6537 = vmatprep.subr.mxu1 %v6063_v25 }
0x16b0   :  { %6538 = vmatpush3.msra.mxu1 %v6063_v25 }
0x16b1   :  { %6540 = vmatmul.mubr.msk.f32.vlgmr.msra.gmra.mxu1 %vm439_vm5, %v8382_v63 }
0x1769   :  { %v6508_v26 = vpop.f32.mrf.mxu1 }
0x176a   :  { %v4723_v27 = vmul.f32 0.35355338, %v6508_v26 }
0x176b   :  { %v4713_v28 = vpop.f32.mrf.mxu1 }
0x176c   :  { %v4722_v30 = vmul.f32 0.35355338, %v4713_v28  ;;  %v4727_v31 = vsel %vm439_vm5, %v4723_v27, -inf }
0x176d   :  { %4728 = vmax.xlane.f32.xlu1 %v4727_v31  ;;  %v6527_v32 = vpop.f32.mrf.mxu1  ;;  %v6075_v31 = vld [vmem:[%s8789_s3 + $0x8] sm:$0xff] }
0x176e   :  { %v8444_v33 = vadd.f32 %v6527_v32, %v6054_v29  ;;  %v4724_v34 = vsel %vm439_vm5, %v4722_v30, -inf }
0x176f   :  { %v4986_v35 = vpop.f32.mrf.mxu1  ;;  %4725 = vmax.xlane.f32.xlu0 %v4724_v34  ;;  %v5558_v34 = vld [vmem:[%s8790_s22 + $0xf8] sm:$0xff] }
0x1770   :  { %v4987_v61 = vadd.f32 %v6054_v29, %v4986_v35  ;;  %v5542_v35 = vld [vmem:[%s8790_s22 + $0x78] sm:$0xff] }
0x1771   :  { %v6541_v37 = vpop.f32.mrf.mxu1 }
0x1772   :  { %v5160_v38 = vadd.f32 %v6541_v37, %v6066_v36  ;;  %v5541_v37 = vld [vmem:[%s8790_s22 + $0x70] sm:$0xff] }
0x1773   :  { %v5154_v39 = vpop.f32.mrf.mxu1 }
0x1774   :  { %v5155_v40 = vadd.f32 %v6066_v36, %v5154_v39  ;;  %6549 = vmatprep.subr.mxu1 %v5160_v38  ;;  %v5557_v36 = vld [vmem:[%s8790_s22 + $0xf0] sm:$0xff]  ;;  %v5540_v39 = vld [vmem:[%s8790_s22 + $0x68] sm:$0xff] }
0x1775   :  { %6550 = vmatpush3.msra.mxu1 %v5160_v38  ;;  %v5556_v38 = vld [vmem:[%s8790_s22 + $0xe8] sm:$0xff] }
0x1776   :  { %6551 = vmatprep.subr.mxu1 %v5155_v40 }
0x1777   :  { %6552 = vmatpush3.msra.mxu1 %v5155_v40  ;;  %v5555_v40 = vld [vmem:[%s8790_s22 + $0xe0] sm:$0xff] }
0x1778   :  { %6556 = vmatprep.subr.mxu1 %v6075_v31 }
0x17f6   :  { %v4729_v41 = vpop.xlane.xlu1 %4728 }
0x17f7   :  { %v4731_v43 = vsub.f32 %v4723_v27, %v4729_v41  ;;  %v5539_v41 = vld [vmem:[%s8790_s22 + $0x60] sm:$0xff] }
0x17f8   :  { %v4726_v44 = vpop.xlane.xlu0 %4725 }
0x17f9   :  { %v4730_v45 = vsub.f32 %v4722_v30, %v4726_v44  ;;  %v4734_v46 = vmul.f32 1.442695, %v4731_v43  ;;  %v5554_v43 = vld [vmem:[%s8790_s22 + $0xd8] sm:$0xff] }
0x17fa   :  { %v5538_v44 = vld [vmem:[%s8790_s22 + $0x58] sm:$0xff] }
0x17fb   :  { %v4732_v47 = vmul.f32 1.442695, %v4730_v45  ;;  %v5553_v45 = vld [vmem:[%s8790_s22 + $0xd0] sm:$0xff] }
0x17fd   :  { %6696 = vpow2.f32 %v4732_v47  ;;  %v5552_v47 = vld [vmem:[%s8790_s22 + $0xc8] sm:$0xff] }
0x17fe   :  { %6698 = vpow2.f32 %v4734_v46  ;;  %v5537_v46 = vld [vmem:[%s8790_s22 + $0x50] sm:$0xff] }
0x180a   :  { %v6697_v50 = vpop.eup %6696 }
0x180b   :  { %v4736_v51 = vsel %vm439_vm5, %v6697_v50, 0.0  ;;  %v6699_v52 = vpop.eup %6698 }
0x180c   :  { %4737 = vadd.xlane.f32.xlu0 %v4736_v51  ;;  %v4739_v53 = vsel %vm439_vm5, %v6699_v52, 0.0  ;;  %v5551_v51 = vld [vmem:[%s8790_s22 + $0xc0] sm:$0xff] }
0x1810   :  { %4740 = vadd.xlane.f32.xlu0 %v4739_v53 }
0x1895   :  { %v4738_v54 = vpop.xlane.xlu0 %4737 }
0x1896   :  { %6700 = vrcp.f32 %v4738_v54 }
0x1899   :  { %v4741_v55 = vpop.xlane.xlu0 %4740 }
0x189a   :  { %6702 = vrcp.f32 %v4741_v55 }
0x18a3   :  { %v6701_v56 = vpop.eup %6700 }
0x18a4   :  { %v4744_v48 = vmul.f32 %v6701_v56, %v6697_v50  ;;  %v5536_v50 = vld [vmem:[%s8790_s22 + $0x48] sm:$0xff] }
0x18a6   :  { %6513 = vmatprep.mubr.msk.f32.mxu0 %vm439_vm5, %v4744_v48 }
0x18a7   :  { %v6703_v49 = vpop.eup %6702 }
0x18a8   :  { %v4745_v9 = vmul.f32 %v6703_v49, %v6699_v52  ;;  %v6033_v52 = vld [vmem:[%s8791_s24] ss:$0 sm:$0xff] }
0x18aa   :  { %6514 = vmatmul.mubr.msk.f32.vlgmr.msra.gmra.mxu0 %vm439_vm5, %v4745_v9  ;;  %v5535_v9 = vld [vmem:[%s8790_s22 + $0x40] sm:$0xff] }
0x18ab   :  { %6517 = vmatpush3.msra.mxu0 %v4827_v12  ;;  %v5550_v12 = vld [vmem:[%s8790_s22 + $0xb8] sm:$0xff] }
0x18ac   :  { %6528 = vmatprep.subr.mxu0 %v6058_v57 }
0x196a   :  { %v6515_v58 = vpop.f32.mrf.mxu0 }
0x196c   :  { %v4818_v59 = vpop.f32.mrf.mxu0 }
0x196d   :  { %6518 = vmatprep.mubr.msk.f32.mxu0 %vm1042_vm2, %v4818_v59  ;;  %v5533_v59 = vld [vmem:[%s8790_s22 + $0x30] sm:$0xff] }
0x196e   :  { %6519 = vmatmul.mubr.msk.f32.vlgmr.msra.gmra.mxu0 %vm1042_vm2, %v6515_v58  ;;  %v5549_v58 = vld [vmem:[%s8790_s22 + $0xb0] sm:$0xff] }
0x196f   :  { %6529 = vmatpush3.msra.mxu0 %v6058_v57  ;;  %6532 = vmatprep.mubr.msk.f32.mxu0 %vm439_vm5, %v8380_v62  ;;  %v5534_v57 = vld [vmem:[%s8790_s22 + $0x38] sm:$0xff] }
0x1970   :  { %6530 = vmatprep.subr.mxu0 %v6057_v60 }
0x1971   :  { %6531 = vmatpush3.msra.mxu0 %v6057_v60  ;;  %v5548_v60 = vld [vmem:[%s8790_s22 + $0xa8] sm:$0xff] }
0x1972   :  { %6533 = vmatmul.mubr.msk.f32.vlgmr.msra.gmra.mxu0 %vm439_vm5, %v8382_v63 }
0x1973   :  { %6546 = vmatprep.mubr.msk.f32.mxu0 %vm1042_vm2, %v4987_v61  ;;  %v5532_v61 = vld [vmem:[%s8790_s22 + $0x28] sm:$0xff] }
0x1a2e   :  { %v8470_v0 = vpop.f32.mrf.mxu0 }
0x1a2f   :  { %v4910_v53 = vadd.f32 %v8470_v0, %v6033_v52  ;;  %v5547_v0 = vld [vmem:[%s8790_s22 + $0xa0] sm:$0xff] }
0x1a30   :  { %v8472_v1 = vpop.f32.mrf.mxu0 }
0x1a31   :  { %v4909_v55 = vadd.f32 %v6033_v52, %v8472_v1 }
0x1a32   :  { %v6534_v3 = vpop.f32.mrf.mxu0 }
0x1a33   :  { %v5076_v4 = vadd.f32 %v6534_v3, %v6060_v2 }
0x1a34   :  { %v5070_v5 = vpop.f32.mrf.mxu0 }
0x1a35   :  { %v5071_v62 = vadd.f32 %v6060_v2, %v5070_v5  ;;  %6542 = vmatprep.subr.msk.mxu0 %vm1042_vm2, %v5076_v4 }
0x1a36   :  { %6543 = vmatpush3.xpose.msk.msra.mxu0 %vm1042_vm2, %v5076_v4 }
0x1a37   :  { %6544 = vmatprep.subr.msk.mxu0 %vm1042_vm2, %v5071_v62 }
0x1a3a   :  { %6545 = vmatpush3.xpose.msk.msra.mxu0 %vm1042_vm2, %v5071_v62 }
0x1a3b   :  { %6254 = vmatprep.subr.mxu0 %v5558_v34  ;;  %v5657_v34 = vld [vmem:[%s8711_s21 + $0x70] sm:$0xff] }
0x1a3d   :  { %6547 = vmatmul.mubr.msk.f32.vlgmr.msra.gmra.mxu0 %vm1042_vm2, %v8444_v33 }
0x1a3e   :  { %6255 = vmatpush3.msra.mxu0 %v5542_v35  ;;  %v5630_v35 = vld [vmem:[#allocation6] sm:$0x1] }
0x1a3f   :  { %6256 = vmatprep.subr.mxu0 %v5557_v36  ;;  %v5656_v36 = vld [vmem:[%s8711_s21 + $0x68] sm:$0xff] }
0x1a40   :  { %6257 = vmatpush3.msra.mxu0 %v5541_v37  ;;  %v5655_v37 = vld [vmem:[%s8711_s21 + $0x60] sm:$0xff] }
0x1a41   :  { %6258 = vmatprep.subr.mxu0 %v5556_v38  ;;  %v5654_v38 = vld [vmem:[%s8711_s21 + $0x58] sm:$0xff] }
0x1a42   :  { %6259 = vmatpush3.msra.mxu0 %v5540_v39  ;;  %v5653_v39 = vld [vmem:[%s8711_s21 + $0x50] sm:$0xff] }
0x1a43   :  { %6260 = vmatprep.subr.mxu0 %v5555_v40  ;;  %v5652_v40 = vld [vmem:[%s8711_s21 + $0x48] sm:$0xff] }
0x1a44   :  { %6261 = vmatpush3.msra.mxu0 %v5539_v41  ;;  %v5651_v41 = vld [vmem:[%s8711_s21 + $0x40] sm:$0xff] }
0x1a45   :  { %6262 = vmatprep.subr.mxu0 %v5554_v43  ;;  %v5650_v43 = vld [vmem:[%s8711_s21 + $0x38] sm:$0xff] }
0x1a46   :  { %6263 = vmatpush3.msra.mxu0 %v5538_v44  ;;  %v5649_v44 = vld [vmem:[%s8711_s21 + $0x30] sm:$0xff] }
0x1a47   :  { %6264 = vmatprep.subr.mxu0 %v5553_v45  ;;  %v5648_v45 = vld [vmem:[%s8711_s21 + $0x28] sm:$0xff] }
0x1a48   :  { %6265 = vmatpush3.msra.mxu0 %v5537_v46 }
0x1a49   :  { %6266 = vmatprep.subr.mxu0 %v5552_v47 }
0x1a4a   :  { %6267 = vmatpush3.msra.mxu0 %v5536_v50 }
0x1a4b   :  { %6268 = vmatprep.subr.mxu0 %v5551_v51 }
0x1a4c   :  { %6269 = vmatpush3.msra.mxu0 %v5535_v9 }
0x1a4d   :  { %6270 = vmatprep.subr.mxu0 %v5550_v12 }
0x1a4e   :  { %6271 = vmatpush3.msra.mxu0 %v5534_v57 }
0x1a4f   :  { %6272 = vmatprep.subr.mxu0 %v5549_v58 }
0x1a50   :  { %6273 = vmatpush3.msra.mxu0 %v5533_v59 }
0x1a51   :  { %6274 = vmatprep.subr.mxu0 %v5548_v60 }
0x1a52   :  { %6275 = vmatpush3.msra.mxu0 %v5532_v61 }
0x1a53   :  { %6276 = vmatprep.subr.mxu0 %v5547_v0 }
0x1afd   :  { %v6548_v63 = vpop.f32.mrf.mxu0 }
0x1afe   :  { %v5251_v6 = vmul.f32 0.35355338, %v6548_v63 }
0x1aff   :  { %v5241_v7 = vpop.f32.mrf.mxu0 }
0x1b00   :  { %v5250_v8 = vmul.f32 0.35355338, %v5241_v7  ;;  %v5255_v10 = vsel %vm439_vm5, %v5251_v6, -inf  ;;  %v5531_v7 = vld [vmem:[%s8790_s22 + $0x20] sm:$0xff] }
0x1b01   :  { %5256 = vmax.xlane.f32.xlu0 %v5255_v10  ;;  %6277 = vmatpush3.msra.mxu0 %v5531_v7 }
0x1b02   :  { %v5252_v11 = vsel %vm439_vm5, %v5250_v8, -inf }
0x1b03   :  { %5253 = vmax.xlane.f32.xlu1 %v5252_v11 }
0x1b8a   :  { %v5257_v13 = vpop.xlane.xlu0 %5256 }
0x1b8b   :  { %v5259_v15 = vsub.f32 %v5251_v6, %v5257_v13  ;;  %v5530_v13 = vld [vmem:[%s8790_s22 + $0x18] sm:$0xff] }
0x1b8c   :  { %v5254_v16 = vpop.xlane.xlu1 %5253 }
0x1b8d   :  { %v5262_v17 = vmul.f32 1.442695, %v5259_v15  ;;  %v5258_v18 = vsub.f32 %v5250_v8, %v5254_v16  ;;  %v5546_v8 = vld [vmem:[%s8790_s22 + $0x98] sm:$0xff] }
0x1b8e   :  { %6278 = vmatprep.subr.mxu0 %v5546_v8 }
0x1b8f   :  { %6704 = vpow2.f32 %v5262_v17  ;;  %v5260_v19 = vmul.f32 1.442695, %v5258_v18  ;;  %v5545_v17 = vld [vmem:[%s8790_s22 + $0x90] sm:$0xff]  ;;  %6279 = vmatpush3.msra.mxu0 %v5530_v13 }
0x1b90   :  { %6280 = vmatprep.subr.mxu0 %v5545_v17 }
0x1b91   :  { %6706 = vpow2.f32 %v5260_v19 }
0x1b9c   :  { %v6705_v20 = vpop.eup %6704 }
0x1b9d   :  { %v5267_v21 = vsel %vm439_vm5, %v6705_v20, 0.0 }
0x1b9e   :  { %v6707_v22 = vpop.eup %6706  ;;  %5268 = vadd.xlane.f32.xlu0 %v5267_v21  ;;  %v5544_v21 = vld [vmem:[%s8790_s22 + $0x88] sm:$0xff] }
0x1b9f   :  { %v5264_v23 = vsel %vm439_vm5, %v6707_v22, 0.0 }
0x1ba0   :  { %5265 = vadd.xlane.f32.xlu1 %v5264_v23 }
0x1c27   :  { %v5269_v25 = vpop.xlane.xlu0 %5268 }
0x1c28   :  { %6708 = vrcp.f32 %v5269_v25 }
0x1c29   :  { %v5266_v26 = vpop.xlane.xlu1 %5265 }
0x1c2a   :  { %6710 = vrcp.f32 %v5266_v26 }
0x1c35   :  { %v6709_v27 = vpop.eup %6708 }
0x1c36   :  { %v5273_v30 = vmul.f32 %v6709_v27, %v6705_v20  ;;  %v5529_v20 = vld [vmem:[%s8790_s22 + $0x10] sm:$0xff]  ;;  %v5528_v27 = vld [vmem:[%s8790_s22 + $0x8] sm:$0xff] }
0x1c37   :  { %v6711_v28 = vpop.eup %6710  ;;  %6281 = vmatpush3.msra.mxu0 %v5529_v20  ;;  %v5647_v20 = vld [vmem:[%s8711_s21 + $0x20] sm:$0xff] }
0x1c38   :  { %v5272_v29 = vmul.f32 %v6711_v28, %v6707_v22  ;;  %6282 = vmatprep.subr.mxu0 %v5544_v21  ;;  %v5646_v21 = vld [vmem:[%s8711_s21 + $0x18] sm:$0xff] }
0x1c39   :  { %6283 = vmatpush3.msra.mxu0 %v5528_v27 }
0x1c3a   :  { %6553 = vmatprep.mubr.msk.f32.mxu1 %vm439_vm5, %v5272_v29  ;;  %v5543_v29 = vld [vmem:[%s8790_s22 + $0x80] sm:$0xff] }
0x1c3b   :  { %6554 = vmatmul.mubr.msk.f32.vlgmr.msra.gmra.mxu1 %vm439_vm5, %v5273_v30  ;;  %v5527_v30 = vld [vmem:[%s8790_s22] sm:$0xff]  ;;  %6284 = vmatprep.subr.mxu0 %v5543_v29 }
0x1c3c   :  { %6557 = vmatpush3.msra.mxu1 %v6075_v31  ;;  %6285 = vmatpush3.msra.mxu0 %v5527_v30 }
0x1c3d   :  { %6561 = vmatprep.subr.mxu1 %v6734_v42 }
0x1cfb   :  { %v6555_v32 = vpop.f32.mrf.mxu1 }
0x1cfd   :  { %v5346_v33 = vpop.f32.mrf.mxu1 }
0x1cfe   :  { %6558 = vmatprep.mubr.msk.f32.mxu1 %vm1042_vm2, %v5346_v33  ;;  %v5658_v33 = vld [vmem:[%s8711_s21 + $0x78] sm:$0xff] }
0x1cff   :  { %6559 = vmatmul.mubr.msk.f32.vlgmr.msra.gmra.mxu1 %vm1042_vm2, %v6555_v32 }
0x1d00   :  { %6593 = vmatprep.mubr.msk.f32.mxu1 %vm6743_vm15, %v6734_v42  ;;  %6562 = vmatpush3.msra.mxu1 %v5658_v33 }
0x1d01   :  { %6563 = vmatprep.subr.mxu1 %v6734_v42 }
0x1d02   :  { %6564 = vmatpush3.msra.mxu1 %v5657_v34 }
0x1d03   :  { %6565 = vmatprep.subr.mxu1 %v6734_v42 }
0x1d04   :  { %6566 = vmatpush3.msra.mxu1 %v5656_v36 }
0x1d05   :  { %6567 = vmatprep.subr.mxu1 %v6734_v42 }
0x1d06   :  { %6568 = vmatpush3.msra.mxu1 %v5655_v37 }
0x1d07   :  { %6569 = vmatprep.subr.mxu1 %v6734_v42 }
0x1d08   :  { %6570 = vmatpush3.msra.mxu1 %v5654_v38  ;;  %v2850_v38 = vld [vmem:[#allocation7] sm:$0x1] }
0x1d09   :  { %6571 = vmatprep.subr.mxu1 %v6734_v42 }
0x1d0a   :  { %6572 = vmatpush3.msra.mxu1 %v5653_v39  ;;  %v2918_v39 = vadd.f32 %v7981_v24, %v2850_v38 }
0x1d0b   :  { %6573 = vmatprep.subr.mxu1 %v6734_v42 }
0x1d0c   :  { %6574 = vmatpush3.msra.mxu1 %v5652_v40 }
0x1d0d   :  { %6575 = vmatprep.subr.mxu1 %v6734_v42 }
0x1d0e   :  { %6576 = vmatpush3.msra.mxu1 %v5651_v41 }
0x1d0f   :  { %6577 = vmatprep.subr.mxu1 %v6734_v42 }
0x1d10   :  { %6578 = vmatpush3.msra.mxu1 %v5650_v43 }
0x1d11   :  { %6579 = vmatprep.subr.mxu1 %v6734_v42 }
0x1d12   :  { %6580 = vmatpush3.msra.mxu1 %v5649_v44 }
0x1d13   :  { %6581 = vmatprep.subr.mxu1 %v6734_v42 }
0x1d14   :  { %6582 = vmatpush3.msra.mxu1 %v5648_v45 }
0x1d15   :  { %6583 = vmatprep.subr.mxu1 %v6734_v42 }
0x1d16   :  { %6584 = vmatpush3.msra.mxu1 %v5647_v20 }
0x1d17   :  { %6585 = vmatprep.subr.mxu1 %v6734_v42 }
0x1d18   :  { %6586 = vmatpush3.msra.mxu1 %v5646_v21 }
0x1d19   :  { %6587 = vmatprep.subr.mxu1 %v6734_v42 }
0x1dbf   :  { %v6560_v54 = vpop.f32.mrf.mxu1 }
0x1dc0   :  { %v5438_v56 = vadd.f32 %v6560_v54, %v4910_v53 }
0x1dc1   :  { %v5428_v48 = vpop.f32.mrf.mxu1 }
0x1dc2   :  { %5440 = vst.msk [vmem:[#allocation3 + $0x8] sm:$0xff] %vm439_vm5, %v5438_v56  ;;  %v5437_v49 = vadd.f32 %v5428_v48, %v4909_v55 }
0x1dc4   :  { %5439 = vst.msk [vmem:[#allocation3] sm:$0xff] %vm439_vm5, %v5437_v49 }
0x1dc9   :  { %v5451_v1 = vld [vmem:[#allocation3 + $0xa] sm:$0x1]  ;;  %v5450_v4 = vld [vmem:[#allocation3 + $0x9] sm:$0x1]  ;;  %v5454_v10 = vld [vmem:[#allocation3 + $0xd] sm:$0x1] }
0x1dca   :  { %v5452_v11 = vld [vmem:[#allocation3 + $0xb] sm:$0x1]  ;;  %v5456_v22 = vld [vmem:[#allocation3 + $0xf] sm:$0x1]  ;;  %v5453_v23 = vld [vmem:[#allocation3 + $0xc] sm:$0x1] }
0x1dcb   :  { %v5443_v2 = vld [vmem:[#allocation3 + $0x2] sm:$0x1]  ;;  %v5442_v3 = vld [vmem:[#allocation3 + $0x1] sm:$0x1]  ;;  %v5446_v63 = vld [vmem:[#allocation3 + $0x5] sm:$0x1] }
0x1dcc   :  { %v6650_v5 = vpack.i.bf16 %v5443_v2, %v5451_v1  ;;  %v6645_v62 = vpack.i.bf16 %v5442_v3, %v5450_v4  ;;  %v5444_v6 = vld [vmem:[#allocation3 + $0x3] sm:$0x1]  ;;  %v6665_v15 = vpack.i.bf16 %v5446_v63, %v5454_v10  ;;  %v5448_v18 = vld [vmem:[#allocation3 + $0x7] sm:$0x1]  ;;  %v5445_v19 = vld [vmem:[#allocation3 + $0x4] sm:$0x1] }
0x1dcd   :  { %v6655_v16 = vpack.i.bf16 %v5444_v6, %v5452_v11  ;;  %v6675_v25 = vpack.i.bf16 %v5448_v18, %v5456_v22  ;;  %v6660_v26 = vpack.i.bf16 %v5445_v19, %v5453_v23  ;;  %v5447_v28 = vld [vmem:[#allocation3 + $0x6] sm:$0x1]  ;;  %v5455_v31 = vld [vmem:[#allocation3 + $0xe] sm:$0x1]  ;;  %v5449_v55 = vld [vmem:[#allocation3 + $0x8] sm:$0x1] }
0x1dce   :  { %6651 = vrot.lane.b32.xlu0 %v6650_v5, %s8773_s18  ;;  %6646 = vrot.lane.b32.xlu1 %v6645_v62, %s8767_s6  ;;  %v6670_v32 = vpack.i.bf16 %v5447_v28, %v5455_v31  ;;  %v5441_v56 = vld [vmem:[#allocation3] sm:$0x1]  ;;  %v5645_v22 = vld [vmem:[%s8711_s21 + $0x10] sm:$0xff]  ;;  %v5644_v23 = vld [vmem:[%s8711_s21 + $0x8] sm:$0xff] }
0x1dcf   :  { %6588 = vmatpush3.msra.mxu1 %v5645_v22  ;;  %v5559_v28 = vld [vmem:[%s8710_s19] sm:$0x1] }
0x1dd0   :  { %6589 = vmatprep.subr.mxu1 %v6734_v42 }
0x1dd1   :  { %6590 = vmatpush3.msra.mxu1 %v5644_v23 }
0x1dd2   :  { %6666 = vrot.lane.b32.xlu0 %v6665_v15, %s8768_s29  ;;  %6656 = vrot.lane.b32.xlu1 %v6655_v16, %s8769_s0 }
0x1dd3   :  { %6591 = vmatprep.subr.mxu1 %v6734_v42 }
0x1dd6   :  { %6676 = vrot.lane.b32.xlu0 %v6675_v25, %s8770_s7  ;;  %6661 = vrot.lane.b32.xlu1 %v6660_v26, %s8771_s25  ;;  %v5643_v25 = vld [vmem:[%s8711_s21] sm:$0xff]  ;;  %s6744_s21 = smov 1   ;;  %s6745_s25 = smov [#allocation8]  }
0x1dd7   :  { %6592 = vmatpush3.msra.mxu1 %v5643_v25 }
0x1dda   :  { %6671 = vrot.lane.b32.xlu1 %v6670_v32, %s8772_s26  ;;  %s5744_s26 = sshll.u32 %s6745_s25, 4  ;;  %s5745_s26 = int_to_ptr.vmem [resolvable:$true] %s5744_s26 }
0x1ddb   :  { %s6712_s19 = scalar_lea.vmem %s5745_s26, 16  ;;  %s6716_s22 = scalar_lea.vmem %s5745_s26, 32 }
0x1ddc   :  { %p6713_p0 = scmp.ne.s32.totalorder %s5745_s26, %s6712_s19  ;;  %p6717_p1 = scmp.lt.s32.totalorder %s5745_s26, %s5745_s26 }
0x1ddd   :  { %p6718_p2 = scmp.lt.s32.totalorder %s6716_s22, %s6712_s19 }
0x1dde   :  { %5634 = vperm.xlu1 %6609, %v5630_v35   ;;  %v5659_v35 = vld [vmem:[#allocation7] sm:$0x1] }
0x1ddf   :  { %p6719_p3 = por %p6718_p2, %p6717_p1 }
0x1de1   :  { %p6720_p4 = pnand %p6719_p3, %p6713_p0 }
0x1e40   :  { %v6652_v46 = vpop.permute.xlu0 %6651  ;;  %v6647_v47 = vpop.permute.xlu1 %6646 }
0x1e41   :  { %v6649_v50 = vunpack.i.h.bf16 %v6647_v47  ;;  %v6648_v51 = vunpack.i.l.bf16 %v6647_v47  ;;  %v6654_v53 = vunpack.i.h.bf16 %v6652_v46  ;;  %v6653_v54 = vunpack.i.l.bf16 %v6652_v46 }
0x1e43   :  { %v5513_v49 = vsel %vm439_vm5, %v5441_v56, %v6649_v50  ;;  %v5520_v9 = vsel %vm439_vm5, %v5449_v55, %v6648_v51 }
0x1e44   :  { %v6657_v52 = vpop.permute.xlu1 %6656  ;;  %v6667_v48 = vpop.permute.xlu0 %6666  ;;  %v5514_v59 = vsel %vm681_vm6, %v5513_v49, %v6654_v53  ;;  %v5521_v60 = vsel %vm681_vm6, %v5520_v9, %v6653_v54  ;;  %vm5734_vm6 = vcmask 7168  }
0x1e45   :  { %v6659_v12 = vunpack.i.h.bf16 %v6657_v52  ;;  %v6658_v57 = vunpack.i.l.bf16 %v6657_v52  ;;  %v6669_v62 = vunpack.i.h.bf16 %v6667_v48  ;;  %v6668_v63 = vunpack.i.l.bf16 %v6667_v48 }
0x1e47   :  { %v5515_v1 = vsel %vm684_vm7, %v5514_v59, %v6659_v12  ;;  %v5522_v2 = vsel %vm684_vm7, %v5521_v60, %v6658_v57  ;;  %vm5736_vm7 = vcmask 8192  }
0x1e48   :  { %v6662_v58 = vpop.permute.xlu1 %6661  ;;  %v6677_v3 = vpop.permute.xlu0 %6676 }
0x1e49   :  { %v6664_v61 = vunpack.i.h.bf16 %v6662_v58  ;;  %v6663_v0 = vunpack.i.l.bf16 %v6662_v58  ;;  %v6679_v10 = vunpack.i.h.bf16 %v6677_v3  ;;  %v6678_v11 = vunpack.i.l.bf16 %v6677_v3 }
0x1e4b   :  { %v5516_v4 = vsel %vm687_vm8, %v5515_v1, %v6664_v61  ;;  %v5523_v5 = vsel %vm687_vm8, %v5522_v2, %v6663_v0 }
0x1e4c   :  { %v6672_v6 = vpop.permute.xlu1 %6671  ;;  %v5524_v13 = vsel %vm690_vm9, %v5523_v5, %v6668_v63  ;;  %v5517_v15 = vsel %vm690_vm9, %v5516_v4, %v6669_v62 }
0x1e4d   :  { %v6674_v7 = vunpack.i.h.bf16 %v6672_v6  ;;  %v6673_v8 = vunpack.i.l.bf16 %v6672_v6 }
0x1e4f   :  { %v5525_v16 = vsel %vm693_vm10, %v5524_v13, %v6673_v8  ;;  %v5518_v17 = vsel %vm693_vm10, %v5517_v15, %v6674_v7 }
0x1e50   :  { %v5526_v18 = vsel %vm696_vm11, %v5525_v16, %v6678_v11  ;;  %v5519_v19 = vsel %vm696_vm11, %v5518_v17, %v6679_v10 }
0x1e51   :  { %5624 = vmatprep.mubr.f32.mxu0 %v5526_v18 }
0x1e52   :  { %5625 = vmatmul.mubr.f32.vlgmr.msra.gmra.mxu0 %v5519_v19 }
0x1e59   :  { %v5635_v27 = vpop.permute.xlu1 %5634 }
0x1e5a   :  { %v5640_v31 = vrot.slane %v5635_v27, %v7076_v14 }
0x1f12   :  { %v6286_v26 = vpop.f32.mrf.mxu0 }
0x1f14   :  { %v6287_v29 = vpop.f32.mrf.mxu0 }
0x1f15   :  { %v6288_v30 = vadd.f32 %v6287_v29, %v6286_v26 }
0x1f17   :  { %v5627_v32 = vadd.f32 %v6288_v30, %v5559_v28 }
0x1f19   :  { %v5641_v33 = vmul.f32 %v5640_v31, %v5627_v32  ;;  %vm5631_vm5 = vcmp.ge.f32.partialorder %v5627_v32, 0.0 }
0x1f1b   :  { %v5642_v34 = vsel %vm5631_vm5, %v5627_v32, %v5641_v33 }
0x1f1c   :  { %6594 = vmatmul.mubr.f32.vlgmr.msra.gmra.mxu1 %v5642_v34 }
0x1fdc   :  { %v5726_v36 = vpop.f32.mrf.mxu1 }
0x1fdd   :  { %v5727_v37 = vadd.f32 %v5726_v36, %v5659_v35 }
0x1fde   :  { %v6595_v42 = vpop.f32.mrf.mxu1 }
0x1fdf   :  { %5731 = vrot.lane.b32.xlu0 %v5727_v37, %s6744_s21 }
0x2051   :  { %v5732_v40 = vpop.permute.xlu0 %5731 }
0x2052   :  { %v5735_v14 = vsel %vm5734_vm6, %v2918_v39, %v5732_v40 }
0x2053   :  { %5737 = vst.msk [vmem:[#allocation8] sm:$0x1] %vm5736_vm7, %v5735_v14 }
0x2054   :  { %6723 = shalt.err (!%p6720_p4)
}
0x2055   :  { %s8792_s10 = sld [smem:[#allocation23_spill]] }
0x205b   :  { %5747 = dma.vmem_to_hbm [thread:$0]  %s5745_s26, 16, %s8792_s10, [#allocation9]  }
0x205c   :  { %6732 = dma.done.wait [#allocation9], 16  }
0x205d   :  { %6733 = vsyncadd [#allocation9], 4294967280 }
0x205e   :  { %5751 = vsyncpa [#allocation9], 1 }

</bundles_post_ra>
